<compile_context>
chip_gen: v5e
topology: v5e:2x2
jax: 0.10.0
libtpu: 0.0.40
codegen_flags: <defaults>
</compile_context>

<pallas_src>
import functools

import jax
import jax.numpy as jnp
from jax.experimental import pallas as pl
from jax.experimental.pallas import tpu as pltpu

KERNEL_SIZE = 3


# ----------------------------------------------------------------------------
# Fused Pallas kernel: all TemporalBlocks + GAP + FC for one batch tile
# ----------------------------------------------------------------------------
def _tcn_fused_kernel(x_ref, w1_ref, s1_ref, b1_ref, w2_ref, s2_ref, b2_ref,
                      wd_ref, bd_ref, wfc_ref, bfc_ref, o_ref,
                      *, dilations, down_map, T, Bblk, C):
    """One grid step handles Bblk batch elements end-to-end.

    x_ref  : (Bblk, T, C)     channel-padded input tile (f32)
    w1/w2  : (L, K*C, C)      conv weights, taps packed along contraction, bf16
    s*/b*  : (L, 1, C)        folded BN scale / (shift + conv bias), f32
    wd/bd  : (nD, C, C)/(nD,1,C)  1x1 downsample (only blocks that need it)
    wfc/bfc: (C, NC) bf16 / (1, NC) f32   final linear layer
    o_ref  : (Bblk, NC)       logits
    """
    K = KERNEL_SIZE
    BT = Bblk * T

    def shifted_windows(vb, dil):
        """vb: (Bblk, T, C) bf16 -> (BT, K*C) bf16; tap k column-block holds
        v[t - (K-1-k)*dil] with causal zero fill."""
        pad = (K - 1) * dil
        vp = jnp.concatenate(
            [jnp.zeros((Bblk, pad, C), jnp.bfloat16), vb], axis=1)
        return jnp.concatenate(
            [vp[:, k * dil:k * dil + T, :] for k in range(K)],
            axis=-1).reshape(BT, K * C)

    # Activation stays a register value for the whole tile (no HBM/VMEM trips).
    h = x_ref[...].astype(jnp.float32)                      # (Bblk, T, C)

    for l, dil in enumerate(dilations):
        h_bf = h.astype(jnp.bfloat16)        # one cast reused by conv1 + downsample

        # conv1 + (folded) BN1 + ReLU ; dropout1 = identity (inference)
        out1 = jnp.dot(shifted_windows(h_bf, dil), w1_ref[l],
                       preferred_element_type=jnp.float32)   # (BT, C)
        out1 = jnp.maximum(out1 * s1_ref[l] + b1_ref[l], 0.0)

        # conv2 + (folded) BN2 + ReLU ; dropout2 = identity (inference)
        out1_bf = out1.astype(jnp.bfloat16).reshape(Bblk, T, C)
        out2 = jnp.dot(shifted_windows(out1_bf, dil), w2_ref[l],
                       preferred_element_type=jnp.float32)
        out2 = jnp.maximum(out2 * s2_ref[l] + b2_ref[l], 0.0)

        # residual (1x1 downsample only when channel counts differ)
        di = down_map[l]
        if di >= 0:
            res = jnp.dot(h_bf.reshape(BT, C), wd_ref[di],
                          preferred_element_type=jnp.float32) + bd_ref[di]
        else:
            res = h.reshape(BT, C)
        h = jnp.maximum(out2 + res, 0.0).reshape(Bblk, T, C)

    # Head: global average pool over time + final linear layer (bf16 MXU, f32 acc).
    pooled = jnp.sum(h, axis=1) * (1.0 / T)                  # (Bblk, C)
    o_ref[...] = jnp.dot(pooled.astype(jnp.bfloat16), wfc_ref[...],
                         preferred_element_type=jnp.float32) + bfc_ref[...]


# ----------------------------------------------------------------------------
# Wrapper
# ----------------------------------------------------------------------------
def _pick_bblk(B, T):
    """Batch-tile size.  Prefer >=2 grid steps with >=256 rows per matmul,
    then >=2 steps with >=128 rows (keeps both v7x TCs busy, negligible
    per-step cost on v5e/v6e), else one big step.  Bblk % 8 == 0 or Bblk == B
    so the output BlockSpec is legal."""
    valid = [d for d in range(1, B + 1)
             if B % d == 0 and (d % 8 == 0 or d == B)]
    for min_bt in (256, 128):
        cand = [d for d in valid if d * T >= min_bt and B // d >= 2]
        if cand:
            return max(cand)          # fewest steps that still gives >=2
    return max(valid)                 # single step covering the whole batch


def tcn_classifier_forward(x, params):
    """x: (B, T, input_size) — same layout the dataset produces."""
    B, T, cin = x.shape
    C = params["W1"].shape[-1]
    NC = params["WFC"].shape[-1]
    assert cin <= C, "input_size larger than channel width not supported"
    if cin != C:  # pad channel dim once (extra channels have zero weights)
        x = jnp.pad(x, ((0, 0), (0, 0), (0, C - cin)))
    x = x.astype(jnp.float32)

    Bblk = _pick_bblk(B, T)
    kernel = functools.partial(
        _tcn_fused_kernel,
        dilations=tuple(params["dilations"]),
        down_map=tuple(params["down_map"]),
        T=T, Bblk=Bblk, C=C)

    full = lambda a: pl.BlockSpec(a.shape, lambda b: (0,) * a.ndim)
    # Per-step VMEM: x tile (double-buffered) + packed weights ~ a few hundred
    # KB — comfortably inside every generation's scoped VMEM, incl. v7x.
    return pl.pallas_call(
        kernel,
        out_shape=jax.ShapeDtypeStruct((B, NC), jnp.float32),
        grid=(B // Bblk,),
        in_specs=[
            pl.BlockSpec((Bblk, T, C), lambda b: (b, 0, 0)),
            full(params["W1"]), full(params["S1"]), full(params["B1"]),
            full(params["W2"]), full(params["S2"]), full(params["B2"]),
            full(params["WD"]), full(params["BD"]),
            full(params["WFC"]), full(params["BFC"]),
        ],
        out_specs=pl.BlockSpec((Bblk, NC), lambda b: (b, 0)),
        compiler_params=pltpu.CompilerParams(
            dimension_semantics=("parallel",)),
    )(x, params["W1"], params["S1"], params["B1"],
      params["W2"], params["S2"], params["B2"],
      params["WD"], params["BD"], params["WFC"], params["BFC"])


# ----------------------------------------------------------------------------
# Deterministic parameter init (matches TCNClassifier.__init__ shapes)
# ----------------------------------------------------------------------------
def init_params(key, input_size, num_classes,
                num_channels=(64, 64, 64), kernel_size=KERNEL_SIZE):
    eps = 1e-5
    L = len(num_channels)
    C = num_channels[0]
    assert all(c == C for c in num_channels), "uniform channels expected"

    W1P, W2P, S1, B1, S2, B2 = [], [], [], [], [], []
    WD, BD, down_map, dilations = [], [], [], []
    for i in range(L):
        cin = input_size if i == 0 else num_channels[i - 1]
        cout = num_channels[i]
        key, k1, k2, k3, k4, k5, k6 = jax.random.split(key, 7)
        # conv weights ~ N(0, 0.01) as in init_weights(); stored (tap, in, out)
        w1 = jnp.zeros((kernel_size, C, cout), jnp.float32)
        w1 = w1.at[:, :cin, :].set(
            0.01 * jax.random.normal(k1, (kernel_size, cin, cout), jnp.float32))
        b1 = 0.01 * jax.random.normal(k2, (cout,), jnp.float32)
        w2 = 0.01 * jax.random.normal(k3, (kernel_size, cout, cout), jnp.float32)
        b2 = 0.01 * jax.random.normal(k4, (cout,), jnp.float32)
        # BatchNorm1d (inference): gamma=1, beta=0, running_mean=0, running_var=1
        scale = jnp.ones((cout,), jnp.float32) / jnp.sqrt(1.0 + eps)
        # pack the K taps along the contraction dim: (K, C, C) -> (K*C, C)
        W1P.append(w1.reshape(kernel_size * C, cout))
        W2P.append(w2.reshape(kernel_size * C, cout))
        S1.append(scale); B1.append(b1 * scale)   # fold conv bias into shift
        S2.append(scale); B2.append(b2 * scale)
        if cin != cout:
            down_map.append(len(WD))
            wd = jnp.zeros((C, cout), jnp.float32)
            wd = wd.at[:cin, :].set(
                0.01 * jax.random.normal(k5, (cin, cout), jnp.float32))
            bd = 0.01 * jax.random.normal(k6, (cout,), jnp.float32)
            WD.append(wd); BD.append(bd)
        else:
            down_map.append(-1)
        dilations.append(2 ** i)

    if not WD:  # dummy, never read (no block needs a downsample)
        WD = [jnp.zeros((C, C), jnp.float32)]
        BD = [jnp.zeros((C,), jnp.float32)]

    key, kf1, kf2 = jax.random.split(key, 3)
    bound = 1.0 / float(C) ** 0.5
    wfc = jax.random.uniform(kf1, (C, num_classes), jnp.float32,
                             minval=-bound, maxval=bound)
    bfc = jax.random.uniform(kf2, (1, num_classes), jnp.float32,
                             minval=-bound, maxval=bound)

    return dict(
        W1=jnp.stack(W1P).astype(jnp.bfloat16),   # (L, K*C, C)
        W2=jnp.stack(W2P).astype(jnp.bfloat16),   # (L, K*C, C)
        S1=jnp.stack(S1).reshape(L, 1, C), B1=jnp.stack(B1).reshape(L, 1, C),
        S2=jnp.stack(S2).reshape(L, 1, C), B2=jnp.stack(B2).reshape(L, 1, C),
        WD=jnp.stack(WD).astype(jnp.bfloat16),    # (nD, C, C)
        BD=jnp.stack(BD).reshape(len(BD), 1, C),
        WFC=wfc.astype(jnp.bfloat16), BFC=bfc,
        dilations=tuple(dilations), down_map=tuple(down_map))


# ----------------------------------------------------------------------------
# Pure-JAX reference (same math & precision recipe) — sanity check
# ----------------------------------------------------------------------------
def reference_forward(x, params):
    K = KERNEL_SIZE
    C = params["W1"].shape[-1]
    cin = x.shape[-1]
    if cin != C:
        x = jnp.pad(x, ((0, 0), (0, 0), (0, C - cin)))
    h = x.astype(jnp.float32)
    B, T, _ = h.shape

    def conv(v, w, d):
        pad = (K - 1) * d
        vb = v.astype(jnp.bfloat16)
        vp = jnp.concatenate([jnp.zeros((B, pad, C), jnp.bfloat16), vb], axis=1)
        lhs = jnp.concatenate([vp[:, k * d:k * d + T, :] for k in range(K)],
                              axis=-1)
        return jnp.einsum("btk,kc->btc", lhs, w,
                          preferred_element_type=jnp.float32)

    for l, d in enumerate(params["dilations"]):
        out1 = jnp.maximum(conv(h, params["W1"][l], d) * params["S1"][l]
                           + params["B1"][l], 0.0)
        out2 = jnp.maximum(conv(out1, params["W2"][l], d) * params["S2"][l]
                           + params["B2"][l], 0.0)
        di = params["down_map"][l]
        if di >= 0:
            res = jnp.einsum("btc,cd->btd", h.astype(jnp.bfloat16),
                             params["WD"][di],
                             preferred_element_type=jnp.float32) + params["BD"][di]
        else:
            res = h
        h = jnp.maximum(out2 + res, 0.0)
    pooled = jnp.sum(h, axis=1) * (1.0 / T)
    return (jnp.dot(pooled.astype(jnp.bfloat16), params["WFC"],
                    preferred_element_type=jnp.float32) + params["BFC"])


# ----------------------------------------------------------------------------
if __name__ == "__main__":
    B, T, input_size, num_classes = 16, 16, 1, 4
    key = jax.random.PRNGKey(0)
    kx, kp = jax.random.split(key)
    x = jax.random.normal(kx, (B, T, input_size), jnp.float32)

    params = init_params(kp, input_size, num_classes)

    out = tcn_classifier_forward(x, params)
    out = jax.block_until_ready(out)

    ref = reference_forward(x, params)
    assert out.shape == (B, num_classes), out.shape
    if not jnp.allclose(out, ref, atol=1e-3, rtol=1e-3):
        raise AssertionError("Pallas output does not match JAX reference")
    print("KERNEL_OK")
</pallas_src>

<mosaic_0001>
module attributes {stable_mosaic.version = 11 : i64} {
  func.func @_tcn_fused_kernel(%arg0: i32, %arg1: memref<8x16x64xf32, #tpu.memory_space<vmem>>, %arg2: memref<3x192x64xbf16, #tpu.memory_space<vmem>>, %arg3: memref<3x1x64xf32, #tpu.memory_space<vmem>>, %arg4: memref<3x1x64xf32, #tpu.memory_space<vmem>>, %arg5: memref<3x192x64xbf16, #tpu.memory_space<vmem>>, %arg6: memref<3x1x64xf32, #tpu.memory_space<vmem>>, %arg7: memref<3x1x64xf32, #tpu.memory_space<vmem>>, %arg8: memref<1x64x64xbf16, #tpu.memory_space<vmem>>, %arg9: memref<1x1x64xf32, #tpu.memory_space<vmem>>, %arg10: memref<64x4xbf16, #tpu.memory_space<vmem>>, %arg11: memref<1x4xf32, #tpu.memory_space<vmem>>, %arg12: memref<8x4xf32, #tpu.memory_space<vmem>>) attributes {dimension_semantics = [#tpu.dimension_semantics<parallel>], iteration_bounds = array<i64: 2>, scalar_prefetch = 0 : i64, scratch_operands = 0 : i64, tpu.core_type = #tpu.core_type<tc>, window_params = [{transform_indices = @transform_0, window_bounds = array<i64: 8, 16, 64>}, {pipeline_mode = #tpu.pipeline_mode<synchronous>, transform_indices = @transform_1, window_bounds = array<i64: 3, 192, 64>}, {pipeline_mode = #tpu.pipeline_mode<synchronous>, transform_indices = @transform_2, window_bounds = array<i64: 3, 1, 64>}, {pipeline_mode = #tpu.pipeline_mode<synchronous>, transform_indices = @transform_3, window_bounds = array<i64: 3, 1, 64>}, {pipeline_mode = #tpu.pipeline_mode<synchronous>, transform_indices = @transform_4, window_bounds = array<i64: 3, 192, 64>}, {pipeline_mode = #tpu.pipeline_mode<synchronous>, transform_indices = @transform_5, window_bounds = array<i64: 3, 1, 64>}, {pipeline_mode = #tpu.pipeline_mode<synchronous>, transform_indices = @transform_6, window_bounds = array<i64: 3, 1, 64>}, {pipeline_mode = #tpu.pipeline_mode<synchronous>, transform_indices = @transform_7, window_bounds = array<i64: 1, 64, 64>}, {pipeline_mode = #tpu.pipeline_mode<synchronous>, transform_indices = @transform_8, window_bounds = array<i64: 1, 1, 64>}, {pipeline_mode = #tpu.pipeline_mode<synchronous>, transform_indices = @transform_9, window_bounds = array<i64: 64, 4>}, {pipeline_mode = #tpu.pipeline_mode<synchronous>, transform_indices = @transform_10, window_bounds = array<i64: 1, 4>}, {transform_indices = @transform_11, window_bounds = array<i64: 8, 4>}]} {
    %c0 = arith.constant 0 : index
    %c0_0 = arith.constant 0 : index
    %c0_1 = arith.constant 0 : index
    %0 = vector.load %arg1[%c0, %c0_0, %c0_1] : memref<8x16x64xf32, #tpu.memory_space<vmem>>, vector<8x16x64xf32>
    %1 = arith.truncf %0 : vector<8x16x64xf32> to vector<8x16x64xbf16>
    %cst = arith.constant 0.000000e+00 : bf16
    %2 = vector.broadcast %cst : bf16 to vector<8x2x64xbf16>
    %3 = tpu.concatenate %2, %1 in 1 : vector<8x2x64xbf16>, vector<8x16x64xbf16> -> vector<8x18x64xbf16>
    %4 = vector.extract_strided_slice %3 {offsets = [0, 0, 0], sizes = [8, 16, 64], strides = [1, 1, 1]} : vector<8x18x64xbf16> to vector<8x16x64xbf16>
    %5 = vector.extract_strided_slice %3 {offsets = [0, 1, 0], sizes = [8, 16, 64], strides = [1, 1, 1]} : vector<8x18x64xbf16> to vector<8x16x64xbf16>
    %6 = vector.extract_strided_slice %3 {offsets = [0, 2, 0], sizes = [8, 16, 64], strides = [1, 1, 1]} : vector<8x18x64xbf16> to vector<8x16x64xbf16>
    %7 = tpu.concatenate %4, %5, %6 in 2 : vector<8x16x64xbf16>, vector<8x16x64xbf16>, vector<8x16x64xbf16> -> vector<8x16x192xbf16>
    %8 = vector.shape_cast %7 : vector<8x16x192xbf16> to vector<128x192xbf16>
    %c0_2 = arith.constant 0 : index
    %c0_3 = arith.constant 0 : index
    %c0_4 = arith.constant 0 : index
    %9 = vector.load %arg2[%c0_2, %c0_3, %c0_4] : memref<3x192x64xbf16, #tpu.memory_space<vmem>>, vector<1x192x64xbf16>
    %10 = vector.shape_cast %9 : vector<1x192x64xbf16> to vector<192x64xbf16>
    %cst_5 = arith.constant dense<0.000000e+00> : vector<128x64xf32>
    %11 = tpu.matmul %8, %10, %cst_5 {dimension_numbers = #tpu.dot_dimension_numbers<[1], [0], [0], [1], [0, 0, 1, 1], [], []>} : vector<128x192xbf16>, vector<192x64xbf16>, vector<128x64xf32> -> vector<128x64xf32>
    %c0_6 = arith.constant 0 : index
    %c0_7 = arith.constant 0 : index
    %c0_8 = arith.constant 0 : index
    %12 = vector.load %arg3[%c0_6, %c0_7, %c0_8] : memref<3x1x64xf32, #tpu.memory_space<vmem>>, vector<1x1x64xf32>
    %13 = vector.shape_cast %12 : vector<1x1x64xf32> to vector<1x64xf32>
    %14 = vector.broadcast %13 : vector<1x64xf32> to vector<128x64xf32>
    %15 = arith.mulf %11, %14 : vector<128x64xf32>
    %c0_9 = arith.constant 0 : index
    %c0_10 = arith.constant 0 : index
    %c0_11 = arith.constant 0 : index
    %16 = vector.load %arg4[%c0_9, %c0_10, %c0_11] : memref<3x1x64xf32, #tpu.memory_space<vmem>>, vector<1x1x64xf32>
    %17 = vector.shape_cast %16 : vector<1x1x64xf32> to vector<1x64xf32>
    %18 = vector.broadcast %17 : vector<1x64xf32> to vector<128x64xf32>
    %19 = arith.addf %15, %18 : vector<128x64xf32>
    %cst_12 = arith.constant 0.000000e+00 : f32
    %20 = vector.broadcast %cst_12 : f32 to vector<128x64xf32>
    %21 = arith.maximumf %19, %20 : vector<128x64xf32>
    %22 = arith.truncf %21 : vector<128x64xf32> to vector<128x64xbf16>
    %23 = vector.shape_cast %22 : vector<128x64xbf16> to vector<8x16x64xbf16>
    %cst_13 = arith.constant 0.000000e+00 : bf16
    %24 = vector.broadcast %cst_13 : bf16 to vector<8x2x64xbf16>
    %25 = tpu.concatenate %24, %23 in 1 : vector<8x2x64xbf16>, vector<8x16x64xbf16> -> vector<8x18x64xbf16>
    %26 = vector.extract_strided_slice %25 {offsets = [0, 0, 0], sizes = [8, 16, 64], strides = [1, 1, 1]} : vector<8x18x64xbf16> to vector<8x16x64xbf16>
    %27 = vector.extract_strided_slice %25 {offsets = [0, 1, 0], sizes = [8, 16, 64], strides = [1, 1, 1]} : vector<8x18x64xbf16> to vector<8x16x64xbf16>
    %28 = vector.extract_strided_slice %25 {offsets = [0, 2, 0], sizes = [8, 16, 64], strides = [1, 1, 1]} : vector<8x18x64xbf16> to vector<8x16x64xbf16>
    %29 = tpu.concatenate %26, %27, %28 in 2 : vector<8x16x64xbf16>, vector<8x16x64xbf16>, vector<8x16x64xbf16> -> vector<8x16x192xbf16>
    %30 = vector.shape_cast %29 : vector<8x16x192xbf16> to vector<128x192xbf16>
    %c0_14 = arith.constant 0 : index
    %c0_15 = arith.constant 0 : index
    %c0_16 = arith.constant 0 : index
    %31 = vector.load %arg5[%c0_14, %c0_15, %c0_16] : memref<3x192x64xbf16, #tpu.memory_space<vmem>>, vector<1x192x64xbf16>
    %32 = vector.shape_cast %31 : vector<1x192x64xbf16> to vector<192x64xbf16>
    %cst_17 = arith.constant dense<0.000000e+00> : vector<128x64xf32>
    %33 = tpu.matmul %30, %32, %cst_17 {dimension_numbers = #tpu.dot_dimension_numbers<[1], [0], [0], [1], [0, 0, 1, 1], [], []>} : vector<128x192xbf16>, vector<192x64xbf16>, vector<128x64xf32> -> vector<128x64xf32>
    %c0_18 = arith.constant 0 : index
    %c0_19 = arith.constant 0 : index
    %c0_20 = arith.constant 0 : index
    %34 = vector.load %arg6[%c0_18, %c0_19, %c0_20] : memref<3x1x64xf32, #tpu.memory_space<vmem>>, vector<1x1x64xf32>
    %35 = vector.shape_cast %34 : vector<1x1x64xf32> to vector<1x64xf32>
    %36 = vector.broadcast %35 : vector<1x64xf32> to vector<128x64xf32>
    %37 = arith.mulf %33, %36 : vector<128x64xf32>
    %c0_21 = arith.constant 0 : index
    %c0_22 = arith.constant 0 : index
    %c0_23 = arith.constant 0 : index
    %38 = vector.load %arg7[%c0_21, %c0_22, %c0_23] : memref<3x1x64xf32, #tpu.memory_space<vmem>>, vector<1x1x64xf32>
    %39 = vector.shape_cast %38 : vector<1x1x64xf32> to vector<1x64xf32>
    %40 = vector.broadcast %39 : vector<1x64xf32> to vector<128x64xf32>
    %41 = arith.addf %37, %40 : vector<128x64xf32>
    %cst_24 = arith.constant 0.000000e+00 : f32
    %42 = vector.broadcast %cst_24 : f32 to vector<128x64xf32>
    %43 = arith.maximumf %41, %42 : vector<128x64xf32>
    %44 = vector.shape_cast %1 : vector<8x16x64xbf16> to vector<128x64xbf16>
    %c0_25 = arith.constant 0 : index
    %c0_26 = arith.constant 0 : index
    %c0_27 = arith.constant 0 : index
    %45 = vector.load %arg8[%c0_25, %c0_26, %c0_27] : memref<1x64x64xbf16, #tpu.memory_space<vmem>>, vector<1x64x64xbf16>
    %46 = vector.shape_cast %45 : vector<1x64x64xbf16> to vector<64x64xbf16>
    %cst_28 = arith.constant dense<0.000000e+00> : vector<128x64xf32>
    %47 = tpu.matmul %44, %46, %cst_28 {dimension_numbers = #tpu.dot_dimension_numbers<[1], [0], [0], [1], [0, 0, 1, 1], [], []>} : vector<128x64xbf16>, vector<64x64xbf16>, vector<128x64xf32> -> vector<128x64xf32>
    %c0_29 = arith.constant 0 : index
    %c0_30 = arith.constant 0 : index
    %c0_31 = arith.constant 0 : index
    %48 = vector.load %arg9[%c0_29, %c0_30, %c0_31] : memref<1x1x64xf32, #tpu.memory_space<vmem>>, vector<1x1x64xf32>
    %49 = vector.shape_cast %48 : vector<1x1x64xf32> to vector<1x64xf32>
    %50 = vector.broadcast %49 : vector<1x64xf32> to vector<128x64xf32>
    %51 = arith.addf %47, %50 : vector<128x64xf32>
    %52 = arith.addf %43, %51 : vector<128x64xf32>
    %cst_32 = arith.constant 0.000000e+00 : f32
    %53 = vector.broadcast %cst_32 : f32 to vector<128x64xf32>
    %54 = arith.maximumf %52, %53 : vector<128x64xf32>
    %55 = vector.shape_cast %54 : vector<128x64xf32> to vector<8x16x64xf32>
    %56 = arith.truncf %55 : vector<8x16x64xf32> to vector<8x16x64xbf16>
    %cst_33 = arith.constant 0.000000e+00 : bf16
    %57 = vector.broadcast %cst_33 : bf16 to vector<8x4x64xbf16>
    %58 = tpu.concatenate %57, %56 in 1 : vector<8x4x64xbf16>, vector<8x16x64xbf16> -> vector<8x20x64xbf16>
    %59 = vector.extract_strided_slice %58 {offsets = [0, 0, 0], sizes = [8, 16, 64], strides = [1, 1, 1]} : vector<8x20x64xbf16> to vector<8x16x64xbf16>
    %60 = vector.extract_strided_slice %58 {offsets = [0, 2, 0], sizes = [8, 16, 64], strides = [1, 1, 1]} : vector<8x20x64xbf16> to vector<8x16x64xbf16>
    %61 = vector.extract_strided_slice %58 {offsets = [0, 4, 0], sizes = [8, 16, 64], strides = [1, 1, 1]} : vector<8x20x64xbf16> to vector<8x16x64xbf16>
    %62 = tpu.concatenate %59, %60, %61 in 2 : vector<8x16x64xbf16>, vector<8x16x64xbf16>, vector<8x16x64xbf16> -> vector<8x16x192xbf16>
    %63 = vector.shape_cast %62 : vector<8x16x192xbf16> to vector<128x192xbf16>
    %c1 = arith.constant 1 : index
    %c0_34 = arith.constant 0 : index
    %c0_35 = arith.constant 0 : index
    %64 = vector.load %arg2[%c1, %c0_34, %c0_35] : memref<3x192x64xbf16, #tpu.memory_space<vmem>>, vector<1x192x64xbf16>
    %65 = vector.shape_cast %64 : vector<1x192x64xbf16> to vector<192x64xbf16>
    %cst_36 = arith.constant dense<0.000000e+00> : vector<128x64xf32>
    %66 = tpu.matmul %63, %65, %cst_36 {dimension_numbers = #tpu.dot_dimension_numbers<[1], [0], [0], [1], [0, 0, 1, 1], [], []>} : vector<128x192xbf16>, vector<192x64xbf16>, vector<128x64xf32> -> vector<128x64xf32>
    %c1_37 = arith.constant 1 : index
    %c0_38 = arith.constant 0 : index
    %c0_39 = arith.constant 0 : index
    %67 = vector.load %arg3[%c1_37, %c0_38, %c0_39] : memref<3x1x64xf32, #tpu.memory_space<vmem>>, vector<1x1x64xf32>
    %68 = vector.shape_cast %67 : vector<1x1x64xf32> to vector<1x64xf32>
    %69 = vector.broadcast %68 : vector<1x64xf32> to vector<128x64xf32>
    %70 = arith.mulf %66, %69 : vector<128x64xf32>
    %c1_40 = arith.constant 1 : index
    %c0_41 = arith.constant 0 : index
    %c0_42 = arith.constant 0 : index
    %71 = vector.load %arg4[%c1_40, %c0_41, %c0_42] : memref<3x1x64xf32, #tpu.memory_space<vmem>>, vector<1x1x64xf32>
    %72 = vector.shape_cast %71 : vector<1x1x64xf32> to vector<1x64xf32>
    %73 = vector.broadcast %72 : vector<1x64xf32> to vector<128x64xf32>
    %74 = arith.addf %70, %73 : vector<128x64xf32>
    %cst_43 = arith.constant 0.000000e+00 : f32
    %75 = vector.broadcast %cst_43 : f32 to vector<128x64xf32>
    %76 = arith.maximumf %74, %75 : vector<128x64xf32>
    %77 = arith.truncf %76 : vector<128x64xf32> to vector<128x64xbf16>
    %78 = vector.shape_cast %77 : vector<128x64xbf16> to vector<8x16x64xbf16>
    %cst_44 = arith.constant 0.000000e+00 : bf16
    %79 = vector.broadcast %cst_44 : bf16 to vector<8x4x64xbf16>
    %80 = tpu.concatenate %79, %78 in 1 : vector<8x4x64xbf16>, vector<8x16x64xbf16> -> vector<8x20x64xbf16>
    %81 = vector.extract_strided_slice %80 {offsets = [0, 0, 0], sizes = [8, 16, 64], strides = [1, 1, 1]} : vector<8x20x64xbf16> to vector<8x16x64xbf16>
    %82 = vector.extract_strided_slice %80 {offsets = [0, 2, 0], sizes = [8, 16, 64], strides = [1, 1, 1]} : vector<8x20x64xbf16> to vector<8x16x64xbf16>
    %83 = vector.extract_strided_slice %80 {offsets = [0, 4, 0], sizes = [8, 16, 64], strides = [1, 1, 1]} : vector<8x20x64xbf16> to vector<8x16x64xbf16>
    %84 = tpu.concatenate %81, %82, %83 in 2 : vector<8x16x64xbf16>, vector<8x16x64xbf16>, vector<8x16x64xbf16> -> vector<8x16x192xbf16>
    %85 = vector.shape_cast %84 : vector<8x16x192xbf16> to vector<128x192xbf16>
    %c1_45 = arith.constant 1 : index
    %c0_46 = arith.constant 0 : index
    %c0_47 = arith.constant 0 : index
    %86 = vector.load %arg5[%c1_45, %c0_46, %c0_47] : memref<3x192x64xbf16, #tpu.memory_space<vmem>>, vector<1x192x64xbf16>
    %87 = vector.shape_cast %86 : vector<1x192x64xbf16> to vector<192x64xbf16>
    %cst_48 = arith.constant dense<0.000000e+00> : vector<128x64xf32>
    %88 = tpu.matmul %85, %87, %cst_48 {dimension_numbers = #tpu.dot_dimension_numbers<[1], [0], [0], [1], [0, 0, 1, 1], [], []>} : vector<128x192xbf16>, vector<192x64xbf16>, vector<128x64xf32> -> vector<128x64xf32>
    %c1_49 = arith.constant 1 : index
    %c0_50 = arith.constant 0 : index
    %c0_51 = arith.constant 0 : index
    %89 = vector.load %arg6[%c1_49, %c0_50, %c0_51] : memref<3x1x64xf32, #tpu.memory_space<vmem>>, vector<1x1x64xf32>
    %90 = vector.shape_cast %89 : vector<1x1x64xf32> to vector<1x64xf32>
    %91 = vector.broadcast %90 : vector<1x64xf32> to vector<128x64xf32>
    %92 = arith.mulf %88, %91 : vector<128x64xf32>
    %c1_52 = arith.constant 1 : index
    %c0_53 = arith.constant 0 : index
    %c0_54 = arith.constant 0 : index
    %93 = vector.load %arg7[%c1_52, %c0_53, %c0_54] : memref<3x1x64xf32, #tpu.memory_space<vmem>>, vector<1x1x64xf32>
    %94 = vector.shape_cast %93 : vector<1x1x64xf32> to vector<1x64xf32>
    %95 = vector.broadcast %94 : vector<1x64xf32> to vector<128x64xf32>
    %96 = arith.addf %92, %95 : vector<128x64xf32>
    %cst_55 = arith.constant 0.000000e+00 : f32
    %97 = vector.broadcast %cst_55 : f32 to vector<128x64xf32>
    %98 = arith.maximumf %96, %97 : vector<128x64xf32>
    %99 = vector.shape_cast %55 : vector<8x16x64xf32> to vector<128x64xf32>
    %100 = arith.addf %98, %99 : vector<128x64xf32>
    %cst_56 = arith.constant 0.000000e+00 : f32
    %101 = vector.broadcast %cst_56 : f32 to vector<128x64xf32>
    %102 = arith.maximumf %100, %101 : vector<128x64xf32>
    %103 = vector.shape_cast %102 : vector<128x64xf32> to vector<8x16x64xf32>
    %104 = arith.truncf %103 : vector<8x16x64xf32> to vector<8x16x64xbf16>
    %cst_57 = arith.constant 0.000000e+00 : bf16
    %105 = vector.broadcast %cst_57 : bf16 to vector<8x8x64xbf16>
    %106 = tpu.concatenate %105, %104 in 1 : vector<8x8x64xbf16>, vector<8x16x64xbf16> -> vector<8x24x64xbf16>
    %107 = vector.extract_strided_slice %106 {offsets = [0, 0, 0], sizes = [8, 16, 64], strides = [1, 1, 1]} : vector<8x24x64xbf16> to vector<8x16x64xbf16>
    %108 = vector.extract_strided_slice %106 {offsets = [0, 4, 0], sizes = [8, 16, 64], strides = [1, 1, 1]} : vector<8x24x64xbf16> to vector<8x16x64xbf16>
    %109 = vector.extract_strided_slice %106 {offsets = [0, 8, 0], sizes = [8, 16, 64], strides = [1, 1, 1]} : vector<8x24x64xbf16> to vector<8x16x64xbf16>
    %110 = tpu.concatenate %107, %108, %109 in 2 : vector<8x16x64xbf16>, vector<8x16x64xbf16>, vector<8x16x64xbf16> -> vector<8x16x192xbf16>
    %111 = vector.shape_cast %110 : vector<8x16x192xbf16> to vector<128x192xbf16>
    %c2 = arith.constant 2 : index
    %c0_58 = arith.constant 0 : index
    %c0_59 = arith.constant 0 : index
    %112 = vector.load %arg2[%c2, %c0_58, %c0_59] : memref<3x192x64xbf16, #tpu.memory_space<vmem>>, vector<1x192x64xbf16>
    %113 = vector.shape_cast %112 : vector<1x192x64xbf16> to vector<192x64xbf16>
    %cst_60 = arith.constant dense<0.000000e+00> : vector<128x64xf32>
    %114 = tpu.matmul %111, %113, %cst_60 {dimension_numbers = #tpu.dot_dimension_numbers<[1], [0], [0], [1], [0, 0, 1, 1], [], []>} : vector<128x192xbf16>, vector<192x64xbf16>, vector<128x64xf32> -> vector<128x64xf32>
    %c2_61 = arith.constant 2 : index
    %c0_62 = arith.constant 0 : index
    %c0_63 = arith.constant 0 : index
    %115 = vector.load %arg3[%c2_61, %c0_62, %c0_63] : memref<3x1x64xf32, #tpu.memory_space<vmem>>, vector<1x1x64xf32>
    %116 = vector.shape_cast %115 : vector<1x1x64xf32> to vector<1x64xf32>
    %117 = vector.broadcast %116 : vector<1x64xf32> to vector<128x64xf32>
    %118 = arith.mulf %114, %117 : vector<128x64xf32>
    %c2_64 = arith.constant 2 : index
    %c0_65 = arith.constant 0 : index
    %c0_66 = arith.constant 0 : index
    %119 = vector.load %arg4[%c2_64, %c0_65, %c0_66] : memref<3x1x64xf32, #tpu.memory_space<vmem>>, vector<1x1x64xf32>
    %120 = vector.shape_cast %119 : vector<1x1x64xf32> to vector<1x64xf32>
    %121 = vector.broadcast %120 : vector<1x64xf32> to vector<128x64xf32>
    %122 = arith.addf %118, %121 : vector<128x64xf32>
    %cst_67 = arith.constant 0.000000e+00 : f32
    %123 = vector.broadcast %cst_67 : f32 to vector<128x64xf32>
    %124 = arith.maximumf %122, %123 : vector<128x64xf32>
    %125 = arith.truncf %124 : vector<128x64xf32> to vector<128x64xbf16>
    %126 = vector.shape_cast %125 : vector<128x64xbf16> to vector<8x16x64xbf16>
    %cst_68 = arith.constant 0.000000e+00 : bf16
    %127 = vector.broadcast %cst_68 : bf16 to vector<8x8x64xbf16>
    %128 = tpu.concatenate %127, %126 in 1 : vector<8x8x64xbf16>, vector<8x16x64xbf16> -> vector<8x24x64xbf16>
    %129 = vector.extract_strided_slice %128 {offsets = [0, 0, 0], sizes = [8, 16, 64], strides = [1, 1, 1]} : vector<8x24x64xbf16> to vector<8x16x64xbf16>
    %130 = vector.extract_strided_slice %128 {offsets = [0, 4, 0], sizes = [8, 16, 64], strides = [1, 1, 1]} : vector<8x24x64xbf16> to vector<8x16x64xbf16>
    %131 = vector.extract_strided_slice %128 {offsets = [0, 8, 0], sizes = [8, 16, 64], strides = [1, 1, 1]} : vector<8x24x64xbf16> to vector<8x16x64xbf16>
    %132 = tpu.concatenate %129, %130, %131 in 2 : vector<8x16x64xbf16>, vector<8x16x64xbf16>, vector<8x16x64xbf16> -> vector<8x16x192xbf16>
    %133 = vector.shape_cast %132 : vector<8x16x192xbf16> to vector<128x192xbf16>
    %c2_69 = arith.constant 2 : index
    %c0_70 = arith.constant 0 : index
    %c0_71 = arith.constant 0 : index
    %134 = vector.load %arg5[%c2_69, %c0_70, %c0_71] : memref<3x192x64xbf16, #tpu.memory_space<vmem>>, vector<1x192x64xbf16>
    %135 = vector.shape_cast %134 : vector<1x192x64xbf16> to vector<192x64xbf16>
    %cst_72 = arith.constant dense<0.000000e+00> : vector<128x64xf32>
    %136 = tpu.matmul %133, %135, %cst_72 {dimension_numbers = #tpu.dot_dimension_numbers<[1], [0], [0], [1], [0, 0, 1, 1], [], []>} : vector<128x192xbf16>, vector<192x64xbf16>, vector<128x64xf32> -> vector<128x64xf32>
    %c2_73 = arith.constant 2 : index
    %c0_74 = arith.constant 0 : index
    %c0_75 = arith.constant 0 : index
    %137 = vector.load %arg6[%c2_73, %c0_74, %c0_75] : memref<3x1x64xf32, #tpu.memory_space<vmem>>, vector<1x1x64xf32>
    %138 = vector.shape_cast %137 : vector<1x1x64xf32> to vector<1x64xf32>
    %139 = vector.broadcast %138 : vector<1x64xf32> to vector<128x64xf32>
    %140 = arith.mulf %136, %139 : vector<128x64xf32>
    %c2_76 = arith.constant 2 : index
    %c0_77 = arith.constant 0 : index
    %c0_78 = arith.constant 0 : index
    %141 = vector.load %arg7[%c2_76, %c0_77, %c0_78] : memref<3x1x64xf32, #tpu.memory_space<vmem>>, vector<1x1x64xf32>
    %142 = vector.shape_cast %141 : vector<1x1x64xf32> to vector<1x64xf32>
    %143 = vector.broadcast %142 : vector<1x64xf32> to vector<128x64xf32>
    %144 = arith.addf %140, %143 : vector<128x64xf32>
    %cst_79 = arith.constant 0.000000e+00 : f32
    %145 = vector.broadcast %cst_79 : f32 to vector<128x64xf32>
    %146 = arith.maximumf %144, %145 : vector<128x64xf32>
    %147 = vector.shape_cast %103 : vector<8x16x64xf32> to vector<128x64xf32>
    %148 = arith.addf %146, %147 : vector<128x64xf32>
    %cst_80 = arith.constant 0.000000e+00 : f32
    %149 = vector.broadcast %cst_80 : f32 to vector<128x64xf32>
    %150 = arith.maximumf %148, %149 : vector<128x64xf32>
    %151 = vector.shape_cast %150 : vector<128x64xf32> to vector<8x16x64xf32>
    %cst_81 = arith.constant dense<0.000000e+00> : vector<8x64xf32>
    %152 = vector.multi_reduction <add>, %151, %cst_81 [1] : vector<8x16x64xf32> to vector<8x64xf32>
    %cst_82 = arith.constant 6.250000e-02 : f32
    %153 = vector.broadcast %cst_82 : f32 to vector<8x64xf32>
    %154 = arith.mulf %152, %153 : vector<8x64xf32>
    %155 = arith.truncf %154 : vector<8x64xf32> to vector<8x64xbf16>
    %c0_83 = arith.constant 0 : index
    %c0_84 = arith.constant 0 : index
    %156 = vector.load %arg10[%c0_83, %c0_84] : memref<64x4xbf16, #tpu.memory_space<vmem>>, vector<64x4xbf16>
    %cst_85 = arith.constant dense<0.000000e+00> : vector<8x4xf32>
    %157 = tpu.matmul %155, %156, %cst_85 {dimension_numbers = #tpu.dot_dimension_numbers<[1], [0], [0], [1], [0, 0, 1, 1], [], []>} : vector<8x64xbf16>, vector<64x4xbf16>, vector<8x4xf32> -> vector<8x4xf32>
    %c0_86 = arith.constant 0 : index
    %c0_87 = arith.constant 0 : index
    %158 = vector.load %arg11[%c0_86, %c0_87] : memref<1x4xf32, #tpu.memory_space<vmem>>, vector<1x4xf32>
    %159 = vector.broadcast %158 : vector<1x4xf32> to vector<8x4xf32>
    %160 = arith.addf %157, %159 : vector<8x4xf32>
    %c0_88 = arith.constant 0 : index
    %c0_89 = arith.constant 0 : index
    %161 = vector.load %arg12[%c0_88, %c0_89] : memref<8x4xf32, #tpu.memory_space<vmem>>, vector<8x4xf32>
    tpu.vector_store %arg12[%c0_88, %c0_89], %160 {strides = array<i32>} : memref<8x4xf32, #tpu.memory_space<vmem>>, vector<8x4xf32>,
    return
  }
  func.func @transform_0(%arg0: i32) -> (i32, i32, i32) {
    %c0_i32 = arith.constant 0 : i32
    %c0_i32_0 = arith.constant 0 : i32
    %c0_i32_1 = arith.constant 0 : i32
    return %arg0, %c0_i32, %c0_i32_0 : i32, i32, i32
  }
  func.func @transform_1(%arg0: i32) -> (i32, i32, i32) {
    %c0_i32 = arith.constant 0 : i32
    %c0_i32_0 = arith.constant 0 : i32
    %c0_i32_1 = arith.constant 0 : i32
    %c0_i32_2 = arith.constant 0 : i32
    return %c0_i32, %c0_i32_0, %c0_i32_1 : i32, i32, i32
  }
  func.func @transform_2(%arg0: i32) -> (i32, i32, i32) {
    %c0_i32 = arith.constant 0 : i32
    %c0_i32_0 = arith.constant 0 : i32
    %c0_i32_1 = arith.constant 0 : i32
    %c0_i32_2 = arith.constant 0 : i32
    return %c0_i32, %c0_i32_0, %c0_i32_1 : i32, i32, i32
  }
  func.func @transform_3(%arg0: i32) -> (i32, i32, i32) {
    %c0_i32 = arith.constant 0 : i32
    %c0_i32_0 = arith.constant 0 : i32
    %c0_i32_1 = arith.constant 0 : i32
    %c0_i32_2 = arith.constant 0 : i32
    return %c0_i32, %c0_i32_0, %c0_i32_1 : i32, i32, i32
  }
  func.func @transform_4(%arg0: i32) -> (i32, i32, i32) {
    %c0_i32 = arith.constant 0 : i32
    %c0_i32_0 = arith.constant 0 : i32
    %c0_i32_1 = arith.constant 0 : i32
    %c0_i32_2 = arith.constant 0 : i32
    return %c0_i32, %c0_i32_0, %c0_i32_1 : i32, i32, i32
  }
  func.func @transform_5(%arg0: i32) -> (i32, i32, i32) {
    %c0_i32 = arith.constant 0 : i32
    %c0_i32_0 = arith.constant 0 : i32
    %c0_i32_1 = arith.constant 0 : i32
    %c0_i32_2 = arith.constant 0 : i32
    return %c0_i32, %c0_i32_0, %c0_i32_1 : i32, i32, i32
  }
  func.func @transform_6(%arg0: i32) -> (i32, i32, i32) {
    %c0_i32 = arith.constant 0 : i32
    %c0_i32_0 = arith.constant 0 : i32
    %c0_i32_1 = arith.constant 0 : i32
    %c0_i32_2 = arith.constant 0 : i32
    return %c0_i32, %c0_i32_0, %c0_i32_1 : i32, i32, i32
  }
  func.func @transform_7(%arg0: i32) -> (i32, i32, i32) {
    %c0_i32 = arith.constant 0 : i32
    %c0_i32_0 = arith.constant 0 : i32
    %c0_i32_1 = arith.constant 0 : i32
    %c0_i32_2 = arith.constant 0 : i32
    return %c0_i32, %c0_i32_0, %c0_i32_1 : i32, i32, i32
  }
  func.func @transform_8(%arg0: i32) -> (i32, i32, i32) {
    %c0_i32 = arith.constant 0 : i32
    %c0_i32_0 = arith.constant 0 : i32
    %c0_i32_1 = arith.constant 0 : i32
    %c0_i32_2 = arith.constant 0 : i32
    return %c0_i32, %c0_i32_0, %c0_i32_1 : i32, i32, i32
  }
  func.func @transform_9(%arg0: i32) -> (i32, i32) {
    %c0_i32 = arith.constant 0 : i32
    %c0_i32_0 = arith.constant 0 : i32
    %c0_i32_1 = arith.constant 0 : i32
    return %c0_i32, %c0_i32_0 : i32, i32
  }
  func.func @transform_10(%arg0: i32) -> (i32, i32) {
    %c0_i32 = arith.constant 0 : i32
    %c0_i32_0 = arith.constant 0 : i32
    %c0_i32_1 = arith.constant 0 : i32
    return %c0_i32, %c0_i32_0 : i32, i32
  }
  func.func @transform_11(%arg0: i32) -> (i32, i32) {
    %c0_i32 = arith.constant 0 : i32
    %c0_i32_0 = arith.constant 0 : i32
    return %arg0, %c0_i32 : i32, i32
  }
}

</mosaic_0001>

<bundles_post_ra>
// kernel: tpu_custom_call.1
= control target key start
LH: loop header
LB: loop body
LE: loop exit
PB: predicated region body
PF: predicated region fallthrough
CT: control target
= control target key end

     0   :  { %s4348_s17 = smov 0   ;;  %s5715_s0 = inlined_call_operand.vmem [shape: f32[16,16,64], index: 0, kind: input, shape index: {}]   ;;  %s5716_s1 = inlined_call_operand.vmem [shape: bf16[3,192,64], index: 1, kind: input, shape index: {}]   ;;  %s5717_s2 = inlined_call_operand.vmem [shape: f32[3,1,64], index: 2, kind: input, shape index: {}]   ;;  %s5718_s3 = inlined_call_operand.vmem [shape: f32[3,1,64], index: 3, kind: input, shape index: {}]   ;;  %s5719_s4 = inlined_call_operand.vmem [shape: bf16[3,192,64], index: 4, kind: input, shape index: {}]   ;;  %s5720_s5 = inlined_call_operand.vmem [shape: f32[3,1,64], index: 5, kind: input, shape index: {}]   ;;  %s5721_s6 = inlined_call_operand.vmem [shape: f32[3,1,64], index: 6, kind: input, shape index: {}]   ;;  %s5722_s7 = inlined_call_operand.vmem [shape: bf16[1,64,64], index: 7, kind: input, shape index: {}]   ;;  %s5723_s8 = inlined_call_operand.vmem [shape: f32[1,1,64], index: 8, kind: input, shape index: {}]   ;;  %s5724_s9 = inlined_call_operand.vmem [shape: bf16[64,4], index: 9, kind: input, shape index: {}]   ;;  %s5725_s10 = inlined_call_operand.vmem [shape: f32[1,4], index: 10, kind: input, shape index: {}]   ;;  %s5726_s11 = inlined_call_operand.vmem [shape: f32[16,4], index: 11, kind: output, shape index: {}]  }
   0x1 LB: > { %s4354_s18 = sadd.s32 4294967295, %s4285_s17   ;;  %p3675_p0 = scmp.ge.s32.totalorder %s4285_s17, 1  ;;  %s4285_s17 = sphi %s4348_s17, %s21_s17  }
   0x2   : > { %p339_p1 = scmp.lt.s32.totalorder %s4285_s17, 3 }
   0x4   : > { %p340_p2 = pnand %p3675_p0, %p339_p1 }
   0x5   : > { %s3676_s19 = sshll.u32 (!%p340_p2), %s4354_s18, 3  ;;  %p386_p4 = scmp.lt.s32.totalorder (!%p340_p2), %s4354_s18, 1 }
   0x6   : > { %343 = sbr.rel (%p340_p2) target bundleno = 2059 (0x80b), region = 64  ;;  %p380_p3 = scmp.lt.s32.totalorder (!%p340_p2), %s3676_s19, 15 }
   0xb   : > { %v4171_v0 = vld [vmem:[%s5716_s1 + $0x38] sm:$0xff]  ;;  %s5728_s19 = smov (!%p380_p3, %s3676_s19), 15  ;;  %v4170_v1 = vld [vmem:[%s5716_s1 + $0x30] sm:$0xff]  ;;  %v4169_v2 = vld [vmem:[%s5716_s1 + $0x28] sm:$0xff]  ;;  %vm471_vm0 = vcmask 1040384   ;;  %vm594_vm2 = vcmask 1046528  }
   0xc   : > { %764 = vmatpush.bf16.msra.mxu0 %v4171_v0  ;;  %s4163_s24 = sshll.u32 %s5728_s19, 4  ;;  %v4168_v33 = vld [vmem:[%s5716_s1 + $0x20] sm:$0xff]  ;;  %v4167_v50 = vld [vmem:[%s5716_s1 + $0x18] sm:$0xff]  ;;  %vm489_vm1 = vsmask.f32 7424  ;;  %s4287_s19 = smov 64  }
   0xd   : > { %s4368_s27 = scalar_lea.vmem %s5715_s0, %s4163_s24  ;;  %vm619_vm3 = vcmask 523264   ;;  %vm1629_vm4 = vcmask 1041408   ;;  %vm1694_vm5 = vcmask 1045504   ;;  %vm2569_vm6 = vcmask 1043456   ;;  %s5730_s18 = smov (!%p386_p4, %s4354_s18), 1 }
   0xe   : > { %v391_v3 = vld [vmem:[%s4368_s27] sm:$0xff]  ;;  %v392_v4 = vld [vmem:[%s4368_s27 + $0x8] sm:$0xff]  ;;  %v393_v5 = vld [vmem:[%s4368_s27 + $0x10] sm:$0xff]  ;;  %vm3561_vm7 = vcmask 1041409   ;;  %vm3563_vm8 = vcmask 1042434   ;;  %vm3565_vm9 = vcmask 1043459  }
   0xf   : > { %v407_v6 = vpack.c.bf16 %v391_v3, %v391_v3  ;;  %v408_v7 = vpack.c.bf16 %v392_v4, %v392_v4  ;;  %v394_v8 = vld [vmem:[%s4368_s27 + $0x18] sm:$0xff]  ;;  %v409_v9 = vpack.c.bf16 %v393_v5, %v393_v5  ;;  %v395_v10 = vld [vmem:[%s4368_s27 + $0x20] sm:$0xff]  ;;  %v396_v11 = vld [vmem:[%s4368_s27 + $0x28] sm:$0xff]  ;;  %vm3567_vm10 = vcmask 1044484   ;;  %s3679_s14 = sshll.u32 %s5730_s18, 3 }
  0x10   : > { %765 = vmatpush.bf16.msra.mxu0 %v4170_v1  ;;  %v410_v12 = vpack.c.bf16 %v394_v8, %v394_v8  ;;  %v411_v13 = vpack.c.bf16 %v395_v10, %v395_v10  ;;  %v412_v14 = vpack.c.bf16 %v396_v11, %v396_v11  ;;  %v397_v15 = vld [vmem:[%s4368_s27 + $0x30] sm:$0xff]  ;;  %v398_v16 = vld [vmem:[%s4368_s27 + $0x38] sm:$0xff]  ;;  %v399_v17 = vld [vmem:[%s4368_s27 + $0x40] sm:$0xff]  ;;  %vm3569_vm11 = vcmask 1045509  }
  0x11   : > { %v439_v18 = vunpack.c.l.b16 %v407_v6  ;;  %v440_v19 = vunpack.c.l.b16 %v408_v7  ;;  %v441_v20 = vunpack.c.l.b16 %v409_v9  ;;  %v413_v21 = vpack.c.bf16 %v397_v15, %v397_v15  ;;  %v400_v22 = vld [vmem:[%s4368_s27 + $0x48] sm:$0xff]  ;;  %v403_v23 = vld [vmem:[%s4368_s27 + $0x60] sm:$0xff]  ;;  %v401_v62 = vld [vmem:[%s4368_s27 + $0x50] sm:$0xff] }
  0x12   : > { %v442_v24 = vunpack.c.l.b16 %v410_v12  ;;  %v443_v25 = vunpack.c.l.b16 %v411_v13  ;;  %v444_v26 = vunpack.c.l.b16 %v412_v14  ;;  %v414_v27 = vpack.c.bf16 %v398_v16, %v398_v16  ;;  %v404_v28 = vld [vmem:[%s4368_s27 + $0x68] sm:$0xff]  ;;  %v4166_v3 = vld [vmem:[%s5716_s1 + $0x10] sm:$0xff]  ;;  %v402_v16 = vld [vmem:[%s4368_s27 + $0x58] sm:$0xff] }
  0x13   : > { %v4385_v29 = vpack.c.b16 %v440_v19, %v439_v18  ;;  %v445_v30 = vunpack.c.l.b16 %v413_v21  ;;  %v415_v31 = vpack.c.bf16 %v399_v17, %v399_v17  ;;  %v416_v32 = vpack.c.bf16 %v400_v22, %v400_v22  ;;  %v4165_v21 = vld [vmem:[%s5716_s1 + $0x8] sm:$0xff]  ;;  %v405_v22 = vld [vmem:[%s4368_s27 + $0x70] sm:$0xff] }
  0x14   : > { %766 = vmatpush.bf16.msra.mxu0 %v4169_v2  ;;  %v4390_v34 = vpack.c.b16 %v442_v24, %v441_v20  ;;  %v4392_v35 = vpack.c.b16 %v444_v26, %v443_v25  ;;  %v446_v36 = vunpack.c.l.b16 %v414_v27  ;;  %v419_v37 = vpack.c.bf16 %v403_v23, %v403_v23  ;;  %v406_v23 = vld [vmem:[%s4368_s27 + $0x78] sm:$0xff] }
  0x15   : > { %v4395_v38 = vrot.slane %v4385_v29, 7  ;;  %v447_v39 = vunpack.c.l.b16 %v415_v31  ;;  %v448_v40 = vunpack.c.l.b16 %v416_v32  ;;  %v420_v41 = vpack.c.bf16 %v404_v28, %v404_v28 }
  0x16   : > { %v4398_v42 = vrot.slane %v4390_v34, 7  ;;  %v4401_v43 = vrot.slane %v4392_v35, 7  ;;  %v4403_v44 = vpack.c.b16 %v446_v36, %v445_v30  ;;  %v451_v45 = vunpack.c.l.b16 %v419_v37 }
  0x17   : > { %v4407_v46 = vsel %vm471_vm0, 0, %v4395_v38  ;;  %v496_v47 = vshll.u32 %v4395_v38, 16  ;;  %v4410_v48 = vpack.c.b16 %v448_v40, %v447_v39  ;;  %v452_v49 = vunpack.c.l.b16 %v420_v41 }
  0x18   : > { %767 = vmatpush.bf16.msra.mxu0 %v4168_v33  ;;  %v490_v51 = vshrl.u32 %v4407_v46, 16  ;;  %v492_v52 = vshll.u32 %v4407_v46, 16  ;;  %v4419_v53 = vsel %vm471_vm0, 0, %v4398_v42  ;;  %v506_v54 = vshll.u32 %v4398_v42, 16 }
  0x19   : > { %v498_v55 = vrot.slane %v496_v47, 1  ;;  %v502_v56 = vshll.u32 %v4419_v53, 16  ;;  %v4425_v57 = vsel %vm471_vm0, 0, %v4401_v43  ;;  %v500_v59 = vshrl.u32 %v4419_v53, 16 }
  0x1a   : > { %v494_v58 = vrot.slane %v492_v52, 1  ;;  %v510_v60 = vshrl.u32 %v4425_v57, 16  ;;  %v512_v61 = vshll.u32 %v4425_v57, 16  ;;  %v516_v0 = vshll.u32 %v4401_v43, 16  ;;  %v4164_v52 = vld [vmem:[%s5716_s1] sm:$0xff] }
  0x1b   : > { %v504_v63 = vrot.slane %v502_v56, 1  ;;  %v4433_v1 = vrot.slane %v4403_v44, 7  ;;  %v4436_v2 = vrot.slane %v4410_v48, 7  ;;  %v508_v5 = vrot.slane %v506_v54, 1 }
  0x1c   : > { %768 = vmatpush.bf16.msra.mxu0 %v4167_v50  ;;  %v495_v4 = vor.u32 %v494_v58, %v490_v51  ;;  %v514_v6 = vrot.slane %v512_v61, 1  ;;  %v4441_v7 = vpack.c.b16 %v452_v49, %v451_v45  ;;  %v518_v8 = vrot.slane %v516_v0, 1 }
  0x1d   : > { %v4445_v9 = vsel %vm471_vm0, 0, %v4433_v1  ;;  %v526_v10 = vshll.u32 %v4433_v1, 16  ;;  %v417_v11 = vpack.c.bf16 %v401_v62, %v401_v62  ;;  %v505_v17 = vor.u32 %v504_v63, %v500_v59 }
  0x1e   : > { %v499_v12 = vsel %vm489_vm1, %v495_v4, %v498_v55  ;;  %v515_v13 = vor.u32 %v514_v6, %v510_v60  ;;  %v520_v14 = vshrl.u32 %v4445_v9, 16  ;;  %v522_v15 = vshll.u32 %v4445_v9, 16 }
  0x1f   : > { %570 = vrot.lane.b32.xlu0 %v499_v12, %s4287_s19  ;;  %v528_v18 = vrot.slane %v526_v10, 1  ;;  %v4455_v19 = vsel %vm471_vm0, 0, %v4436_v2  ;;  %v536_v20 = vshll.u32 %v4436_v2, 16  ;;  %v4468_v30 = vrot.slane %v4441_v7, 7 }
  0x20   : > { %769 = vmatpush.bf16.msra.mxu0 %v4166_v3  ;;  %v519_v24 = vsel %vm489_vm1, %v515_v13, %v518_v8  ;;  %v524_v25 = vrot.slane %v522_v15, 1  ;;  %v530_v26 = vshrl.u32 %v4455_v19, 16  ;;  %v532_v27 = vshll.u32 %v4455_v19, 16 }
  0x21   : > { %574 = vrot.lane.b32.xlu1 %v519_v24, %s4287_s19  ;;  %v538_v28 = vrot.slane %v536_v20, 1  ;;  %v418_v31 = vpack.c.bf16 %v402_v16, %v402_v16  ;;  %v449_v32 = vunpack.c.l.b16 %v417_v11  ;;  %v421_v37 = vpack.c.bf16 %v405_v22, %v405_v22  ;;  %v4175_v24 = vld [vmem:[%s5716_s1 + $0x58] sm:$0xff] }
  0x22   : > { %v525_v33 = vor.u32 %v524_v25, %v520_v14  ;;  %v534_v36 = vrot.slane %v532_v27, 1  ;;  %v422_v39 = vpack.c.bf16 %v406_v23, %v406_v23  ;;  %v4472_v40 = vsel %vm471_vm0, 0, %v4468_v30  ;;  %4244 = vmatpush.bf16.msra.mxu1 %v4175_v24  ;;  %v4174_v25 = vld [vmem:[%s5716_s1 + $0x50] sm:$0xff]  ;;  %4245 = vmatpush.bf16.msra.mxu2 %v4175_v24  ;;  %v4172_v27 = vld [vmem:[%s5716_s1 + $0x40] sm:$0xff] }
  0x23   : > { %v556_v41 = vshll.u32 %v4468_v30, 16  ;;  %v450_v45 = vunpack.c.l.b16 %v418_v31  ;;  %v509_v47 = vsel %vm489_vm1, %v505_v17, %v508_v5  ;;  %v550_v50 = vshrl.u32 %v4472_v40, 16  ;;  %4246 = vmatpush.bf16.msra.mxu3 %v4175_v24 }
  0x24   : > { %770 = vmatpush.bf16.msra.mxu0 %v4165_v21  ;;  %v535_v49 = vor.u32 %v534_v36, %v530_v26  ;;  %v552_v51 = vshll.u32 %v4472_v40, 16  ;;  %v453_v55 = vunpack.c.l.b16 %v421_v37  ;;  %v454_v56 = vunpack.c.l.b16 %v422_v39  ;;  %v4173_v26 = vld [vmem:[%s5716_s1 + $0x48] sm:$0xff] }
  0x25   : > { %v4481_v54 = vpack.c.b16 %v450_v45, %v449_v32  ;;  %v529_v58 = vsel %vm489_vm1, %v525_v33, %v528_v18  ;;  %v558_v61 = vrot.slane %v556_v41, 1  ;;  %v599_v31 = vrot.slane %v4398_v42, 1 }
  0x26   : > { %v539_v59 = vsel %vm489_vm1, %v535_v49, %v538_v28  ;;  %v554_v60 = vrot.slane %v552_v51, 1  ;;  %v4490_v63 = vpack.c.b16 %v454_v56, %v453_v55  ;;  %4247 = vmatpush.bf16.msra.mxu1 %v4174_v25  ;;  %4248 = vmatpush.bf16.msra.mxu2 %v4174_v25  ;;  %v598_v28 = vrot.slane %v4419_v53, 1 }
  0x27   : > { %572 = vrot.lane.b32.xlu0 %v509_v47, %s4287_s19  ;;  %578 = vrot.lane.b32.xlu2 %v539_v59, %s4287_s19  ;;  %v4488_v62 = vrot.slane %v4481_v54, 7  ;;  %v601_v33 = vrot.slane %v4425_v57, 1  ;;  %v602_v36 = vrot.slane %v4401_v43, 1  ;;  %v604_v47 = vrot.slane %v4445_v9, 1 }
  0x28   : > { %v555_v0 = vor.u32 %v554_v60, %v550_v50  ;;  %771 = vmatpush.bf16.msra.mxu0 %v4164_v52  ;;  %v4499_v5 = vrot.slane %v4490_v63, 7  ;;  %4249 = vmatpush.bf16.msra.mxu3 %v4174_v25  ;;  %v600_v32 = vsel %vm594_vm2, %v598_v28, %v599_v31  ;;  %v605_v49 = vrot.slane %v4433_v1, 1 }
  0x29   : > { %576 = vrot.lane.b32.xlu1 %v529_v58, %s4287_s19  ;;  %v4495_v3 = vsel %vm471_vm0, 0, %v4488_v62  ;;  %v546_v4 = vshll.u32 %v4488_v62, 16  ;;  %v603_v41 = vsel %vm594_vm2, %v601_v33, %v602_v36  ;;  %v607_v43 = vrot.slane %v4455_v19, 1 }
  0x2a   : > { %v540_v6 = vshrl.u32 %v4495_v3, 16  ;;  %v542_v8 = vshll.u32 %v4495_v3, 16  ;;  %v559_v10 = vsel %vm489_vm1, %v555_v0, %v558_v61  ;;  %v4506_v11 = vsel %vm471_vm0, 0, %v4499_v5  ;;  %4250 = vmatpush.bf16.msra.mxu1 %v4173_v26  ;;  %4251 = vmatpush.bf16.msra.mxu2 %v4173_v26 }
  0x2b   : > { %v566_v12 = vshll.u32 %v4499_v5, 16  ;;  %v548_v14 = vrot.slane %v546_v4, 1  ;;  %v560_v15 = vshrl.u32 %v4506_v11, 16  ;;  %v562_v16 = vshll.u32 %v4506_v11, 16 }
  0x2c   : > { %v544_v13 = vrot.slane %v542_v8, 1  ;;  %817 = vmatpush.bf16.msrb.mxu0 %v4175_v24  ;;  %4252 = vmatpush.bf16.msra.mxu3 %v4173_v26  ;;  %v606_v50 = vsel %vm594_vm2, %v604_v47, %v605_v49  ;;  %v608_v51 = vrot.slane %v4436_v2, 1  ;;  %v610_v1 = vrot.slane %v4495_v3, 1 }
  0x2d   : > { %v564_v18 = vrot.slane %v562_v16, 1  ;;  %v568_v20 = vrot.slane %v566_v12, 1  ;;  %v611_v56 = vrot.slane %v4488_v62, 1  ;;  %v613_v60 = vrot.slane %v4472_v40, 1 }
  0x2e   : > { %v545_v17 = vor.u32 %v544_v13, %v540_v6  ;;  %4253 = vmatpush.bf16.msra.mxu1 %v4172_v27  ;;  %4254 = vmatpush.bf16.msra.mxu2 %v4172_v27  ;;  %v609_v52 = vsel %vm594_vm2, %v607_v43, %v608_v51  ;;  %v614_v61 = vrot.slane %v4468_v30, 1  ;;  %v616_v4 = vrot.slane %v4506_v11, 1 }
  0x2f   : > { %582 = vrot.lane.b32.xlu0 %v559_v10, %s4287_s19  ;;  %v565_v22 = vor.u32 %v564_v18, %v560_v15  ;;  %v612_v58 = vsel %vm594_vm2, %v610_v1, %v611_v56  ;;  %v617_v6 = vrot.slane %v4499_v5, 1  ;;  %v595_v5 = vrot.slane %v4407_v46, 1 }
  0x30   : > { %v549_v21 = vsel %vm489_vm1, %v545_v17, %v548_v14  ;;  %818 = vmatpush.bf16.msrb.mxu0 %v4174_v25  ;;  %4255 = vmatpush.bf16.msra.mxu3 %v4172_v27  ;;  %v596_v14 = vrot.slane %v4395_v38, 1  ;;  %v4589_v38 = vld [vmem:[%s5718_s3] ss:$0 sm:$0xff]  ;;  %vm3571_vm12 = vcmask 1046534   ;;  %vm3573_vm13 = vcmask 1047559  }
  0x31   : > { %580 = vrot.lane.b32.xlu2 %v549_v21, %s4287_s19  ;;  %v569_v23 = vsel %vm489_vm1, %v565_v22, %v568_v20  ;;  %3729 = vmatmul.msk.bf16.vlgmr.msra.gmra.mxu1 %vm619_vm3, %v600_v32  ;;  %vm3616_vm14 = vcmask 31744  }
  0x32   : > { %584 = vrot.lane.b32.xlu1 %v569_v23, %s4287_s19  ;;  %3732 = vmatmul.msk.bf16.vlgmr.msra.gmra.mxu2 %vm619_vm3, %v609_v52  ;;  %v597_v16 = vsel %vm594_vm2, %v595_v5, %v596_v14 }
  0x34   : > { %819 = vmatpush.bf16.msrb.mxu0 %v4173_v26 }
  0x38   : > { %820 = vmatpush.bf16.msrb.mxu0 %v4172_v27 }
  0x41   : > { %3730 = vmatmul.msk.bf16.gmra.mxu1 %vm619_vm3, %v603_v41 }
  0x42   : > { %3733 = vmatmul.msk.bf16.gmra.mxu2 %vm619_vm3, %v612_v58 }
  0x51   : > { %3731 = vmatmul.msk.bf16.gmra.mxu1 %vm619_vm3, %v606_v50 }
  0x81   : > { %v579_v0 = vpop.permute.xlu2 %578 }
  0x82   : > { %v633_v62 = vsel %vm619_vm3, %v4455_v19, %v579_v0 }
  0x8b   : > { %v581_v8 = vpop.permute.xlu2 %580 }
  0x8c   : > { %v636_v30 = vsel %vm619_vm3, %v4495_v3, %v581_v8 }
  0x91   : > { %v571_v37 = vpop.permute.xlu0 %570 }
  0x92   : > { %v621_v39 = vsel %vm619_vm3, %v4407_v46, %v571_v37 }
  0x93   : > { %772 = vmatmul.bf16.vlgmr.msra.gmra.mxu0 %v621_v39  ;;  %v575_v55 = vpop.permute.xlu1 %574 }
  0x99   : > { %v573_v42 = vpop.permute.xlu0 %572 }
  0x9a   : > { %v624_v45 = vsel %vm619_vm3, %v4419_v53, %v573_v42  ;;  %v627_v53 = vsel %vm619_vm3, %v4425_v57, %v575_v55  ;;  %v615_v57 = vsel %vm594_vm2, %v613_v60, %v614_v61 }
  0x9b   : > { %v577_v59 = vpop.permute.xlu1 %576  ;;  %3734 = vmatmul.msk.bf16.gmra.mxu2 %vm619_vm3, %v615_v57 }
  0x9c   : > { %v630_v2 = vsel %vm619_vm3, %v4445_v9, %v577_v59  ;;  %v618_v9 = vsel %vm594_vm2, %v616_v4, %v617_v6 }
  0x9d   : > { %3735 = vmatmul.msk.bf16.vlgmr.msra.gmra.mxu3 %vm619_vm3, %v618_v9 }
  0xa1   : > { %v583_v10 = vpop.permute.xlu0 %582 }
  0xa2   : > { %v639_v12 = vsel %vm619_vm3, %v4472_v40, %v583_v10  ;;  %v4583_v40 = vld [vmem:[%s5717_s2] ss:$0 sm:$0xff] }
  0xa3   : > { %777 = vmatmul.bf16.gmra.mxu0 %v624_v45 }
  0xa4   : > { %v585_v19 = vpop.permute.xlu1 %584 }
  0xa5   : > { %v642_v13 = vsel %vm619_vm3, %v4506_v11, %v585_v19 }
  0xae   : > { %v827_v17 = vpop.f32.mrf.mxu1 }
  0xb3   : > { %782 = vmatmul.bf16.gmra.mxu0 %v627_v53 }
  0xb6   : > { %v829_v20 = vpop.f32.mrf.mxu1 }
  0xbe   : > { %v832_v26 = vpop.f32.mrf.mxu1 }
  0xc3   : > { %787 = vmatmul.bf16.gmra.mxu0 %v630_v2 }
  0xc6   : > { %v834_v45 = vpop.f32.mrf.mxu1 }
  0xd3   : > { %792 = vmatmul.bf16.gmra.mxu0 %v633_v62 }
  0xe3   : > { %797 = vmatmul.bf16.gmra.mxu0 %v636_v30 }
  0xf3   : > { %802 = vmatmul.bf16.gmra.mxu0 %v639_v12  ;;  %v842_v12 = vpop.f32.mrf.mxu2 }
 0x103   : > { %807 = vmatmul.bf16.gmra.mxu0 %v642_v13 }
 0x110   : > { %v4574_v15 = vpop.f32.mrf.mxu0 }
 0x113   : > { %3728 = vmatmul.msk.bf16.vlgmr.msrb.gmra.mxu0 %vm619_vm3, %v597_v16 }
 0x118   : > { %v4578_v3 = vpop.f32.mrf.mxu0 }
 0x120   : > { %v778_v11 = vpop.f32.mrf.mxu0 }
 0x121   : > { %v828_v18 = vadd.f32 %v827_v17, %v778_v11 }
 0x123   : > { %v868_v46 = vmul.f32 %v4583_v40, %v828_v18 }
 0x125   : > { %v888_v21 = vadd.f32 %v4589_v38, %v868_v46 }
 0x127   : > { %v904_v24 = vmax.f32 %v888_v21, 0.0  ;;  %v844_v21 = vpop.f32.mrf.mxu2 }
 0x128   : > { %v780_v22 = vpop.f32.mrf.mxu0 }
 0x129   : > { %v830_v23 = vadd.f32 %v829_v20, %v780_v22  ;;  %v920_v28 = vpack.c.bf16 %v904_v24, %v904_v24 }
 0x12b   : > { %v869_v25 = vmul.f32 %v4583_v40, %v830_v23  ;;  %v952_v37 = vunpack.c.l.b16 %v920_v28 }
 0x12d   : > { %v889_v27 = vadd.f32 %v4589_v38, %v869_v25 }
 0x12f   : > { %v905_v31 = vmax.f32 %v889_v27, 0.0  ;;  %v847_v28 = vpop.f32.mrf.mxu2 }
 0x130   : > { %v783_v32 = vpop.f32.mrf.mxu0 }
 0x131   : > { %v921_v33 = vpack.c.bf16 %v905_v31, %v905_v31  ;;  %v833_v36 = vadd.f32 %v832_v26, %v783_v32 }
 0x133   : > { %v953_v39 = vunpack.c.l.b16 %v921_v33  ;;  %v870_v41 = vmul.f32 %v4583_v40, %v833_v36 }
 0x135   : > { %v967_v42 = vpack.c.b16 %v953_v39, %v952_v37  ;;  %v890_v49 = vadd.f32 %v4589_v38, %v870_v41 }
 0x137   : > { %v4595_v47 = vrot.slane %v967_v42, 7  ;;  %v906_v53 = vmax.f32 %v890_v49, 0.0 }
 0x138   : > { %v785_v50 = vpop.f32.mrf.mxu0 }
 0x139   : > { %v835_v43 = vadd.f32 %v834_v45, %v785_v50  ;;  %v4600_v51 = vsel %vm471_vm0, 0, %v4595_v47  ;;  %v1014_v55 = vshll.u32 %v4595_v47, 16  ;;  %v922_v61 = vpack.c.bf16 %v906_v53, %v906_v53  ;;  %v849_v50 = vpop.f32.mrf.mxu2 }
 0x13a   : > { %v1010_v52 = vshll.u32 %v4600_v51, 16  ;;  %v1008_v56 = vshrl.u32 %v4600_v51, 16 }
 0x13b   : > { %v871_v1 = vmul.f32 %v4583_v40, %v835_v43  ;;  %v1016_v60 = vrot.slane %v1014_v55, 1  ;;  %v954_v6 = vunpack.c.l.b16 %v922_v61 }
 0x13c   : > { %v1012_v58 = vrot.slane %v1010_v52, 1 }
 0x13d   : > { %v891_v59 = vadd.f32 %v4589_v38, %v871_v1 }
 0x13e   : > { %v1013_v2 = vor.u32 %v1012_v58, %v1008_v56 }
 0x13f   : > { %v907_v57 = vmax.f32 %v891_v59, 0.0 }
 0x140   : > { %v4607_v0 = vpop.f32.mrf.mxu0  ;;  %v1017_v62 = vsel %vm489_vm1, %v1013_v2, %v1016_v60 }
 0x141   : > { %v923_v4 = vpack.c.bf16 %v907_v57, %v907_v57  ;;  %1080 = vrot.lane.b32.xlu0 %v1017_v62, %s4287_s19 }
 0x143   : > { %v955_v9 = vunpack.c.l.b16 %v923_v4 }
 0x145   : > { %v968_v8 = vpack.c.b16 %v955_v9, %v954_v6 }
 0x147   : > { %v4611_v30 = vrot.slane %v968_v8, 7 }
 0x148   : > { %v4613_v10 = vpop.f32.mrf.mxu0 }
 0x149   : > { %v4617_v19 = vsel %vm471_vm0, 0, %v4611_v30  ;;  %v1024_v5 = vshll.u32 %v4611_v30, 16 }
 0x14a   : > { %v1020_v13 = vshll.u32 %v4617_v19, 16  ;;  %v1018_v14 = vshrl.u32 %v4617_v19, 16 }
 0x14b   : > { %v1026_v11 = vrot.slane %v1024_v5, 1 }
 0x14c   : > { %v1022_v16 = vrot.slane %v1020_v13, 1 }
 0x14e   : > { %v1023_v17 = vor.u32 %v1022_v16, %v1018_v14 }
 0x150   : > { %v793_v18 = vpop.f32.mrf.mxu0  ;;  %v1027_v20 = vsel %vm489_vm1, %v1023_v17, %v1026_v11 }
 0x151   : > { %v843_v46 = vadd.f32 %v842_v12, %v793_v18  ;;  %1082 = vrot.lane.b32.xlu1 %v1027_v20, %s4287_s19 }
 0x153   : > { %v874_v22 = vmul.f32 %v4583_v40, %v843_v46 }
 0x155   : > { %v894_v23 = vadd.f32 %v4589_v38, %v874_v22  ;;  %v857_v22 = vpop.f32.mrf.mxu3 }
 0x157   : > { %v910_v26 = vmax.f32 %v894_v23, 0.0 }
 0x158   : > { %v795_v24 = vpop.f32.mrf.mxu0 }
 0x159   : > { %v845_v25 = vadd.f32 %v844_v21, %v795_v24  ;;  %v926_v32 = vpack.c.bf16 %v910_v26, %v910_v26  ;;  %v837_v21 = vpop.f32.mrf.mxu1 }
 0x15b   : > { %v875_v27 = vmul.f32 %v4583_v40, %v845_v25  ;;  %v958_v41 = vunpack.c.l.b16 %v926_v32  ;;  %v4187_v25 = vld [vmem:[%s5719_s4 + $0x58] sm:$0xff]  ;;  %v4186_v32 = vld [vmem:[%s5719_s4 + $0x50] sm:$0xff] }
 0x15c   : > { %1323 = vmatpush.bf16.msrb.mxu3 %v4187_v25 }
 0x15d   : > { %v895_v31 = vadd.f32 %v4589_v38, %v875_v27 }
 0x15f   : > { %v911_v33 = vmax.f32 %v895_v31, 0.0 }
 0x160   : > { %v798_v36 = vpop.f32.mrf.mxu0  ;;  %1324 = vmatpush.bf16.msrb.mxu3 %v4186_v32 }
 0x161   : > { %v927_v37 = vpack.c.bf16 %v911_v33, %v911_v33  ;;  %v848_v39 = vadd.f32 %v847_v28, %v798_v36 }
 0x163   : > { %v959_v42 = vunpack.c.l.b16 %v927_v37  ;;  %v876_v45 = vmul.f32 %v4583_v40, %v848_v39  ;;  %v852_v37 = vpop.f32.mrf.mxu2  ;;  %v4185_v39 = vld [vmem:[%s5719_s4 + $0x48] sm:$0xff] }
 0x164   : > { %1325 = vmatpush.bf16.msrb.mxu3 %v4185_v39 }
 0x165   : > { %v970_v49 = vpack.c.b16 %v959_v42, %v958_v41  ;;  %v896_v52 = vadd.f32 %v4589_v38, %v876_v45  ;;  %v839_v41 = vpop.f32.mrf.mxu1  ;;  %v859_v42 = vpop.f32.mrf.mxu3 }
 0x167   : > { %v4629_v43 = vrot.slane %v970_v49, 7  ;;  %v912_v59 = vmax.f32 %v896_v52, 0.0  ;;  %v4184_v49 = vld [vmem:[%s5719_s4 + $0x40] sm:$0xff]  ;;  %v840_v52 = vadd.f32 %v839_v41, %v4613_v10 }
 0x168   : > { %v800_v55 = vpop.f32.mrf.mxu0  ;;  %1326 = vmatpush.bf16.msrb.mxu3 %v4184_v49 }
 0x169   : > { %v850_v53 = vadd.f32 %v849_v50, %v800_v55  ;;  %v4634_v1 = vsel %vm471_vm0, 0, %v4629_v43  ;;  %v1044_v58 = vshll.u32 %v4629_v43, 16  ;;  %v928_v6 = vpack.c.bf16 %v912_v59, %v912_v59 }
 0x16a   : > { %v1040_v56 = vshll.u32 %v4634_v1, 16  ;;  %v1038_v60 = vshrl.u32 %v4634_v1, 16  ;;  %v873_v59 = vmul.f32 %v4583_v40, %v840_v52 }
 0x16b   : > { %v877_v2 = vmul.f32 %v4583_v40, %v850_v53  ;;  %v1046_v4 = vrot.slane %v1044_v58, 1  ;;  %v960_v5 = vunpack.c.l.b16 %v928_v6  ;;  %v838_v53 = vadd.f32 %v837_v21, %v4607_v0 }
 0x16c   : > { %v1042_v61 = vrot.slane %v1040_v56, 1  ;;  %v893_v6 = vadd.f32 %v4589_v38, %v873_v59 }
 0x16d   : > { %v897_v57 = vadd.f32 %v4589_v38, %v877_v2 }
 0x16e   : > { %v1043_v62 = vor.u32 %v1042_v61, %v1038_v60  ;;  %v872_v60 = vmul.f32 %v4583_v40, %v838_v53  ;;  %v854_v61 = vpop.f32.mrf.mxu2 }
 0x16f   : > { %v913_v9 = vmax.f32 %v897_v57, 0.0 }
 0x170   : > { %v803_v8 = vpop.f32.mrf.mxu0  ;;  %v1047_v12 = vsel %vm489_vm1, %v1043_v62, %v1046_v4 }
 0x171   : > { %v929_v13 = vpack.c.bf16 %v913_v9, %v913_v9  ;;  %1086 = vrot.lane.b32.xlu0 %v1047_v12, %s4287_s19  ;;  %v892_v12 = vadd.f32 %v4589_v38, %v872_v60 }
 0x173   : > { %v961_v14 = vunpack.c.l.b16 %v929_v13  ;;  %v853_v13 = vadd.f32 %v852_v37, %v803_v8 }
 0x175   : > { %v971_v16 = vpack.c.b16 %v961_v14, %v960_v5 }
 0x177   : > { %v4643_v17 = vrot.slane %v971_v16, 7 }
 0x178   : > { %v805_v11 = vpop.f32.mrf.mxu0 }
 0x179   : > { %v4647_v18 = vsel %vm471_vm0, 0, %v4643_v17  ;;  %v1054_v46 = vshll.u32 %v4643_v17, 16  ;;  %v855_v10 = vadd.f32 %v854_v61, %v805_v11 }
 0x17a   : > { %v1050_v20 = vshll.u32 %v4647_v18, 16  ;;  %v1048_v23 = vshrl.u32 %v4647_v18, 16 }
 0x17b   : > { %v1056_v27 = vrot.slane %v1054_v46, 1  ;;  %v879_v46 = vmul.f32 %v4583_v40, %v855_v10 }
 0x17c   : > { %v1052_v24 = vrot.slane %v1050_v20, 1  ;;  %v909_v20 = vmax.f32 %v893_v6, 0.0 }
 0x17e   : > { %v1053_v26 = vor.u32 %v1052_v24, %v1048_v23  ;;  %v878_v23 = vmul.f32 %v4583_v40, %v853_v13 }
 0x180   : > { %v808_v28 = vpop.f32.mrf.mxu0  ;;  %v1057_v31 = vsel %vm489_vm1, %v1053_v26, %v1056_v27  ;;  %v899_v26 = vadd.f32 %v4589_v38, %v879_v46 }
 0x181   : > { %v858_v33 = vadd.f32 %v857_v22, %v808_v28  ;;  %1088 = vrot.lane.b32.xlu1 %v1057_v31, %s4287_s19  ;;  %v908_v22 = vmax.f32 %v892_v12, 0.0 }
 0x183   : > { %v880_v36 = vmul.f32 %v4583_v40, %v858_v33  ;;  %v924_v32 = vpack.c.bf16 %v908_v22, %v908_v22  ;;  %v898_v33 = vadd.f32 %v4589_v38, %v878_v23 }
 0x185   : > { %v900_v45 = vadd.f32 %v4589_v38, %v880_v36  ;;  %v956_v52 = vunpack.c.l.b16 %v924_v32 }
 0x187   : > { %v916_v56 = vmax.f32 %v900_v45, 0.0  ;;  %v915_v45 = vmax.f32 %v899_v26, 0.0 }
 0x188   : > { %v810_v50 = vpop.f32.mrf.mxu0 }
 0x189   : > { %v860_v55 = vadd.f32 %v859_v42, %v810_v50  ;;  %v932_v57 = vpack.c.bf16 %v916_v56, %v916_v56 }
 0x18b   : > { %v881_v58 = vmul.f32 %v4583_v40, %v860_v55  ;;  %v964_v5 = vunpack.c.l.b16 %v932_v57  ;;  %v914_v55 = vmax.f32 %v898_v33, 0.0 }
 0x18d   : > { %v901_v2 = vadd.f32 %v4589_v38, %v881_v58 }
 0x18f   : > { %v917_v62 = vmax.f32 %v901_v2, 0.0  ;;  %v931_v2 = vpack.c.bf16 %v915_v45, %v915_v45 }
 0x190   : > { %v822_v4 = vpop.f32.mrf.mxu0 }
 0x191   : > { %v933_v9 = vpack.c.bf16 %v917_v62, %v917_v62  ;;  %v823_v0 = vadd.f32 %v822_v4, %v4574_v15  ;;  %v925_v15 = vpack.c.bf16 %v909_v20, %v909_v20  ;;  %v963_v4 = vunpack.c.l.b16 %v931_v2 }
 0x192   : > { %v1109_v2 = vrot.slane %v4611_v30, 1  ;;  %v4178_v30 = vld [vmem:[%s5719_s4 + $0x10] sm:$0xff] }
 0x193   : > { %v965_v14 = vunpack.c.l.b16 %v933_v9  ;;  %v866_v16 = vmul.f32 %v4583_v40, %v823_v0  ;;  %v957_v42 = vunpack.c.l.b16 %v925_v15 }
 0x195   : > { %v973_v21 = vpack.c.b16 %v965_v14, %v964_v5  ;;  %v886_v11 = vadd.f32 %v4589_v38, %v866_v16  ;;  %v969_v59 = vpack.c.b16 %v957_v42, %v956_v52  ;;  %v1106_v42 = vrot.slane %v4595_v47, 1 }
 0x197   : > { %v4680_v24 = vrot.slane %v973_v21, 7  ;;  %v902_v36 = vmax.f32 %v886_v11, 0.0  ;;  %v4697_v62 = vrot.slane %v969_v59, 7  ;;  %v4183_v11 = vld [vmem:[%s5719_s4 + $0x38] sm:$0xff]  ;;  %v1108_v59 = vrot.slane %v4617_v19, 1 }
 0x198   : > { %v824_v25 = vpop.f32.mrf.mxu0  ;;  %1270 = vmatpush.bf16.msrb.mxu2 %v4183_v11 }
 0x199   : > { %v825_v8 = vadd.f32 %v824_v25, %v4578_v3  ;;  %v4687_v27 = vsel %vm471_vm0, 0, %v4680_v24  ;;  %v1074_v31 = vshll.u32 %v4680_v24, 16  ;;  %v918_v53 = vpack.c.bf16 %v902_v36, %v902_v36 }
 0x19a   : > { %v1070_v28 = vshll.u32 %v4687_v27, 16  ;;  %v1068_v39 = vshrl.u32 %v4687_v27, 16  ;;  %v4704_v13 = vsel %vm471_vm0, 0, %v4697_v62  ;;  %v1034_v32 = vshll.u32 %v4697_v62, 16 }
 0x19b   : > { %v867_v37 = vmul.f32 %v4583_v40, %v825_v8  ;;  %v1076_v50 = vrot.slane %v1074_v31, 1  ;;  %v930_v40 = vpack.c.bf16 %v914_v55, %v914_v55  ;;  %v950_v61 = vunpack.c.l.b16 %v918_v53  ;;  %v4182_v55 = vld [vmem:[%s5719_s4 + $0x30] sm:$0xff] }
 0x19c   : > { %v1072_v41 = vrot.slane %v1070_v28, 1  ;;  %v1030_v22 = vshll.u32 %v4704_v13, 16  ;;  %v1028_v31 = vshrl.u32 %v4704_v13, 16  ;;  %1271 = vmatpush.bf16.msrb.mxu2 %v4182_v55 }
 0x19d   : > { %v887_v3 = vadd.f32 %v4589_v38, %v867_v37  ;;  %v962_v6 = vunpack.c.l.b16 %v930_v40  ;;  %v1036_v37 = vrot.slane %v1034_v32, 1  ;;  %v4180_v40 = vld [vmem:[%s5719_s4 + $0x20] sm:$0xff] }
 0x19e   : > { %v1073_v49 = vor.u32 %v1072_v41, %v1068_v39  ;;  %v1032_v8 = vrot.slane %v1030_v22, 1  ;;  %v1105_v41 = vrot.slane %v4600_v51, 1 }
 0x19f   : > { %v903_v56 = vmax.f32 %v887_v3, 0.0  ;;  %v972_v9 = vpack.c.b16 %v963_v4, %v962_v6  ;;  %v1111_v4 = vrot.slane %v4704_v13, 1 }
 0x1a0   : > { %v1077_v58 = vsel %vm489_vm1, %v1073_v49, %v1076_v50  ;;  %v1033_v33 = vor.u32 %v1032_v8, %v1028_v31  ;;  %v1107_v50 = vsel %vm594_vm2, %v1105_v41, %v1106_v42  ;;  %v4840_v41 = vld [vmem:[%s5720_s5] ss:$0 sm:$0xff]  ;;  %v4199_v42 = vld [vmem:[%s5716_s1 + $0x98] sm:$0xff] }
 0x1a1   : > { %v919_v60 = vpack.c.bf16 %v903_v56, %v903_v56  ;;  %1092 = vrot.lane.b32.xlu0 %v1077_v58, %s4287_s19  ;;  %v4711_v23 = vrot.slane %v972_v9, 7  ;;  %v4181_v56 = vld [vmem:[%s5719_s4 + $0x28] sm:$0xff]  ;;  %v4191_v58 = vld [vmem:[%s5722_s7 + $0x18] sm:$0xff]  ;;  %1864 = vmatpush.bf16.msra.mxu3 %v4199_v42 }
 0x1a2   : > { %v1037_v39 = vsel %vm489_vm1, %v1033_v33, %v1036_v37  ;;  %1272 = vmatpush.bf16.msrb.mxu2 %v4181_v56  ;;  %1488 = vmatpush.bf16.msrb.mxu1 %v4191_v58  ;;  %v4189_v9 = vld [vmem:[%s5722_s7 + $0x8] sm:$0xff] }
 0x1a3   : > { %v951_v57 = vunpack.c.l.b16 %v919_v60  ;;  %v4721_v28 = vsel %vm471_vm0, 0, %v4711_v23  ;;  %v1064_v49 = vshll.u32 %v4711_v23, 16  ;;  %v1110_v60 = vsel %vm594_vm2, %v1108_v59, %v1109_v2  ;;  %v4201_v37 = vld [vmem:[%s5716_s1 + $0xa8] sm:$0xff] }
 0x1a4   : > { %v1060_v36 = vshll.u32 %v4721_v28, 16  ;;  %v1058_v3 = vshrl.u32 %v4721_v28, 16  ;;  %v1121_v22 = vrot.slane %v4711_v23, 1 }
 0x1a5   : > { %v966_v38 = vpack.c.b16 %v951_v57, %v950_v61  ;;  %v1066_v53 = vrot.slane %v1064_v49, 1  ;;  %v4179_v61 = vld [vmem:[%s5719_s4 + $0x18] sm:$0xff]  ;;  %v4190_v57 = vld [vmem:[%s5722_s7 + $0x10] sm:$0xff] }
 0x1a6   : > { %v1062_v45 = vrot.slane %v1060_v36, 1  ;;  %1273 = vmatpush.bf16.msrb.mxu2 %v4180_v40  ;;  %1489 = vmatpush.bf16.msrb.mxu1 %v4190_v57 }
 0x1a7   : > { %v974_v10 = vrot.slane %v966_v38, 7  ;;  %v1112_v38 = vrot.slane %v4697_v62, 1  ;;  %v1114_v62 = vrot.slane %v4634_v1, 1 }
 0x1a8   : > { %v1063_v52 = vor.u32 %v1062_v45, %v1058_v3 }
 0x1a9   : > { %v4700_v0 = vsel %vm471_vm0, 0, %v974_v10  ;;  %v1103_v12 = vrot.slane %v974_v10, 1  ;;  %v1004_v16 = vshll.u32 %v974_v10, 16  ;;  %v1113_v6 = vsel %vm594_vm2, %v1111_v4, %v1112_v38  ;;  %v4177_v10 = vld [vmem:[%s5719_s4 + $0x8] sm:$0xff] }
 0x1aa   : > { %v1102_v5 = vrot.slane %v4700_v0, 1  ;;  %v1000_v14 = vshll.u32 %v4700_v0, 16  ;;  %v998_v46 = vshrl.u32 %v4700_v0, 16  ;;  %v1067_v47 = vsel %vm489_vm1, %v1063_v52, %v1066_v53  ;;  %1274 = vmatpush.bf16.msrb.mxu2 %v4179_v61  ;;  %1490 = vmatpush.bf16.msrb.mxu1 %v4189_v9  ;;  %v4853_v52 = vld [vmem:[%s5723_s8] ss:$0 sm:$0xff] }
 0x1ab   : > { %v1006_v15 = vrot.slane %v1004_v16, 1  ;;  %v4188_v16 = vld [vmem:[%s5722_s7] sm:$0xff] }
 0x1ac   : > { %v1104_v20 = vsel %vm594_vm2, %v1102_v5, %v1103_v12  ;;  %v1002_v21 = vrot.slane %v1000_v14, 1  ;;  %v4176_v12 = vld [vmem:[%s5719_s4] sm:$0xff]  ;;  %v1115_v5 = vrot.slane %v4629_v43, 1  ;;  %v1120_v43 = vrot.slane %v4721_v28, 1 }
 0x1ad   : > { %3784 = vmatmul.msk.bf16.vlgmr.msrb.gmra.mxu3 %vm619_vm3, %v1104_v20  ;;  %v1117_v20 = vrot.slane %v4647_v18, 1 }
 0x1ae   : > { %v1003_v25 = vor.u32 %v1002_v21, %v998_v46  ;;  %1275 = vmatpush.bf16.msrb.mxu2 %v4178_v30  ;;  %v1116_v14 = vsel %vm594_vm2, %v1114_v62, %v1115_v5  ;;  %1491 = vmatpush.bf16.msrb.mxu1 %v4188_v16  ;;  %v1118_v46 = vrot.slane %v4643_v17, 1  ;;  %v1123_v17 = vrot.slane %v4687_v27, 1 }
 0x1b0   : > { %v1007_v26 = vsel %vm489_vm1, %v1003_v25, %v1006_v15  ;;  %v1119_v21 = vsel %vm594_vm2, %v1117_v20, %v1118_v46 }
 0x1b1   : > { %1078 = vrot.lane.b32.xlu2 %v1007_v26, %s4287_s19  ;;  %3808 = vmatmul.msk.bf16.vlgmr.msrb.gmra.mxu1 %vm619_vm3, %v4385_v29  ;;  %v1122_v29 = vsel %vm594_vm2, %v1120_v43, %v1121_v22 }
 0x1b2   : > { %1276 = vmatpush.bf16.msrb.mxu2 %v4177_v10  ;;  %v4198_v10 = vld [vmem:[%s5716_s1 + $0x90] sm:$0xff] }
 0x1b3   : > { %v1081_v15 = vpop.permute.xlu0 %1080  ;;  %1865 = vmatpush.bf16.msra.mxu3 %v4198_v10 }
 0x1b4   : > { %v1130_v23 = vsel %vm619_vm3, %v4600_v51, %v1081_v15 }
 0x1b6   : > { %1277 = vmatpush.bf16.msrb.mxu2 %v4176_v12 }
 0x1b9   : > { %1084 = vrot.lane.b32.xlu2 %v1037_v39, %s4287_s19 }
 0x1bd   : > { %3785 = vmatmul.msk.bf16.gmra.mxu3 %vm619_vm3, %v1107_v50  ;;  %v4848_v50 = vld [vmem:[%s5721_s6] ss:$0 sm:$0xff] }
 0x1c1   : > { %1090 = vrot.lane.b32.xlu2 %v1067_v47, %s4287_s19  ;;  %3809 = vmatmul.msk.bf16.gmra.mxu1 %vm619_vm3, %v4390_v34  ;;  %v1124_v34 = vrot.slane %v4680_v24, 1 }
 0x1c3   : > { %v1125_v26 = vsel %vm594_vm2, %v1123_v17, %v1124_v34 }
 0x1cd   : > { %3786 = vmatmul.msk.bf16.gmra.mxu3 %vm619_vm3, %v1110_v60 }
 0x1d1   : > { %3810 = vmatmul.msk.bf16.gmra.mxu1 %vm619_vm3, %v4392_v35 }
 0x1dd   : > { %3787 = vmatmul.msk.bf16.gmra.mxu3 %vm619_vm3, %v1113_v6 }
 0x1e1   : > { %3811 = vmatmul.msk.bf16.gmra.mxu1 %vm619_vm3, %v4403_v44 }
 0x1e3   : > { %v1087_v8 = vpop.permute.xlu0 %1086 }
 0x1e4   : > { %v1139_v44 = vsel %vm619_vm3, %v4634_v1, %v1087_v8 }
 0x1ed   : > { %3788 = vmatmul.msk.bf16.gmra.mxu3 %vm619_vm3, %v1116_v14 }
 0x1f1   : > { %3812 = vmatmul.msk.bf16.gmra.mxu1 %vm619_vm3, %v4410_v48 }
 0x1fd   : > { %3789 = vmatmul.msk.bf16.gmra.mxu3 %vm619_vm3, %v1119_v21 }
 0x201   : > { %3813 = vmatmul.msk.bf16.gmra.mxu1 %vm619_vm3, %v4481_v54 }
 0x20b   : > { %v1079_v11 = vpop.permute.xlu2 %1078 }
 0x20c   : > { %v1127_v25 = vsel %vm619_vm3, %v4700_v0, %v1079_v11  ;;  %v1083_v0 = vpop.permute.xlu1 %1082 }
 0x20d   : > { %1278 = vmatmul.bf16.vlgmr.msrb.gmra.mxu2 %v1127_v25  ;;  %3790 = vmatmul.msk.bf16.gmra.mxu3 %vm619_vm3, %v1122_v29  ;;  %v1133_v35 = vsel %vm619_vm3, %v4617_v19, %v1083_v0 }
 0x211   : > { %3814 = vmatmul.msk.bf16.gmra.mxu1 %vm619_vm3, %v4441_v7 }
 0x213   : > { %v1085_v24 = vpop.permute.xlu2 %1084  ;;  %v1093_v1 = vpop.permute.xlu0 %1092 }
 0x214   : > { %v1136_v51 = vsel %vm619_vm3, %v4704_v13, %v1085_v24  ;;  %v1089_v19 = vpop.permute.xlu1 %1088  ;;  %v1148_v7 = vsel %vm619_vm3, %v4687_v27, %v1093_v1  ;;  %v4200_v27 = vld [vmem:[%s5716_s1 + $0xa0] sm:$0xff] }
 0x215   : > { %v1142_v48 = vsel %vm619_vm3, %v4647_v18, %v1089_v19  ;;  %v4203_v18 = vld [vmem:[%s5716_s1 + $0xb8] sm:$0xff] }
 0x216   : > { %1917 = vmatpush.bf16.msra.mxu0 %v4203_v18 }
 0x21b   : > { %v1091_v13 = vpop.permute.xlu2 %1090 }
 0x21c   : > { %v1145_v54 = vsel %vm619_vm3, %v4721_v28, %v1091_v13 }
 0x21d   : > { %1283 = vmatmul.bf16.gmra.mxu2 %v1130_v23  ;;  %3791 = vmatmul.msk.bf16.gmra.mxu3 %vm619_vm3, %v1125_v26 }
 0x221   : > { %3815 = vmatmul.msk.bf16.gmra.mxu1 %vm619_vm3, %v4490_v63  ;;  %v4202_v63 = vld [vmem:[%s5716_s1 + $0xb0] sm:$0xff] }
 0x222   : > { %1918 = vmatpush.bf16.msra.mxu0 %v4202_v63 }
 0x226   : > { %1919 = vmatpush.bf16.msra.mxu0 %v4201_v37 }
 0x22a   : > { %1920 = vmatpush.bf16.msra.mxu0 %v4200_v27 }
 0x22d   : > { %1288 = vmatmul.bf16.gmra.mxu2 %v1133_v35 }
 0x22e   : > { %v1493_v32 = vpop.f32.mrf.mxu1 }
 0x22f   : > { %v1494_v56 = vadd.f32 %v4853_v52, %v1493_v32  ;;  %v4197_v32 = vld [vmem:[%s5716_s1 + $0x88] sm:$0xff] }
 0x230   : > { %v1328_v31 = vpop.f32.mrf.mxu3  ;;  %1866 = vmatpush.bf16.msra.mxu3 %v4197_v32 }
 0x236   : > { %v1495_v36 = vpop.f32.mrf.mxu1 }
 0x237   : > { %v1496_v38 = vadd.f32 %v4853_v52, %v1495_v36 }
 0x238   : > { %v1330_v33 = vpop.f32.mrf.mxu3 }
 0x23d   : > { %1293 = vmatmul.bf16.gmra.mxu2 %v1136_v51 }
 0x23e   : > { %v1498_v39 = vpop.f32.mrf.mxu1 }
 0x23f   : > { %v1499_v11 = vadd.f32 %v4853_v52, %v1498_v39 }
 0x240   : > { %v1333_v28 = vpop.f32.mrf.mxu3 }
 0x246   : > { %v1500_v53 = vpop.f32.mrf.mxu1 }
 0x248   : > { %v1335_v45 = vpop.f32.mrf.mxu3 }
 0x24d   : > { %1298 = vmatmul.bf16.gmra.mxu2 %v1139_v44 }
 0x24e   : > { %v1503_v30 = vpop.f32.mrf.mxu1 }
 0x250   : > { %v1338_v60 = vpop.f32.mrf.mxu3 }
 0x256   : > { %v1505_v17 = vpop.f32.mrf.mxu1 }
 0x258   : > { %v1340_v20 = vpop.f32.mrf.mxu3 }
 0x25d   : > { %1303 = vmatmul.bf16.gmra.mxu2 %v1142_v48 }
 0x25e   : > { %v1508_v63 = vpop.f32.mrf.mxu1 }
 0x260   : > { %v1343_v8 = vpop.f32.mrf.mxu3 }
 0x26d   : > { %1308 = vmatmul.bf16.gmra.mxu2 %v1145_v54  ;;  %v1501_v54 = vadd.f32 %v4853_v52, %v1500_v53  ;;  %v4196_v53 = vld [vmem:[%s5716_s1 + $0x80] sm:$0xff] }
 0x26e   : > { %1867 = vmatpush.bf16.msra.mxu3 %v4196_v53 }
 0x27d   : > { %1313 = vmatmul.bf16.gmra.mxu2 %v1148_v7 }
 0x290   : > { %v1279_v3 = vpop.f32.mrf.mxu2 }
 0x291   : > { %v1329_v49 = vadd.f32 %v1328_v31, %v1279_v3 }
 0x293   : > { %v1372_v55 = vmul.f32 %v4840_v41, %v1329_v49  ;;  %v1504_v49 = vadd.f32 %v4853_v52, %v1503_v30 }
 0x295   : > { %v1392_v47 = vadd.f32 %v4848_v50, %v1372_v55 }
 0x297   : > { %v1408_v58 = vmax.f32 %v1392_v47, 0.0  ;;  %v1345_v47 = vpop.f32.mrf.mxu3 }
 0x298   : > { %v1281_v59 = vpop.f32.mrf.mxu2 }
 0x299   : > { %v1331_v2 = vadd.f32 %v1330_v33, %v1281_v59  ;;  %v1533_v40 = vadd.f32 %v1494_v56, %v1408_v58 }
 0x29b   : > { %v1373_v61 = vmul.f32 %v4840_v41, %v1331_v2  ;;  %v4860_v4 = vmax.f32 %v1533_v40, 0.0 }
 0x29d   : > { %v1393_v57 = vadd.f32 %v4848_v50, %v1373_v61  ;;  %v1565_v5 = vpack.c.bf16 %v4860_v4, %v4860_v4  ;;  %v1510_v61 = vpop.f32.mrf.mxu1 }
 0x29f   : > { %v1409_v6 = vmax.f32 %v1393_v57, 0.0  ;;  %v1597_v43 = vunpack.c.l.b16 %v1565_v5 }
 0x2a0   : > { %v1284_v9 = vpop.f32.mrf.mxu2 }
 0x2a1   : > { %v1534_v12 = vadd.f32 %v1496_v38, %v1409_v6  ;;  %v1334_v62 = vadd.f32 %v1333_v28, %v1284_v9 }
 0x2a3   : > { %v4868_v14 = vmax.f32 %v1534_v12, 0.0  ;;  %v1374_v16 = vmul.f32 %v4840_v41, %v1334_v62  ;;  %v1506_v62 = vadd.f32 %v4853_v52, %v1505_v17 }
 0x2a5   : > { %v1566_v46 = vpack.c.bf16 %v4868_v14, %v4868_v14  ;;  %v1394_v21 = vadd.f32 %v4848_v50, %v1374_v16  ;;  %v1513_v17 = vpop.f32.mrf.mxu1 }
 0x2a7   : > { %v1598_v22 = vunpack.c.l.b16 %v1566_v46  ;;  %v1410_v25 = vmax.f32 %v1394_v21, 0.0 }
 0x2a8   : > { %v1286_v29 = vpop.f32.mrf.mxu2 }
 0x2a9   : > { %v1613_v34 = vpack.c.b16 %v1598_v22, %v1597_v43  ;;  %v1336_v15 = vadd.f32 %v1335_v45, %v1286_v29  ;;  %v1535_v26 = vadd.f32 %v1499_v11, %v1410_v25  ;;  %v1348_v22 = vpop.f32.mrf.mxu3 }
 0x2ab   : > { %v1621_v23 = vrot.slane %v1613_v34, 6  ;;  %v1375_v0 = vmul.f32 %v4840_v41, %v1336_v15  ;;  %v4882_v13 = vmax.f32 %v1535_v26, 0.0 }
 0x2ad   : > { %v1395_v35 = vadd.f32 %v4848_v50, %v1375_v0  ;;  %v4878_v24 = vsel %vm1629_vm4, 0, %v1621_v23  ;;  %v1696_v51 = vrot.slane %v1621_v23, 2  ;;  %v1655_v48 = vrot.slane %v1621_v23, 1 }
 0x2ae   : > { %v1695_v44 = vrot.slane %v4878_v24, 2  ;;  %v1654_v19 = vrot.slane %v4878_v24, 1  ;;  %v1567_v28 = vpack.c.bf16 %v4882_v13, %v4882_v13  ;;  %v1509_v0 = vadd.f32 %v4853_v52, %v1508_v63 }
 0x2af   : > { %v1411_v31 = vmax.f32 %v1395_v35, 0.0 }
 0x2b0   : > { %v1289_v1 = vpop.f32.mrf.mxu2  ;;  %v1697_v33 = vsel %vm1694_vm5, %v1695_v44, %v1696_v51  ;;  %v1656_v7 = vsel %vm594_vm2, %v1654_v19, %v1655_v48  ;;  %v1599_v45 = vunpack.c.l.b16 %v1567_v28  ;;  %v1515_v28 = vpop.f32.mrf.mxu1 }
 0x2b1   : > { %v1536_v36 = vadd.f32 %v1501_v54, %v1411_v31  ;;  %v1339_v18 = vadd.f32 %v1338_v60, %v1289_v1  ;;  %3888 = vmatmul.msk.bf16.vlgmr.msra.gmra.mxu0 %vm619_vm3, %v1697_v33  ;;  %1678 = vrot.lane.b32.xlu1 %v1656_v7, %s4287_s19  ;;  %v4195_v31 = vld [vmem:[%s5716_s1 + $0x78] sm:$0xff]  ;;  %v1350_v32 = vpop.f32.mrf.mxu3 }
 0x2b2   : > { %1868 = vmatpush.bf16.msra.mxu3 %v4195_v31 }
 0x2b3   : > { %v4894_v37 = vmax.f32 %v1536_v36, 0.0  ;;  %v1376_v39 = vmul.f32 %v4840_v41, %v1339_v18 }
 0x2b5   : > { %v1568_v27 = vpack.c.bf16 %v4894_v37, %v4894_v37  ;;  %v1396_v42 = vadd.f32 %v4848_v50, %v1376_v39 }
 0x2b7   : > { %v1600_v3 = vunpack.c.l.b16 %v1568_v27  ;;  %v1412_v55 = vmax.f32 %v1396_v42, 0.0  ;;  %v1511_v27 = vadd.f32 %v4853_v52, %v1510_v61 }
 0x2b8   : > { %v1291_v56 = vpop.f32.mrf.mxu2 }
 0x2b9   : > { %v1341_v58 = vadd.f32 %v1340_v20, %v1291_v56  ;;  %v1614_v59 = vpack.c.b16 %v1600_v3, %v1599_v45  ;;  %v1537_v2 = vadd.f32 %v1504_v49, %v1412_v55 }
 0x2bb   : > { %v1377_v60 = vmul.f32 %v4840_v41, %v1341_v58  ;;  %v1622_v40 = vrot.slane %v1614_v59, 6  ;;  %v4911_v12 = vmax.f32 %v1537_v2, 0.0 }
 0x2bd   : > { %v1397_v57 = vadd.f32 %v4848_v50, %v1377_v60  ;;  %v4907_v38 = vsel %vm1629_vm4, 0, %v1622_v40  ;;  %v1699_v30 = vrot.slane %v1622_v40, 2  ;;  %v1658_v9 = vrot.slane %v1622_v40, 1  ;;  %v1353_v60 = vpop.f32.mrf.mxu3 }
 0x2be   : > { %v1698_v6 = vrot.slane %v4907_v38, 2  ;;  %v1657_v10 = vrot.slane %v4907_v38, 1  ;;  %v1569_v11 = vpack.c.bf16 %v4911_v12, %v4911_v12 }
 0x2bf   : > { %v1413_v5 = vmax.f32 %v1397_v57, 0.0 }
 0x2c0   : > { %v1294_v16 = vpop.f32.mrf.mxu2  ;;  %v1700_v20 = vsel %vm1694_vm5, %v1698_v6, %v1699_v30  ;;  %v1659_v46 = vsel %vm594_vm2, %v1657_v10, %v1658_v9  ;;  %v1601_v23 = vunpack.c.l.b16 %v1569_v11  ;;  %v1514_v30 = vadd.f32 %v4853_v52, %v1513_v17  ;;  %v1518_v10 = vpop.f32.mrf.mxu1 }
 0x2c1   : > { %v1538_v21 = vadd.f32 %v1506_v62, %v1413_v5  ;;  %v1344_v43 = vadd.f32 %v1343_v8, %v1294_v16  ;;  %3889 = vmatmul.msk.bf16.gmra.mxu0 %vm619_vm3, %v1700_v20  ;;  %1680 = vrot.lane.b32.xlu2 %v1659_v46, %s4287_s19  ;;  %v4194_v46 = vld [vmem:[%s5716_s1 + $0x70] sm:$0xff] }
 0x2c2   : > { %1869 = vmatpush.bf16.msra.mxu3 %v4194_v46 }
 0x2c3   : > { %v4920_v25 = vmax.f32 %v1538_v21, 0.0  ;;  %v1378_v29 = vmul.f32 %v4840_v41, %v1344_v43  ;;  %v1516_v43 = vadd.f32 %v4853_v52, %v1515_v28 }
 0x2c5   : > { %v1570_v34 = vpack.c.bf16 %v4920_v25, %v4920_v25  ;;  %v1398_v15 = vadd.f32 %v4848_v50, %v1378_v29 }
 0x2c7   : > { %v1602_v26 = vunpack.c.l.b16 %v1570_v34  ;;  %v1414_v35 = vmax.f32 %v1398_v15, 0.0 }
 0x2c8   : > { %v1296_v51 = vpop.f32.mrf.mxu2 }
 0x2c9   : > { %v1346_v8 = vadd.f32 %v1345_v47, %v1296_v51  ;;  %v1615_v44 = vpack.c.b16 %v1602_v26, %v1601_v23  ;;  %v1539_v19 = vadd.f32 %v1509_v0, %v1414_v35  ;;  %v1355_v26 = vpop.f32.mrf.mxu3 }
 0x2cb   : > { %v1379_v48 = vmul.f32 %v4840_v41, %v1346_v8  ;;  %v1623_v54 = vrot.slane %v1615_v44, 6  ;;  %v4937_v39 = vmax.f32 %v1539_v19, 0.0  ;;  %v1520_v19 = vpop.f32.mrf.mxu1 }
 0x2cd   : > { %v1399_v1 = vadd.f32 %v4848_v50, %v1379_v48  ;;  %v4933_v33 = vsel %vm1629_vm4, 0, %v1623_v54  ;;  %v1702_v7 = vrot.slane %v1623_v54, 2  ;;  %v1661_v63 = vrot.slane %v1623_v54, 1 }
 0x2ce   : > { %v1701_v36 = vrot.slane %v4933_v33, 2  ;;  %v1660_v18 = vrot.slane %v4933_v33, 1  ;;  %v1571_v47 = vpack.c.bf16 %v4937_v39, %v4937_v39 }
 0x2cf   : > { %v1415_v42 = vmax.f32 %v1399_v1, 0.0 }
 0x2d0   : > { %v1299_v45 = vpop.f32.mrf.mxu2  ;;  %v1703_v3 = vsel %vm1694_vm5, %v1701_v36, %v1702_v7  ;;  %v1662_v49 = vsel %vm594_vm2, %v1660_v18, %v1661_v63  ;;  %v1603_v40 = vunpack.c.l.b16 %v1571_v47  ;;  %v1519_v63 = vadd.f32 %v4853_v52, %v1518_v10 }
 0x2d1   : > { %v1540_v55 = vadd.f32 %v1511_v27, %v1415_v42  ;;  %v1349_v53 = vadd.f32 %v1348_v22, %v1299_v45  ;;  %3890 = vmatmul.msk.bf16.gmra.mxu0 %vm619_vm3, %v1703_v3  ;;  %1682 = vrot.lane.b32.xlu0 %v1662_v49, %s4287_s19  ;;  %v1358_v45 = vpop.f32.mrf.mxu3 }
 0x2d3   : > { %v4946_v56 = vmax.f32 %v1540_v55, 0.0  ;;  %v1380_v58 = vmul.f32 %v4840_v41, %v1349_v53  ;;  %v4193_v53 = vld [vmem:[%s5716_s1 + $0x68] sm:$0xff]  ;;  %v1523_v47 = vpop.f32.mrf.mxu1 }
 0x2d4   : > { %1870 = vmatpush.bf16.msra.mxu3 %v4193_v53 }
 0x2d5   : > { %v1572_v59 = vpack.c.bf16 %v4946_v56, %v4946_v56  ;;  %v1400_v2 = vadd.f32 %v4848_v50, %v1380_v58 }
 0x2d7   : > { %v1604_v61 = vunpack.c.l.b16 %v1572_v59  ;;  %v1416_v57 = vmax.f32 %v1400_v2, 0.0  ;;  %v1521_v59 = vadd.f32 %v4853_v52, %v1520_v19 }
 0x2d8   : > { %v1301_v6 = vpop.f32.mrf.mxu2 }
 0x2d9   : > { %v1351_v9 = vadd.f32 %v1350_v32, %v1301_v6  ;;  %v1616_v62 = vpack.c.b16 %v1604_v61, %v1603_v40  ;;  %v1541_v5 = vadd.f32 %v1514_v30, %v1416_v57 }
 0x2db   : > { %v1381_v16 = vmul.f32 %v4840_v41, %v1351_v9  ;;  %v1624_v20 = vrot.slane %v1616_v62, 6  ;;  %v4964_v15 = vmax.f32 %v1541_v5, 0.0 }
 0x2dd   : > { %v1401_v21 = vadd.f32 %v4848_v50, %v1381_v16  ;;  %v4960_v22 = vsel %vm1629_vm4, 0, %v1624_v20  ;;  %v1705_v11 = vrot.slane %v1624_v20, 2  ;;  %v1664_v34 = vrot.slane %v1624_v20, 1 }
 0x2de   : > { %v1704_v29 = vrot.slane %v4960_v22, 2  ;;  %v1663_v17 = vrot.slane %v4960_v22, 1  ;;  %v1573_v48 = vpack.c.bf16 %v4964_v15, %v4964_v15 }
 0x2df   : > { %v1417_v23 = vmax.f32 %v1401_v21, 0.0 }
 0x2e0   : > { %v1304_v0 = vpop.f32.mrf.mxu2  ;;  %v1706_v35 = vsel %vm1694_vm5, %v1704_v29, %v1705_v11  ;;  %v1665_v51 = vsel %vm594_vm2, %v1663_v17, %v1664_v34  ;;  %v1605_v7 = vunpack.c.l.b16 %v1573_v48  ;;  %v1525_v17 = vpop.f32.mrf.mxu1 }
 0x2e1   : > { %v1542_v8 = vadd.f32 %v1516_v43, %v1417_v23  ;;  %v1354_v44 = vadd.f32 %v1353_v60, %v1304_v0  ;;  %3891 = vmatmul.msk.bf16.gmra.mxu0 %vm619_vm3, %v1706_v35  ;;  %1684 = vrot.lane.b32.xlu1 %v1665_v51, %s4287_s19  ;;  %v1360_v43 = vpop.f32.mrf.mxu3  ;;  %v1524_v0 = vadd.f32 %v4853_v52, %v1523_v47 }
 0x2e3   : > { %v4972_v54 = vmax.f32 %v1542_v8, 0.0  ;;  %v1382_v31 = vmul.f32 %v4840_v41, %v1354_v44 }
 0x2e5   : > { %v1574_v32 = vpack.c.bf16 %v4972_v54, %v4972_v54  ;;  %v1402_v1 = vadd.f32 %v4848_v50, %v1382_v31  ;;  %v4192_v31 = vld [vmem:[%s5716_s1 + $0x60] sm:$0xff] }
 0x2e6   : > { %1871 = vmatpush.bf16.msra.mxu3 %v4192_v31 }
 0x2e7   : > { %v1606_v36 = vunpack.c.l.b16 %v1574_v32  ;;  %v1418_v18 = vmax.f32 %v1402_v1, 0.0  ;;  %v1526_v1 = vadd.f32 %v4853_v52, %v1525_v17 }
 0x2e8   : > { %v1306_v28 = vpop.f32.mrf.mxu2  ;;  %v1528_v53 = vpop.f32.mrf.mxu1 }
 0x2e9   : > { %v1617_v27 = vpack.c.b16 %v1606_v36, %v1605_v7  ;;  %v1356_v42 = vadd.f32 %v1355_v26, %v1306_v28  ;;  %v1543_v49 = vadd.f32 %v1519_v63, %v1418_v18  ;;  %v1363_v18 = vpop.f32.mrf.mxu3 }
 0x2eb   : > { %v1625_v3 = vrot.slane %v1617_v27, 6  ;;  %v1383_v55 = vmul.f32 %v4840_v41, %v1356_v42  ;;  %v4990_v30 = vmax.f32 %v1543_v49, 0.0 }
 0x2ed   : > { %v1403_v58 = vadd.f32 %v4848_v50, %v1383_v55  ;;  %v4986_v2 = vsel %vm1629_vm4, 0, %v1625_v3  ;;  %v1708_v60 = vrot.slane %v1625_v3, 2  ;;  %v1667_v57 = vrot.slane %v1625_v3, 1 }
 0x2ee   : > { %v1707_v40 = vrot.slane %v4986_v2, 2  ;;  %v1666_v61 = vrot.slane %v4986_v2, 1  ;;  %v1575_v20 = vpack.c.bf16 %v4990_v30, %v4990_v30 }
 0x2ef   : > { %v1419_v6 = vmax.f32 %v1403_v58, 0.0 }
 0x2f0   : > { %v1309_v10 = vpop.f32.mrf.mxu2  ;;  %v1709_v9 = vsel %vm1694_vm5, %v1707_v40, %v1708_v60  ;;  %v1668_v62 = vsel %vm594_vm2, %v1666_v61, %v1667_v57  ;;  %v1607_v34 = vunpack.c.l.b16 %v1575_v20 }
 0x2f1   : > { %v1544_v5 = vadd.f32 %v1521_v59, %v1419_v6  ;;  %v1359_v16 = vadd.f32 %v1358_v45, %v1309_v10  ;;  %3892 = vmatmul.msk.bf16.gmra.mxu0 %vm619_vm3, %v1709_v9  ;;  %1686 = vrot.lane.b32.xlu2 %v1668_v62, %s4287_s19  ;;  %v1529_v62 = vadd.f32 %v4853_v52, %v1528_v53 }
 0x2f3   : > { %v4998_v46 = vmax.f32 %v1544_v5, 0.0  ;;  %v1384_v21 = vmul.f32 %v4840_v41, %v1359_v16  ;;  %v1365_v5 = vpop.f32.mrf.mxu3 }
 0x2f5   : > { %v1576_v11 = vpack.c.bf16 %v4998_v46, %v4998_v46  ;;  %v1404_v29 = vadd.f32 %v4848_v50, %v1384_v21 }
 0x2f7   : > { %v1608_v23 = vunpack.c.l.b16 %v1576_v11  ;;  %v1420_v26 = vmax.f32 %v1404_v29, 0.0 }
 0x2f8   : > { %v1311_v35 = vpop.f32.mrf.mxu2 }
 0x2f9   : > { %v1618_v51 = vpack.c.b16 %v1608_v23, %v1607_v34  ;;  %v1361_v8 = vadd.f32 %v1360_v43, %v1311_v35  ;;  %v1545_v19 = vadd.f32 %v1524_v0, %v1420_v26  ;;  %v1530_v43 = vpop.f32.mrf.mxu1 }
 0x2fa   : > { %v1531_v23 = vadd.f32 %v4853_v52, %v1530_v43  ;;  %v4213_v43 = vld [vmem:[%s5719_s4 + $0xa8] sm:$0xff] }
 0x2fb   : > { %v1626_v44 = vrot.slane %v1618_v51, 6  ;;  %v1385_v48 = vmul.f32 %v4840_v41, %v1361_v8  ;;  %v5016_v42 = vmax.f32 %v1545_v19, 0.0 }
 0x2fd   : > { %v1405_v32 = vadd.f32 %v4848_v50, %v1385_v48  ;;  %v5012_v7 = vsel %vm1629_vm4, 0, %v1626_v44  ;;  %v1711_v36 = vrot.slane %v1626_v44, 2  ;;  %v1670_v27 = vrot.slane %v1626_v44, 1 }
 0x2fe   : > { %v1710_v63 = vrot.slane %v5012_v7, 2  ;;  %v1669_v28 = vrot.slane %v5012_v7, 1  ;;  %v1577_v59 = vpack.c.bf16 %v5016_v42, %v5016_v42 }
 0x2ff   : > { %v1421_v45 = vmax.f32 %v1405_v32, 0.0 }
 0x300   : > { %v1314_v3 = vpop.f32.mrf.mxu2  ;;  %v1712_v49 = vsel %vm1694_vm5, %v1710_v63, %v1711_v36  ;;  %v1671_v55 = vsel %vm594_vm2, %v1669_v28, %v1670_v27  ;;  %v1609_v6 = vunpack.c.l.b16 %v1577_v59 }
 0x301   : > { %v1546_v47 = vadd.f32 %v1526_v1, %v1421_v45  ;;  %v1364_v58 = vadd.f32 %v1363_v18, %v1314_v3  ;;  %3893 = vmatmul.msk.bf16.gmra.mxu0 %vm619_vm3, %v1712_v49  ;;  %1688 = vrot.lane.b32.xlu0 %v1671_v55, %s4287_s19 }
 0x303   : > { %v5024_v60 = vmax.f32 %v1546_v47, 0.0  ;;  %v1386_v40 = vmul.f32 %v4840_v41, %v1364_v58 }
 0x305   : > { %v1578_v61 = vpack.c.bf16 %v5024_v60, %v5024_v60  ;;  %v1406_v57 = vadd.f32 %v4848_v50, %v1386_v40 }
 0x307   : > { %v1610_v10 = vunpack.c.l.b16 %v1578_v61  ;;  %v1422_v9 = vmax.f32 %v1406_v57, 0.0 }
 0x308   : > { %v1316_v16 = vpop.f32.mrf.mxu2 }
 0x309   : > { %v1619_v20 = vpack.c.b16 %v1610_v10, %v1609_v6  ;;  %v1366_v21 = vadd.f32 %v1365_v5, %v1316_v16  ;;  %v1547_v29 = vadd.f32 %v1529_v62, %v1422_v9 }
 0x30b   : > { %v1627_v11 = vrot.slane %v1619_v20, 6  ;;  %v1387_v17 = vmul.f32 %v4840_v41, %v1366_v21  ;;  %v5035_v44 = vmax.f32 %v1547_v29, 0.0  ;;  %v4212_v29 = vld [vmem:[%s5719_s4 + $0xa0] sm:$0xff] }
 0x30d   : > { %v1407_v34 = vadd.f32 %v4848_v50, %v1387_v17  ;;  %v1643_v26 = vsel %vm1629_vm4, 0, %v1627_v11  ;;  %v1714_v0 = vrot.slane %v1627_v11, 2  ;;  %v1673_v8 = vrot.slane %v1627_v11, 1  ;;  %v4211_v17 = vld [vmem:[%s5719_s4 + $0x98] sm:$0xff] }
 0x30e   : > { %v1713_v35 = vrot.slane %v1643_v26, 2  ;;  %v1672_v51 = vrot.slane %v1643_v26, 1  ;;  %v1579_v41 = vpack.c.bf16 %v5035_v44, %v5035_v44  ;;  %2317 = vmatpush.bf16.msra.mxu2 %v4211_v17 }
 0x30f   : > { %v1423_v19 = vmax.f32 %v1407_v34, 0.0  ;;  %v5084_v34 = vld [vmem:[%s5717_s2 + $0x1] ss:$0 sm:$0xff] }
 0x310   : > { %v1715_v48 = vsel %vm1694_vm5, %v1713_v35, %v1714_v0  ;;  %v1674_v31 = vsel %vm594_vm2, %v1672_v51, %v1673_v8  ;;  %v1611_v1 = vunpack.c.l.b16 %v1579_v41  ;;  %v5090_v51 = vld [vmem:[%s5718_s3 + $0x1] ss:$0 sm:$0xff] }
 0x311   : > { %v1548_v32 = vadd.f32 %v1531_v23, %v1423_v19  ;;  %3894 = vmatmul.msk.bf16.gmra.mxu0 %vm619_vm3, %v1715_v48  ;;  %1690 = vrot.lane.b32.xlu1 %v1674_v31, %s4287_s19 }
 0x313   : > { %v5043_v50 = vmax.f32 %v1548_v32, 0.0 }
 0x315   : > { %v1580_v52 = vpack.c.bf16 %v5043_v50, %v5043_v50 }
 0x317   : > { %v1612_v36 = vunpack.c.l.b16 %v1580_v52  ;;  %v4210_v52 = vld [vmem:[%s5719_s4 + $0x90] sm:$0xff] }
 0x318   : > { %2318 = vmatpush.bf16.msra.mxu2 %v4210_v52 }
 0x319   : > { %v1620_v18 = vpack.c.b16 %v1612_v36, %v1611_v1 }
 0x31b   : > { %v1628_v63 = vrot.slane %v1620_v18, 6  ;;  %v1681_v59 = vpop.permute.xlu2 %1680 }
 0x31c   : > { %v1723_v40 = vsel %vm619_vm3, %v4907_v38, %v1681_v59 }
 0x31d   : > { %v1645_v28 = vsel %vm1629_vm4, 0, %v1628_v63  ;;  %v1717_v27 = vrot.slane %v1628_v63, 2  ;;  %v1676_v45 = vrot.slane %v1628_v63, 1 }
 0x31e   : > { %v1716_v3 = vrot.slane %v1645_v28, 2  ;;  %v1675_v49 = vrot.slane %v1645_v28, 1 }
 0x320   : > { %v1718_v55 = vsel %vm1694_vm5, %v1716_v3, %v1717_v27  ;;  %v1677_v53 = vsel %vm594_vm2, %v1675_v49, %v1676_v45 }
 0x321   : > { %3895 = vmatmul.msk.bf16.gmra.mxu0 %vm619_vm3, %v1718_v55  ;;  %1692 = vrot.lane.b32.xlu2 %v1677_v53, %s4287_s19 }
 0x323   : > { %v1679_v47 = vpop.permute.xlu1 %1678 }
 0x324   : > { %v1720_v58 = vsel %vm619_vm3, %v4878_v24, %v1679_v47 }
 0x325   : > { %1872 = vmatmul.bf16.vlgmr.msra.gmra.mxu3 %v1720_v58 }
 0x335   : > { %1877 = vmatmul.bf16.gmra.mxu3 %v1723_v40 }
 0x343   : > { %v1683_v61 = vpop.permute.xlu0 %1682 }
 0x344   : > { %v1726_v57 = vsel %vm619_vm3, %v4933_v33, %v1683_v61  ;;  %v1922_v33 = vpop.f32.mrf.mxu0 }
 0x345   : > { %1882 = vmatmul.bf16.gmra.mxu3 %v1726_v57 }
 0x34b   : > { %v1687_v9 = vpop.permute.xlu2 %1686 }
 0x34c   : > { %v1732_v24 = vsel %vm619_vm3, %v4986_v2, %v1687_v9  ;;  %v1924_v21 = vpop.f32.mrf.mxu0  ;;  %v4215_v2 = vld [vmem:[%s5719_s4 + $0xb8] sm:$0xff] }
 0x34d   : > { %2370 = vmatpush.bf16.msra.mxu1 %v4215_v2 }
 0x353   : > { %v1685_v6 = vpop.permute.xlu1 %1684 }
 0x354   : > { %v1729_v10 = vsel %vm619_vm3, %v4960_v22, %v1685_v6  ;;  %v1927_v11 = vpop.f32.mrf.mxu0 }
 0x355   : > { %1887 = vmatmul.bf16.gmra.mxu3 %v1729_v10 }
 0x35c   : > { %v1929_v23 = vpop.f32.mrf.mxu0 }
 0x364   : > { %v1932_v31 = vpop.f32.mrf.mxu0 }
 0x365   : > { %1892 = vmatmul.bf16.gmra.mxu3 %v1732_v24 }
 0x36c   : > { %v1934_v55 = vpop.f32.mrf.mxu0 }
 0x373   : > { %v1689_v62 = vpop.permute.xlu0 %1688 }
 0x374   : > { %v1735_v38 = vsel %vm619_vm3, %v5012_v7, %v1689_v62  ;;  %v4214_v7 = vld [vmem:[%s5719_s4 + $0xb0] sm:$0xff] }
 0x375   : > { %1897 = vmatmul.bf16.gmra.mxu3 %v1735_v38  ;;  %2371 = vmatpush.bf16.msra.mxu1 %v4214_v7  ;;  %v4209_v38 = vld [vmem:[%s5719_s4 + $0x88] sm:$0xff] }
 0x376   : > { %2319 = vmatpush.bf16.msra.mxu2 %v4209_v38 }
 0x379   : > { %2372 = vmatpush.bf16.msra.mxu1 %v4213_v43 }
 0x37b   : > { %v1693_v20 = vpop.permute.xlu2 %1692 }
 0x37c   : > { %v1741_v22 = vsel %vm619_vm3, %v1645_v28, %v1693_v20  ;;  %v1937_v20 = vpop.f32.mrf.mxu0 }
 0x37d   : > { %2373 = vmatpush.bf16.msra.mxu1 %v4212_v29 }
 0x383   : > { %v1691_v5 = vpop.permute.xlu1 %1690 }
 0x384   : > { %v1738_v16 = vsel %vm619_vm3, %v1643_v26, %v1691_v5 }
 0x385   : > { %1902 = vmatmul.bf16.gmra.mxu3 %v1738_v16 }
 0x395   : > { %1907 = vmatmul.bf16.gmra.mxu3 %v1741_v22 }
 0x3a8   : > { %v1873_v26 = vpop.f32.mrf.mxu3 }
 0x3a9   : > { %v1923_v0 = vadd.f32 %v1922_v33, %v1873_v26 }
 0x3ab   : > { %v1967_v35 = vmul.f32 %v5084_v34, %v1923_v0 }
 0x3ad   : > { %v1988_v8 = vadd.f32 %v5090_v51, %v1967_v35  ;;  %v1939_v35 = vpop.f32.mrf.mxu0 }
 0x3af   : > { %v2004_v32 = vmax.f32 %v1988_v8, 0.0 }
 0x3b0   : > { %v1875_v19 = vpop.f32.mrf.mxu3 }
 0x3b1   : > { %v1925_v48 = vadd.f32 %v1924_v21, %v1875_v19  ;;  %v2020_v36 = vpack.c.bf16 %v2004_v32, %v2004_v32 }
 0x3b3   : > { %v1968_v41 = vmul.f32 %v5084_v34, %v1925_v48  ;;  %v2052_v45 = vunpack.c.l.b16 %v2020_v36 }
 0x3b5   : > { %v1989_v1 = vadd.f32 %v5090_v51, %v1968_v41 }
 0x3b7   : > { %v2005_v18 = vmax.f32 %v1989_v1, 0.0 }
 0x3b8   : > { %v1878_v63 = vpop.f32.mrf.mxu3 }
 0x3b9   : > { %v2021_v28 = vpack.c.bf16 %v2005_v18, %v2005_v18  ;;  %v1928_v27 = vadd.f32 %v1927_v11, %v1878_v63  ;;  %v4208_v18 = vld [vmem:[%s5719_s4 + $0x80] sm:$0xff] }
 0x3ba   : > { %2320 = vmatpush.bf16.msra.mxu2 %v4208_v18 }
 0x3bb   : > { %v2053_v3 = vunpack.c.l.b16 %v2021_v28  ;;  %v1969_v49 = vmul.f32 %v5084_v34, %v1928_v27 }
 0x3bd   : > { %v2068_v53 = vpack.c.b16 %v2053_v3, %v2052_v45  ;;  %v1990_v58 = vadd.f32 %v5090_v51, %v1969_v49 }
 0x3bf   : > { %v2076_v47 = vrot.slane %v2068_v53, 6  ;;  %v2006_v24 = vmax.f32 %v1990_v58, 0.0 }
 0x3c0   : > { %v1880_v59 = vpop.f32.mrf.mxu3 }
 0x3c1   : > { %v1930_v40 = vadd.f32 %v1929_v23, %v1880_v59  ;;  %v5101_v61 = vsel %vm1629_vm4, 0, %v2076_v47  ;;  %v2149_v57 = vrot.slane %v2076_v47, 2  ;;  %v2109_v9 = vrot.slane %v2076_v47, 1  ;;  %v1942_v47 = vpop.f32.mrf.mxu0 }
 0x3c2   : > { %v2148_v6 = vrot.slane %v5101_v61, 2  ;;  %v2108_v10 = vrot.slane %v5101_v61, 1  ;;  %v2022_v21 = vpack.c.bf16 %v2006_v24, %v2006_v24 }
 0x3c3   : > { %v1970_v62 = vmul.f32 %v5084_v34, %v1930_v40 }
 0x3c4   : > { %v2150_v5 = vsel %vm1694_vm5, %v2148_v6, %v2149_v57  ;;  %v2110_v16 = vsel %vm594_vm2, %v2108_v10, %v2109_v9  ;;  %v2054_v11 = vunpack.c.l.b16 %v2022_v21 }
 0x3c5   : > { %v1991_v33 = vadd.f32 %v5090_v51, %v1970_v62  ;;  %3970 = vmatmul.msk.bf16.vlgmr.msra.gmra.mxu1 %vm619_vm3, %v2150_v5  ;;  %2132 = vrot.lane.b32.xlu0 %v2110_v16, %s4287_s19 }
 0x3c7   : > { %v2007_v22 = vmax.f32 %v1991_v33, 0.0 }
 0x3c8   : > { %v1883_v2 = vpop.f32.mrf.mxu3 }
 0x3c9   : > { %v2023_v7 = vpack.c.bf16 %v2007_v22, %v2007_v22  ;;  %v1933_v43 = vadd.f32 %v1932_v31, %v1883_v2  ;;  %v4207_v22 = vld [vmem:[%s5719_s4 + $0x78] sm:$0xff]  ;;  %v1944_v2 = vpop.f32.mrf.mxu0 }
 0x3ca   : > { %2321 = vmatpush.bf16.msra.mxu2 %v4207_v22 }
 0x3cb   : > { %v2055_v29 = vunpack.c.l.b16 %v2023_v7  ;;  %v1971_v17 = vmul.f32 %v5084_v34, %v1933_v43 }
 0x3cd   : > { %v2069_v23 = vpack.c.b16 %v2055_v29, %v2054_v11  ;;  %v1992_v0 = vadd.f32 %v5090_v51, %v1971_v17 }
 0x3cf   : > { %v2077_v26 = vrot.slane %v2069_v23, 6  ;;  %v2008_v1 = vmax.f32 %v1992_v0, 0.0 }
 0x3d0   : > { %v1885_v8 = vpop.f32.mrf.mxu3 }
 0x3d1   : > { %v1935_v19 = vadd.f32 %v1934_v55, %v1885_v8  ;;  %v5117_v48 = vsel %vm1629_vm4, 0, %v2077_v26  ;;  %v2152_v32 = vrot.slane %v2077_v26, 2  ;;  %v2112_v31 = vrot.slane %v2077_v26, 1 }
 0x3d2   : > { %v2151_v41 = vrot.slane %v5117_v48, 2  ;;  %v2111_v52 = vrot.slane %v5117_v48, 1  ;;  %v2024_v45 = vpack.c.bf16 %v2008_v1, %v2008_v1 }
 0x3d3   : > { %v1972_v36 = vmul.f32 %v5084_v34, %v1935_v19 }
 0x3d4   : > { %v2153_v63 = vsel %vm1694_vm5, %v2151_v41, %v2152_v32  ;;  %v2113_v28 = vsel %vm594_vm2, %v2111_v52, %v2112_v31  ;;  %v2056_v58 = vunpack.c.l.b16 %v2024_v45  ;;  %v1947_v41 = vpop.f32.mrf.mxu0 }
 0x3d5   : > { %v1993_v27 = vadd.f32 %v5090_v51, %v1972_v36  ;;  %3971 = vmatmul.msk.bf16.gmra.mxu1 %vm619_vm3, %v2153_v63  ;;  %2134 = vrot.lane.b32.xlu1 %v2113_v28, %s4287_s19 }
 0x3d7   : > { %v2009_v3 = vmax.f32 %v1993_v27, 0.0 }
 0x3d8   : > { %v1888_v49 = vpop.f32.mrf.mxu3 }
 0x3d9   : > { %v2025_v55 = vpack.c.bf16 %v2009_v3, %v2009_v3  ;;  %v1938_v53 = vadd.f32 %v1937_v20, %v1888_v49 }
 0x3db   : > { %v2057_v59 = vunpack.c.l.b16 %v2025_v55  ;;  %v1973_v40 = vmul.f32 %v5084_v34, %v1938_v53  ;;  %v4206_v55 = vld [vmem:[%s5719_s4 + $0x70] sm:$0xff] }
 0x3dc   : > { %2322 = vmatpush.bf16.msra.mxu2 %v4206_v55  ;;  %v4204_v55 = vld [vmem:[%s5719_s4 + $0x60] sm:$0xff] }
 0x3dd   : > { %v2070_v57 = vpack.c.b16 %v2057_v59, %v2056_v58  ;;  %v1994_v10 = vadd.f32 %v5090_v51, %v1973_v40 }
 0x3df   : > { %v2078_v6 = vrot.slane %v2070_v57, 6  ;;  %v2010_v20 = vmax.f32 %v1994_v10, 0.0  ;;  %v1949_v57 = vpop.f32.mrf.mxu0 }
 0x3e0   : > { %v1890_v9 = vpop.f32.mrf.mxu3 }
 0x3e1   : > { %v1940_v24 = vadd.f32 %v1939_v35, %v1890_v9  ;;  %v5133_v62 = vsel %vm1629_vm4, 0, %v2078_v6  ;;  %v2155_v38 = vrot.slane %v2078_v6, 2  ;;  %v2115_v33 = vrot.slane %v2078_v6, 1 }
 0x3e2   : > { %v2154_v5 = vrot.slane %v5133_v62, 2  ;;  %v2114_v16 = vrot.slane %v5133_v62, 1  ;;  %v2026_v29 = vpack.c.bf16 %v2010_v20, %v2010_v20 }
 0x3e3   : > { %v1974_v21 = vmul.f32 %v5084_v34, %v1940_v24 }
 0x3e4   : > { %v2156_v7 = vsel %vm1694_vm5, %v2154_v5, %v2155_v38  ;;  %v2116_v43 = vsel %vm594_vm2, %v2114_v16, %v2115_v33  ;;  %v2058_v35 = vunpack.c.l.b16 %v2026_v29 }
 0x3e5   : > { %v1995_v11 = vadd.f32 %v5090_v51, %v1974_v21  ;;  %3972 = vmatmul.msk.bf16.gmra.mxu1 %vm619_vm3, %v2156_v7  ;;  %2136 = vrot.lane.b32.xlu2 %v2116_v43, %s4287_s19 }
 0x3e7   : > { %v2011_v17 = vmax.f32 %v1995_v11, 0.0  ;;  %v1952_v43 = vpop.f32.mrf.mxu0 }
 0x3e8   : > { %v1893_v23 = vpop.f32.mrf.mxu3 }
 0x3e9   : > { %v2027_v26 = vpack.c.bf16 %v2011_v17, %v2011_v17  ;;  %v1943_v0 = vadd.f32 %v1942_v47, %v1893_v23 }
 0x3eb   : > { %v2059_v8 = vunpack.c.l.b16 %v2027_v26  ;;  %v1975_v19 = vmul.f32 %v5084_v34, %v1943_v0  ;;  %v4205_v0 = vld [vmem:[%s5719_s4 + $0x68] sm:$0xff] }
 0x3ec   : > { %2323 = vmatpush.bf16.msra.mxu2 %v4205_v0 }
 0x3ed   : > { %v2071_v32 = vpack.c.b16 %v2059_v8, %v2058_v35  ;;  %v1996_v31 = vadd.f32 %v5090_v51, %v1975_v19 }
 0x3ef   : > { %v2079_v52 = vrot.slane %v2071_v32, 6  ;;  %v2012_v3 = vmax.f32 %v1996_v31, 0.0 }
 0x3f0   : > { %v1895_v1 = vpop.f32.mrf.mxu3  ;;  %2324 = vmatpush.bf16.msra.mxu2 %v4204_v55 }
 0x3f1   : > { %v1945_v36 = vadd.f32 %v1944_v2, %v1895_v1  ;;  %v5149_v18 = vsel %vm1629_vm4, 0, %v2079_v52  ;;  %v2158_v63 = vrot.slane %v2079_v52, 2  ;;  %v2118_v45 = vrot.slane %v2079_v52, 1 }
 0x3f2   : > { %v2157_v28 = vrot.slane %v5149_v18, 2  ;;  %v2117_v27 = vrot.slane %v5149_v18, 1  ;;  %v2028_v59 = vpack.c.bf16 %v2012_v3, %v2012_v3 }
 0x3f3   : > { %v1976_v49 = vmul.f32 %v5084_v34, %v1945_v36 }
 0x3f4   : > { %v2159_v53 = vsel %vm1694_vm5, %v2157_v28, %v2158_v63  ;;  %v2119_v47 = vsel %vm594_vm2, %v2117_v27, %v2118_v45  ;;  %v2060_v24 = vunpack.c.l.b16 %v2028_v59  ;;  %v1954_v27 = vpop.f32.mrf.mxu0 }
 0x3f5   : > { %v1997_v58 = vadd.f32 %v5090_v51, %v1976_v49  ;;  %3973 = vmatmul.msk.bf16.gmra.mxu1 %vm619_vm3, %v2159_v53  ;;  %2138 = vrot.lane.b32.xlu0 %v2119_v47, %s4287_s19 }
 0x3f7   : > { %v2013_v40 = vmax.f32 %v1997_v58, 0.0 }
 0x3f8   : > { %v1898_v6 = vpop.f32.mrf.mxu3 }
 0x3f9   : > { %v2029_v10 = vpack.c.bf16 %v2013_v40, %v2013_v40  ;;  %v1948_v9 = vadd.f32 %v1947_v41, %v1898_v6 }
 0x3fb   : > { %v2061_v38 = vunpack.c.l.b16 %v2029_v10  ;;  %v1977_v5 = vmul.f32 %v5084_v34, %v1948_v9 }
 0x3fd   : > { %v2072_v16 = vpack.c.b16 %v2061_v38, %v2060_v24  ;;  %v1998_v20 = vadd.f32 %v5090_v51, %v1977_v5 }
 0x3ff   : > { %v2080_v33 = vrot.slane %v2072_v16, 6  ;;  %v2014_v23 = vmax.f32 %v1998_v20, 0.0  ;;  %v1957_v16 = vpop.f32.mrf.mxu0 }
 0x400   : > { %v1900_v21 = vpop.f32.mrf.mxu3 }
 0x401   : > { %v1950_v22 = vadd.f32 %v1949_v57, %v1900_v21  ;;  %v5165_v2 = vsel %vm1629_vm4, 0, %v2080_v33  ;;  %v2161_v7 = vrot.slane %v2080_v33, 2  ;;  %v2121_v17 = vrot.slane %v2080_v33, 1 }
 0x402   : > { %v2160_v11 = vrot.slane %v5165_v2, 2  ;;  %v2120_v29 = vrot.slane %v5165_v2, 1  ;;  %v2030_v32 = vpack.c.bf16 %v2014_v23, %v2014_v23 }
 0x403   : > { %v1978_v26 = vmul.f32 %v5084_v34, %v1950_v22 }
 0x404   : > { %v2162_v35 = vsel %vm1694_vm5, %v2160_v11, %v2161_v7  ;;  %v2122_v8 = vsel %vm594_vm2, %v2120_v29, %v2121_v17  ;;  %v2062_v36 = vunpack.c.l.b16 %v2030_v32 }
 0x405   : > { %v1999_v19 = vadd.f32 %v5090_v51, %v1978_v26  ;;  %3974 = vmatmul.msk.bf16.gmra.mxu1 %vm619_vm3, %v2162_v35  ;;  %2140 = vrot.lane.b32.xlu1 %v2122_v8, %s4287_s19 }
 0x407   : > { %v2015_v41 = vmax.f32 %v1999_v19, 0.0  ;;  %v1959_v0 = vpop.f32.mrf.mxu0 }
 0x408   : > { %v1903_v52 = vpop.f32.mrf.mxu3 }
 0x409   : > { %v2031_v31 = vpack.c.bf16 %v2015_v41, %v2015_v41  ;;  %v1953_v1 = vadd.f32 %v1952_v43, %v1903_v52 }
 0x40b   : > { %v2063_v63 = vunpack.c.l.b16 %v2031_v31  ;;  %v1979_v28 = vmul.f32 %v5084_v34, %v1953_v1 }
 0x40d   : > { %v2073_v45 = vpack.c.b16 %v2063_v63, %v2062_v36  ;;  %v2000_v49 = vadd.f32 %v5090_v51, %v1979_v28 }
 0x40f   : > { %v2081_v3 = vrot.slane %v2073_v45, 6  ;;  %v2016_v10 = vmax.f32 %v2000_v49, 0.0 }
 0x410   : > { %v1905_v53 = vpop.f32.mrf.mxu3 }
 0x411   : > { %v1955_v47 = vadd.f32 %v1954_v27, %v1905_v53  ;;  %v5184_v58 = vsel %vm1629_vm4, 0, %v2081_v3  ;;  %v2164_v59 = vrot.slane %v2081_v3, 2  ;;  %v2124_v6 = vrot.slane %v2081_v3, 1 }
 0x412   : > { %v2163_v40 = vrot.slane %v5184_v58, 2  ;;  %v2123_v57 = vrot.slane %v5184_v58, 1  ;;  %v2032_v33 = vpack.c.bf16 %v2016_v10, %v2016_v10 }
 0x413   : > { %v1980_v9 = vmul.f32 %v5084_v34, %v1955_v47 }
 0x414   : > { %v2165_v24 = vsel %vm1694_vm5, %v2163_v40, %v2164_v59  ;;  %v2125_v38 = vsel %vm594_vm2, %v2123_v57, %v2124_v6  ;;  %v2064_v43 = vunpack.c.l.b16 %v2032_v33 }
 0x415   : > { %v2001_v5 = vadd.f32 %v5090_v51, %v1980_v9  ;;  %3975 = vmatmul.msk.bf16.gmra.mxu1 %vm619_vm3, %v2165_v24  ;;  %2142 = vrot.lane.b32.xlu2 %v2125_v38, %s4287_s19 }
 0x417   : > { %v2017_v20 = vmax.f32 %v2001_v5, 0.0 }
 0x418   : > { %v1908_v21 = vpop.f32.mrf.mxu3 }
 0x419   : > { %v2033_v22 = vpack.c.bf16 %v2017_v20, %v2017_v20  ;;  %v1958_v7 = vadd.f32 %v1957_v16, %v1908_v21 }
 0x41b   : > { %v2065_v11 = vunpack.c.l.b16 %v2033_v22  ;;  %v1981_v29 = vmul.f32 %v5084_v34, %v1958_v7 }
 0x41d   : > { %v2074_v17 = vpack.c.b16 %v2065_v11, %v2064_v43  ;;  %v2002_v26 = vadd.f32 %v5090_v51, %v1981_v29 }
 0x41f   : > { %v2082_v23 = vrot.slane %v2074_v17, 6  ;;  %v2018_v1 = vmax.f32 %v2002_v26, 0.0 }
 0x420   : > { %v1910_v35 = vpop.f32.mrf.mxu3 }
 0x421   : > { %v1960_v8 = vadd.f32 %v1959_v0, %v1910_v35  ;;  %v2097_v19 = vsel %vm1629_vm4, 0, %v2082_v23  ;;  %v2167_v32 = vrot.slane %v2082_v23, 2  ;;  %v2127_v31 = vrot.slane %v2082_v23, 1  ;;  %v4225_v0 = vld [vmem:[%s5716_s1 + $0x108] sm:$0xff]  ;;  %v4224_v35 = vld [vmem:[%s5716_s1 + $0x100] sm:$0xff] }
 0x422   : > { %v2166_v41 = vrot.slane %v2097_v19, 2  ;;  %v2126_v52 = vrot.slane %v2097_v19, 1  ;;  %v2034_v45 = vpack.c.bf16 %v2018_v1, %v2018_v1 }
 0x423   : > { %v1982_v36 = vmul.f32 %v5084_v34, %v1960_v8 }
 0x424   : > { %v2168_v63 = vsel %vm1694_vm5, %v2166_v41, %v2167_v32  ;;  %v2128_v28 = vsel %vm594_vm2, %v2126_v52, %v2127_v31  ;;  %v2066_v55 = vunpack.c.l.b16 %v2034_v45  ;;  %v5242_v52 = vld [vmem:[%s5721_s6 + $0x1] ss:$0 sm:$0xff]  ;;  %v4223_v31 = vld [vmem:[%s5716_s1 + $0xf8] sm:$0xff] }
 0x425   : > { %v2003_v27 = vadd.f32 %v5090_v51, %v1982_v36  ;;  %3976 = vmatmul.msk.bf16.gmra.mxu1 %vm619_vm3, %v2168_v63  ;;  %2144 = vrot.lane.b32.xlu0 %v2128_v28, %s4287_s19 }
 0x426   : > { %2804 = vmatpush.bf16.msrb.mxu3 %v4223_v31 }
 0x427   : > { %v2019_v3 = vmax.f32 %v2003_v27, 0.0 }
 0x429   : > { %v2035_v49 = vpack.c.bf16 %v2019_v3, %v2019_v3 }
 0x42b   : > { %v2067_v53 = vunpack.c.l.b16 %v2035_v49 }
 0x42d   : > { %v2075_v47 = vpack.c.b16 %v2067_v53, %v2066_v55 }
 0x42f   : > { %v2083_v59 = vrot.slane %v2075_v47, 6 }
 0x431   : > { %v2099_v40 = vsel %vm1629_vm4, 0, %v2083_v59  ;;  %v2170_v34 = vrot.slane %v2083_v59, 2  ;;  %v2130_v57 = vrot.slane %v2083_v59, 1 }
 0x432   : > { %v2169_v6 = vrot.slane %v2099_v40, 2  ;;  %v2129_v10 = vrot.slane %v2099_v40, 1 }
 0x434   : > { %v2171_v9 = vsel %vm1694_vm5, %v2169_v6, %v2170_v34  ;;  %v2131_v51 = vsel %vm594_vm2, %v2129_v10, %v2130_v57 }
 0x435   : > { %3977 = vmatmul.msk.bf16.gmra.mxu1 %vm619_vm3, %v2171_v9  ;;  %2146 = vrot.lane.b32.xlu1 %v2131_v51, %s4287_s19 }
 0x437   : > { %v2133_v24 = vpop.permute.xlu0 %2132 }
 0x438   : > { %v2173_v38 = vsel %vm619_vm3, %v5101_v61, %v2133_v24 }
 0x439   : > { %2325 = vmatmul.bf16.vlgmr.msra.gmra.mxu2 %v2173_v38 }
 0x43f   : > { %v2137_v33 = vpop.permute.xlu2 %2136 }
 0x440   : > { %v2179_v20 = vsel %vm619_vm3, %v5133_v62, %v2137_v33 }
 0x442   : > { %v2375_v62 = vpop.f32.mrf.mxu1 }
 0x447   : > { %v2135_v5 = vpop.permute.xlu1 %2134 }
 0x448   : > { %v2176_v16 = vsel %vm619_vm3, %v5117_v48, %v2135_v5 }
 0x449   : > { %2330 = vmatmul.bf16.gmra.mxu2 %v2176_v16 }
 0x44a   : > { %v2377_v17 = vpop.f32.mrf.mxu1 }
 0x452   : > { %v2380_v26 = vpop.f32.mrf.mxu1 }
 0x459   : > { %2335 = vmatmul.bf16.gmra.mxu2 %v2179_v20 }
 0x45a   : > { %v2382_v8 = vpop.f32.mrf.mxu1 }
 0x462   : > { %v2385_v27 = vpop.f32.mrf.mxu1 }
 0x467   : > { %v2139_v21 = vpop.permute.xlu0 %2138 }
 0x468   : > { %v2182_v22 = vsel %vm619_vm3, %v5149_v18, %v2139_v21 }
 0x469   : > { %2340 = vmatmul.bf16.gmra.mxu2 %v2182_v22 }
 0x46a   : > { %v2387_v10 = vpop.f32.mrf.mxu1 }
 0x46f   : > { %v2143_v43 = vpop.permute.xlu2 %2142 }
 0x470   : > { %v2188_v48 = vsel %vm619_vm3, %v5184_v58, %v2143_v43  ;;  %v4226_v58 = vld [vmem:[%s5716_s1 + $0x110] sm:$0xff] }
 0x477   : > { %v2141_v7 = vpop.permute.xlu1 %2140 }
 0x478   : > { %v2185_v61 = vsel %vm619_vm3, %v5165_v2, %v2141_v7  ;;  %v4227_v2 = vld [vmem:[%s5716_s1 + $0x118] sm:$0xff] }
 0x479   : > { %2345 = vmatmul.bf16.gmra.mxu2 %v2185_v61  ;;  %2857 = vmatpush.bf16.msrb.mxu0 %v4227_v2 }
 0x47d   : > { %2858 = vmatpush.bf16.msrb.mxu0 %v4226_v58 }
 0x481   : > { %2859 = vmatpush.bf16.msrb.mxu0 %v4225_v0 }
 0x485   : > { %2860 = vmatpush.bf16.msrb.mxu0 %v4224_v35 }
 0x489   : > { %2350 = vmatmul.bf16.gmra.mxu2 %v2188_v48 }
 0x497   : > { %v2145_v11 = vpop.permute.xlu0 %2144 }
 0x498   : > { %v2191_v29 = vsel %vm619_vm3, %v2097_v19, %v2145_v11  ;;  %v5237_v19 = vld [vmem:[%s5720_s5 + $0x1] ss:$0 sm:$0xff] }
 0x499   : > { %2355 = vmatmul.bf16.gmra.mxu2 %v2191_v29 }
 0x4a7   : > { %v2147_v23 = vpop.permute.xlu1 %2146 }
 0x4a8   : > { %v2194_v18 = vsel %vm619_vm3, %v2099_v40, %v2147_v23 }
 0x4a9   : > { %2360 = vmatmul.bf16.gmra.mxu2 %v2194_v18 }
 0x4bc   : > { %v2326_v32 = vpop.f32.mrf.mxu2 }
 0x4bd   : > { %v2376_v41 = vadd.f32 %v2375_v62, %v2326_v32  ;;  %v4221_v32 = vld [vmem:[%s5716_s1 + $0xe8] sm:$0xff] }
 0x4bf   : > { %v2420_v1 = vmul.f32 %v5237_v19, %v2376_v41 }
 0x4c1   : > { %v2441_v36 = vadd.f32 %v5242_v52, %v2420_v1 }
 0x4c3   : > { %v2457_v63 = vmax.f32 %v2441_v36, 0.0 }
 0x4c4   : > { %v2328_v28 = vpop.f32.mrf.mxu2 }
 0x4c5   : > { %v2473_v45 = vadd.f32 %v2457_v63, %v4860_v4  ;;  %v2378_v3 = vadd.f32 %v2377_v17, %v2328_v28  ;;  %v4222_v4 = vld [vmem:[%s5716_s1 + $0xf0] sm:$0xff]  ;;  %v2390_v17 = vpop.f32.mrf.mxu1 }
 0x4c6   : > { %2805 = vmatpush.bf16.msrb.mxu3 %v4222_v4 }
 0x4c7   : > { %v5250_v49 = vmax.f32 %v2473_v45, 0.0  ;;  %v2421_v55 = vmul.f32 %v5237_v19, %v2378_v3 }
 0x4c9   : > { %v2505_v53 = vpack.c.bf16 %v5250_v49, %v5250_v49  ;;  %v2442_v47 = vadd.f32 %v5242_v52, %v2421_v55 }
 0x4ca   : > { %2806 = vmatpush.bf16.msrb.mxu3 %v4221_v32 }
 0x4cb   : > { %v2537_v59 = vunpack.c.l.b16 %v2505_v53  ;;  %v2458_v40 = vmax.f32 %v2442_v47, 0.0 }
 0x4cc   : > { %v2331_v34 = vpop.f32.mrf.mxu2 }
 0x4cd   : > { %v2474_v57 = vadd.f32 %v2458_v40, %v4868_v14  ;;  %v2381_v6 = vadd.f32 %v2380_v26, %v2331_v34  ;;  %v2553_v9 = vpack.c.b16 %v2537_v59, %v2537_v59  ;;  %v2392_v28 = vpop.f32.mrf.mxu1 }
 0x4cf   : > { %v5260_v51 = vmax.f32 %v2474_v57, 0.0  ;;  %v2422_v24 = vmul.f32 %v5237_v19, %v2381_v6  ;;  %v5267_v14 = vsel %vm2569_vm6, 0, %v2553_v9 }
 0x4d0   : > { %v2635_v61 = vrot.slane %v5267_v14, 4  ;;  %v2594_v43 = vrot.slane %v5267_v14, 2 }
 0x4d1   : > { %v2506_v38 = vpack.c.bf16 %v5260_v51, %v5260_v51  ;;  %v2443_v5 = vadd.f32 %v5242_v52, %v2422_v24 }
 0x4d3   : > { %v2538_v16 = vunpack.c.l.b16 %v2506_v38  ;;  %v2459_v33 = vmax.f32 %v2443_v5, 0.0 }
 0x4d4   : > { %v2333_v20 = vpop.f32.mrf.mxu2 }
 0x4d5   : > { %v2554_v21 = vpack.c.b16 %v2538_v16, %v2538_v16  ;;  %v2475_v22 = vadd.f32 %v2459_v33, %v4882_v13  ;;  %v2383_v7 = vadd.f32 %v2382_v8, %v2333_v20  ;;  %v2395_v33 = vpop.f32.mrf.mxu1 }
 0x4d7   : > { %v5272_v48 = vmax.f32 %v2475_v22, 0.0  ;;  %v2423_v11 = vmul.f32 %v5237_v19, %v2383_v7  ;;  %v2636_v29 = vrot.slane %v2554_v21, 4  ;;  %v2595_v62 = vrot.slane %v2554_v21, 2  ;;  %v4220_v22 = vld [vmem:[%s5716_s1 + $0xe0] sm:$0xff] }
 0x4d8   : > { %2807 = vmatpush.bf16.msrb.mxu3 %v4220_v22 }
 0x4d9   : > { %v2507_v23 = vpack.c.bf16 %v5272_v48, %v5272_v48  ;;  %v2444_v18 = vadd.f32 %v5242_v52, %v2423_v11  ;;  %v2637_v2 = vsel %vm2569_vm6, %v2635_v61, %v2636_v29  ;;  %v2596_v13 = vsel %vm1694_vm5, %v2594_v43, %v2595_v62 }
 0x4da   : > { %4052 = vmatmul.msk.bf16.vlgmr.msrb.gmra.mxu0 %vm619_vm3, %v2637_v2  ;;  %2618 = vrot.lane.b32.xlu2 %v2596_v13, %s4287_s19 }
 0x4db   : > { %v2539_v58 = vunpack.c.l.b16 %v2507_v23  ;;  %v2460_v26 = vmax.f32 %v2444_v18, 0.0 }
 0x4dc   : > { %v2336_v0 = vpop.f32.mrf.mxu2 }
 0x4dd   : > { %v2476_v35 = vadd.f32 %v2460_v26, %v4894_v37  ;;  %v2386_v8 = vadd.f32 %v2385_v27, %v2336_v0  ;;  %v2555_v41 = vpack.c.b16 %v2539_v58, %v2539_v58  ;;  %v2397_v0 = vpop.f32.mrf.mxu1 }
 0x4df   : > { %v5286_v31 = vmax.f32 %v2476_v35, 0.0  ;;  %v2424_v1 = vmul.f32 %v5237_v19, %v2386_v8  ;;  %v5293_v37 = vsel %vm2569_vm6, 0, %v2555_v41 }
 0x4e0   : > { %v2638_v59 = vrot.slane %v5293_v37, 4  ;;  %v2597_v40 = vrot.slane %v5293_v37, 2 }
 0x4e1   : > { %v2508_v36 = vpack.c.bf16 %v5286_v31, %v5286_v31  ;;  %v2445_v63 = vadd.f32 %v5242_v52, %v2424_v1 }
 0x4e3   : > { %v2461_v45 = vmax.f32 %v2445_v63, 0.0  ;;  %v2540_v3 = vunpack.c.l.b16 %v2508_v36 }
 0x4e4   : > { %v2338_v27 = vpop.f32.mrf.mxu2 }
 0x4e5   : > { %v2477_v55 = vadd.f32 %v2461_v45, %v4911_v12  ;;  %v2388_v53 = vadd.f32 %v2387_v10, %v2338_v27  ;;  %v2556_v47 = vpack.c.b16 %v2540_v3, %v2540_v3 }
 0x4e7   : > { %v5298_v34 = vmax.f32 %v2477_v55, 0.0  ;;  %v2425_v57 = vmul.f32 %v5237_v19, %v2388_v53  ;;  %v2639_v6 = vrot.slane %v2556_v47, 4  ;;  %v2598_v4 = vrot.slane %v2556_v47, 2  ;;  %v4219_v53 = vld [vmem:[%s5716_s1 + $0xd8] sm:$0xff] }
 0x4e8   : > { %2808 = vmatpush.bf16.msrb.mxu3 %v4219_v53 }
 0x4e9   : > { %v2509_v9 = vpack.c.bf16 %v5298_v34, %v5298_v34  ;;  %v2446_v24 = vadd.f32 %v5242_v52, %v2425_v57  ;;  %v2640_v38 = vsel %vm2569_vm6, %v2638_v59, %v2639_v6  ;;  %v2599_v12 = vsel %vm1694_vm5, %v2597_v40, %v2598_v4  ;;  %v2400_v57 = vpop.f32.mrf.mxu1 }
 0x4ea   : > { %4053 = vmatmul.msk.bf16.gmra.mxu0 %vm619_vm3, %v2640_v38  ;;  %2620 = vrot.lane.b32.xlu0 %v2599_v12, %s4287_s19 }
 0x4eb   : > { %v2541_v10 = vunpack.c.l.b16 %v2509_v9  ;;  %v2462_v5 = vmax.f32 %v2446_v24, 0.0 }
 0x4ec   : > { %v2341_v16 = vpop.f32.mrf.mxu2 }
 0x4ed   : > { %v2478_v20 = vadd.f32 %v2462_v5, %v4920_v25  ;;  %v2391_v21 = vadd.f32 %v2390_v17, %v2341_v16  ;;  %v2557_v7 = vpack.c.b16 %v2541_v10, %v2541_v10 }
 0x4ef   : > { %v5312_v61 = vmax.f32 %v2478_v20, 0.0  ;;  %v2426_v43 = vmul.f32 %v5237_v19, %v2391_v21  ;;  %v5319_v25 = vsel %vm2569_vm6, 0, %v2557_v7 }
 0x4f0   : > { %v2641_v58 = vrot.slane %v5319_v25, 4  ;;  %v2600_v26 = vrot.slane %v5319_v25, 2 }
 0x4f1   : > { %v2510_v11 = vpack.c.bf16 %v5312_v61, %v5312_v61  ;;  %v2447_v29 = vadd.f32 %v5242_v52, %v2426_v43 }
 0x4f3   : > { %v2463_v62 = vmax.f32 %v2447_v29, 0.0  ;;  %v2542_v23 = vunpack.c.l.b16 %v2510_v11 }
 0x4f4   : > { %v2343_v17 = vpop.f32.mrf.mxu2 }
 0x4f5   : > { %v2479_v18 = vadd.f32 %v2463_v62, %v4937_v39  ;;  %v2393_v2 = vadd.f32 %v2392_v28, %v2343_v17  ;;  %v2558_v13 = vpack.c.b16 %v2542_v23, %v2542_v23  ;;  %v4218_v62 = vld [vmem:[%s5716_s1 + $0xd0] sm:$0xff]  ;;  %v2402_v23 = vpop.f32.mrf.mxu1 }
 0x4f6   : > { %2809 = vmatpush.bf16.msrb.mxu3 %v4218_v62 }
 0x4f7   : > { %v5324_v35 = vmax.f32 %v2479_v18, 0.0  ;;  %v2427_v8 = vmul.f32 %v5237_v19, %v2393_v2  ;;  %v2642_v32 = vrot.slane %v2558_v13, 4  ;;  %v2601_v41 = vrot.slane %v2558_v13, 2 }
 0x4f9   : > { %v2511_v1 = vpack.c.bf16 %v5324_v35, %v5324_v35  ;;  %v2448_v36 = vadd.f32 %v5242_v52, %v2427_v8  ;;  %v2643_v39 = vsel %vm2569_vm6, %v2641_v58, %v2642_v32  ;;  %v2602_v63 = vsel %vm1694_vm5, %v2600_v26, %v2601_v41  ;;  %v4217_v26 = vld [vmem:[%s5716_s1 + $0xc8] sm:$0xff] }
 0x4fa   : > { %4054 = vmatmul.msk.bf16.gmra.mxu0 %vm619_vm3, %v2643_v39  ;;  %2622 = vrot.lane.b32.xlu1 %v2602_v63, %s4287_s19 }
 0x4fb   : > { %v2543_v28 = vunpack.c.l.b16 %v2511_v1  ;;  %v2464_v45 = vmax.f32 %v2448_v36, 0.0  ;;  %2810 = vmatpush.bf16.msrb.mxu3 %v4217_v26 }
 0x4fc   : > { %v2346_v3 = vpop.f32.mrf.mxu2 }
 0x4fd   : > { %v2480_v27 = vadd.f32 %v2464_v45, %v4946_v56  ;;  %v2396_v55 = vadd.f32 %v2395_v33, %v2346_v3  ;;  %v2559_v47 = vpack.c.b16 %v2543_v28, %v2543_v28  ;;  %v2405_v45 = vpop.f32.mrf.mxu1 }
 0x4ff   : > { %v5338_v59 = vmax.f32 %v2480_v27, 0.0  ;;  %v2428_v40 = vmul.f32 %v5237_v19, %v2396_v55  ;;  %v5345_v56 = vsel %vm2569_vm6, 0, %v2559_v47 }
 0x500   : > { %v2644_v16 = vrot.slane %v5345_v56, 4  ;;  %v2603_v33 = vrot.slane %v5345_v56, 2 }
 0x501   : > { %v2512_v6 = vpack.c.bf16 %v5338_v59, %v5338_v59  ;;  %v2449_v4 = vadd.f32 %v5242_v52, %v2428_v40 }
 0x503   : > { %v2465_v9 = vmax.f32 %v2449_v4, 0.0  ;;  %v2544_v24 = vunpack.c.l.b16 %v2512_v6 }
 0x504   : > { %v2348_v38 = vpop.f32.mrf.mxu2 }
 0x505   : > { %v2481_v12 = vadd.f32 %v2465_v9, %v4964_v15  ;;  %v2398_v10 = vadd.f32 %v2397_v0, %v2348_v38  ;;  %v2560_v5 = vpack.c.b16 %v2544_v24, %v2544_v24 }
 0x507   : > { %v5350_v20 = vmax.f32 %v2481_v12, 0.0  ;;  %v2429_v21 = vmul.f32 %v5237_v19, %v2398_v10  ;;  %v2645_v22 = vrot.slane %v2560_v5, 4  ;;  %v2604_v7 = vrot.slane %v2560_v5, 2 }
 0x509   : > { %v2513_v43 = vpack.c.bf16 %v5350_v20, %v5350_v20  ;;  %v2450_v11 = vadd.f32 %v5242_v52, %v2429_v21  ;;  %v2646_v29 = vsel %vm2569_vm6, %v2644_v16, %v2645_v22  ;;  %v2605_v15 = vsel %vm1694_vm5, %v2603_v33, %v2604_v7  ;;  %v2407_v21 = vpop.f32.mrf.mxu1 }
 0x50a   : > { %4055 = vmatmul.msk.bf16.gmra.mxu0 %vm619_vm3, %v2646_v29  ;;  %2624 = vrot.lane.b32.xlu2 %v2605_v15, %s4287_s19 }
 0x50b   : > { %v2545_v17 = vunpack.c.l.b16 %v2513_v43  ;;  %v2466_v18 = vmax.f32 %v2450_v11, 0.0 }
 0x50c   : > { %v2351_v2 = vpop.f32.mrf.mxu2 }
 0x50d   : > { %v2482_v13 = vadd.f32 %v2466_v18, %v4972_v54  ;;  %v2401_v58 = vadd.f32 %v2400_v57, %v2351_v2  ;;  %v2561_v0 = vpack.c.b16 %v2545_v17, %v2545_v17  ;;  %v4216_v54 = vld [vmem:[%s5716_s1 + $0xc0] sm:$0xff] }
 0x50e   : > { %2811 = vmatpush.bf16.msrb.mxu3 %v4216_v54 }
 0x50f   : > { %v5367_v8 = vmax.f32 %v2482_v13, 0.0  ;;  %v2430_v32 = vmul.f32 %v5237_v19, %v2401_v58  ;;  %v5377_v63 = vsel %vm2569_vm6, 0, %v2561_v0 }
 0x510   : > { %v2647_v53 = vrot.slane %v5377_v63, 4  ;;  %v2606_v47 = vrot.slane %v5377_v63, 2 }
 0x511   : > { %v2514_v41 = vpack.c.bf16 %v5367_v8, %v5367_v8  ;;  %v2451_v1 = vadd.f32 %v5242_v52, %v2430_v32 }
 0x513   : > { %v2546_v36 = vunpack.c.l.b16 %v2514_v41  ;;  %v2467_v39 = vmax.f32 %v2451_v1, 0.0  ;;  %v2410_v1 = vpop.f32.mrf.mxu1 }
 0x514   : > { %v2353_v28 = vpop.f32.mrf.mxu2 }
 0x515   : > { %v2483_v3 = vadd.f32 %v2467_v39, %v4990_v30  ;;  %v2403_v27 = vadd.f32 %v2402_v23, %v2353_v28  ;;  %v2562_v55 = vpack.c.b16 %v2546_v36, %v2546_v36 }
 0x517   : > { %v5382_v40 = vmax.f32 %v2483_v3, 0.0  ;;  %v2431_v57 = vmul.f32 %v5237_v19, %v2403_v27  ;;  %v2648_v6 = vrot.slane %v2562_v55, 4  ;;  %v2607_v4 = vrot.slane %v2562_v55, 2 }
 0x519   : > { %v2515_v9 = vpack.c.bf16 %v5382_v40, %v5382_v40  ;;  %v2452_v24 = vadd.f32 %v5242_v52, %v2431_v57  ;;  %v2649_v38 = vsel %vm2569_vm6, %v2647_v53, %v2648_v6  ;;  %v2608_v30 = vsel %vm1694_vm5, %v2606_v47, %v2607_v4 }
 0x51a   : > { %4056 = vmatmul.msk.bf16.gmra.mxu0 %vm619_vm3, %v2649_v38  ;;  %2626 = vrot.lane.b32.xlu0 %v2608_v30, %s4287_s19 }
 0x51b   : > { %v2547_v12 = vunpack.c.l.b16 %v2515_v9  ;;  %v2468_v10 = vmax.f32 %v2452_v24, 0.0  ;;  %v2412_v9 = vpop.f32.mrf.mxu1 }
 0x51c   : > { %v2356_v5 = vpop.f32.mrf.mxu2 }
 0x51d   : > { %v2484_v16 = vadd.f32 %v2468_v10, %v4998_v46  ;;  %v2406_v33 = vadd.f32 %v2405_v45, %v2356_v5  ;;  %v2563_v22 = vpack.c.b16 %v2547_v12, %v2547_v12 }
 0x51f   : > { %v5393_v7 = vmax.f32 %v2484_v16, 0.0  ;;  %v2432_v43 = vmul.f32 %v5237_v19, %v2406_v33  ;;  %v5400_v23 = vsel %vm2569_vm6, 0, %v2563_v22 }
 0x520   : > { %v2650_v13 = vrot.slane %v5400_v23, 4  ;;  %v2609_v58 = vrot.slane %v5400_v23, 2 }
 0x521   : > { %v2516_v11 = vpack.c.bf16 %v5393_v7, %v5393_v7  ;;  %v2453_v29 = vadd.f32 %v5242_v52, %v2432_v43 }
 0x523   : > { %v2548_v15 = vunpack.c.l.b16 %v2516_v11  ;;  %v2469_v62 = vmax.f32 %v2453_v29, 0.0 }
 0x524   : > { %v2358_v17 = vpop.f32.mrf.mxu2 }
 0x525   : > { %v2485_v46 = vadd.f32 %v2469_v62, %v5016_v42  ;;  %v2408_v18 = vadd.f32 %v2407_v21, %v2358_v17  ;;  %v2564_v2 = vpack.c.b16 %v2548_v15, %v2548_v15 }
 0x527   : > { %v5405_v26 = vmax.f32 %v2485_v46, 0.0  ;;  %v2433_v0 = vmul.f32 %v5237_v19, %v2408_v18  ;;  %v2651_v32 = vrot.slane %v2564_v2, 4  ;;  %v2610_v41 = vrot.slane %v2564_v2, 2 }
 0x529   : > { %v2517_v54 = vpack.c.bf16 %v5405_v26, %v5405_v26  ;;  %v2454_v36 = vadd.f32 %v5242_v52, %v2433_v0  ;;  %v2652_v42 = vsel %vm2569_vm6, %v2650_v13, %v2651_v32  ;;  %v2611_v39 = vsel %vm1694_vm5, %v2609_v58, %v2610_v41 }
 0x52a   : > { %4057 = vmatmul.msk.bf16.gmra.mxu0 %vm619_vm3, %v2652_v42  ;;  %2628 = vrot.lane.b32.xlu1 %v2611_v39, %s4287_s19 }
 0x52b   : > { %v2549_v28 = vunpack.c.l.b16 %v2517_v54  ;;  %v2470_v45 = vmax.f32 %v2454_v36, 0.0 }
 0x52c   : > { %v2361_v3 = vpop.f32.mrf.mxu2 }
 0x52d   : > { %v2486_v27 = vadd.f32 %v2470_v45, %v5024_v60  ;;  %v2411_v55 = vadd.f32 %v2410_v1, %v2361_v3  ;;  %v2565_v53 = vpack.c.b16 %v2549_v28, %v2549_v28 }
 0x52f   : > { %v5416_v47 = vmax.f32 %v2486_v27, 0.0  ;;  %v2434_v57 = vmul.f32 %v5237_v19, %v2411_v55  ;;  %v2583_v30 = vsel %vm2569_vm6, 0, %v2565_v53 }
 0x530   : > { %v2653_v21 = vrot.slane %v2583_v30, 4  ;;  %v2612_v22 = vrot.slane %v2583_v30, 2 }
 0x531   : > { %v2518_v6 = vpack.c.bf16 %v5416_v47, %v5416_v47  ;;  %v2455_v4 = vadd.f32 %v5242_v52, %v2434_v57 }
 0x533   : > { %v2550_v24 = vunpack.c.l.b16 %v2518_v6  ;;  %v2471_v38 = vmax.f32 %v2455_v4, 0.0 }
 0x534   : > { %v2619_v12 = vpop.permute.xlu2 %2618  ;;  %v2363_v10 = vpop.f32.mrf.mxu2 }
 0x535   : > { %v2487_v60 = vadd.f32 %v2471_v38, %v5035_v44  ;;  %v2660_v5 = vsel %vm619_vm3, %v5267_v14, %v2619_v12  ;;  %v2413_v16 = vadd.f32 %v2412_v9, %v2363_v10  ;;  %v2566_v33 = vpack.c.b16 %v2550_v24, %v2550_v24  ;;  %v4235_v38 = vld [vmem:[%s5719_s4 + $0xf8] sm:$0xff]  ;;  %v5475_v12 = vld [vmem:[%s5717_s2 + $0x2] ss:$0 sm:$0xff] }
 0x536   : > { %2812 = vmatmul.bf16.vlgmr.msrb.gmra.mxu3 %v2660_v5  ;;  %3257 = vmatpush.bf16.msrb.mxu2 %v4235_v38 }
 0x537   : > { %v5426_v43 = vmax.f32 %v2487_v60, 0.0  ;;  %v2435_v11 = vmul.f32 %v5237_v19, %v2413_v16  ;;  %v2654_v29 = vrot.slane %v2566_v33, 4  ;;  %v2613_v15 = vrot.slane %v2566_v33, 2  ;;  %v5480_v60 = vld [vmem:[%s5718_s3 + $0x2] ss:$0 sm:$0xff] }
 0x539   : > { %v2519_v62 = vpack.c.bf16 %v5426_v43, %v5426_v43  ;;  %v2456_v17 = vadd.f32 %v5242_v52, %v2435_v11  ;;  %v2655_v44 = vsel %vm2569_vm6, %v2653_v21, %v2654_v29  ;;  %v2614_v14 = vsel %vm1694_vm5, %v2612_v22, %v2613_v15 }
 0x53a   : > { %4058 = vmatmul.msk.bf16.gmra.mxu0 %vm619_vm3, %v2655_v44  ;;  %2630 = vrot.lane.b32.xlu2 %v2614_v14, %s4287_s19 }
 0x53b   : > { %v2472_v46 = vmax.f32 %v2456_v17, 0.0  ;;  %v2551_v18 = vunpack.c.l.b16 %v2519_v62 }
 0x53d   : > { %v2488_v2 = vadd.f32 %v2472_v46, %v5043_v50  ;;  %v2567_v13 = vpack.c.b16 %v2551_v18, %v2551_v18 }
 0x53f   : > { %v5437_v19 = vmax.f32 %v2488_v2, 0.0  ;;  %v2585_v52 = vsel %vm2569_vm6, 0, %v2567_v13 }
 0x540   : > { %v2656_v41 = vrot.slane %v2585_v52, 4  ;;  %v2615_v54 = vrot.slane %v2585_v52, 2 }
 0x541   : > { %v2520_v58 = vpack.c.bf16 %v5437_v19, %v5437_v19 }
 0x543   : > { %v2552_v0 = vunpack.c.l.b16 %v2520_v58 }
 0x545   : > { %v2568_v32 = vpack.c.b16 %v2552_v0, %v2552_v0 }
 0x547   : > { %v2657_v1 = vrot.slane %v2568_v32, 4  ;;  %v2616_v36 = vrot.slane %v2568_v32, 2 }
 0x549   : > { %v2658_v42 = vsel %vm2569_vm6, %v2656_v41, %v2657_v1  ;;  %v2617_v39 = vsel %vm1694_vm5, %v2615_v54, %v2616_v36 }
 0x54a   : > { %4059 = vmatmul.msk.bf16.gmra.mxu0 %vm619_vm3, %v2658_v42  ;;  %2632 = vrot.lane.b32.xlu0 %v2617_v39, %s4287_s19 }
 0x557   : > { %v2862_v24 = vpop.f32.mrf.mxu0 }
 0x55c   : > { %v2621_v50 = vpop.permute.xlu0 %2620 }
 0x55d   : > { %v2663_v28 = vsel %vm619_vm3, %v5293_v37, %v2621_v50  ;;  %v4234_v50 = vld [vmem:[%s5719_s4 + $0xf0] sm:$0xff] }
 0x55e   : > { %2817 = vmatmul.bf16.gmra.mxu3 %v2663_v28  ;;  %3258 = vmatpush.bf16.msrb.mxu2 %v4234_v50 }
 0x55f   : > { %v2864_v33 = vpop.f32.mrf.mxu0 }
 0x564   : > { %v2625_v27 = vpop.permute.xlu2 %2624 }
 0x565   : > { %v2669_v55 = vsel %vm619_vm3, %v5345_v56, %v2625_v27  ;;  %v4238_v56 = vld [vmem:[%s5719_s4 + $0x110] sm:$0xff] }
 0x567   : > { %v2867_v46 = vpop.f32.mrf.mxu0 }
 0x56c   : > { %v2623_v45 = vpop.permute.xlu1 %2622 }
 0x56d   : > { %v2666_v3 = vsel %vm619_vm3, %v5319_v25, %v2623_v45  ;;  %v4239_v25 = vld [vmem:[%s5719_s4 + $0x118] sm:$0xff] }
 0x56e   : > { %2822 = vmatmul.bf16.gmra.mxu3 %v2666_v3  ;;  %3310 = vmatpush.bf16.msrb.mxu1 %v4239_v25 }
 0x56f   : > { %v2869_v36 = vpop.f32.mrf.mxu0 }
 0x572   : > { %3311 = vmatpush.bf16.msrb.mxu1 %v4238_v56 }
 0x577   : > { %v2872_v28 = vpop.f32.mrf.mxu0 }
 0x57e   : > { %2827 = vmatmul.bf16.gmra.mxu3 %v2669_v55 }
 0x57f   : > { %v2874_v55 = vpop.f32.mrf.mxu0 }
 0x58c   : > { %v2627_v53 = vpop.permute.xlu0 %2626 }
 0x58d   : > { %v2672_v57 = vsel %vm619_vm3, %v5377_v63, %v2627_v53  ;;  %v4237_v63 = vld [vmem:[%s5719_s4 + $0x108] sm:$0xff] }
 0x58e   : > { %2832 = vmatmul.bf16.gmra.mxu3 %v2672_v57  ;;  %3312 = vmatpush.bf16.msrb.mxu1 %v4237_v63  ;;  %v4233_v57 = vld [vmem:[%s5719_s4 + $0xe8] sm:$0xff] }
 0x58f   : > { %3259 = vmatpush.bf16.msrb.mxu2 %v4233_v57  ;;  %v4231_v57 = vld [vmem:[%s5719_s4 + $0xd8] sm:$0xff] }
 0x594   : > { %v2631_v4 = vpop.permute.xlu2 %2630 }
 0x595   : > { %v2678_v9 = vsel %vm619_vm3, %v2583_v30, %v2631_v4 }
 0x59c   : > { %v2629_v6 = vpop.permute.xlu1 %2628 }
 0x59d   : > { %v2675_v37 = vsel %vm619_vm3, %v5400_v23, %v2629_v6  ;;  %v4236_v23 = vld [vmem:[%s5719_s4 + $0x100] sm:$0xff] }
 0x59e   : > { %2837 = vmatmul.bf16.gmra.mxu3 %v2675_v37  ;;  %3313 = vmatpush.bf16.msrb.mxu1 %v4236_v23  ;;  %v2877_v23 = vpop.f32.mrf.mxu0 }
 0x5ae   : > { %2842 = vmatmul.bf16.gmra.mxu3 %v2678_v9 }
 0x5b9   : > { %v2813_v10 = vpop.f32.mrf.mxu3 }
 0x5ba   : > { %v2863_v30 = vadd.f32 %v2862_v24, %v2813_v10 }
 0x5bc   : > { %v2907_v5 = vmul.f32 %v5475_v12, %v2863_v30  ;;  %v2633_v16 = vpop.permute.xlu0 %2632 }
 0x5bd   : > { %v2681_v21 = vsel %vm619_vm3, %v2585_v52, %v2633_v16 }
 0x5be   : > { %v2928_v22 = vadd.f32 %v5480_v60, %v2907_v5  ;;  %2847 = vmatmul.bf16.gmra.mxu3 %v2681_v21 }
 0x5c0   : > { %v2944_v11 = vmax.f32 %v2928_v22, 0.0 }
 0x5c1   : > { %v2815_v29 = vpop.f32.mrf.mxu3 }
 0x5c2   : > { %v2960_v15 = vpack.c.bf16 %v2944_v11, %v2944_v11  ;;  %v2865_v62 = vadd.f32 %v2864_v33, %v2815_v29  ;;  %v4232_v29 = vld [vmem:[%s5719_s4 + $0xe0] sm:$0xff] }
 0x5c3   : > { %3260 = vmatpush.bf16.msrb.mxu2 %v4232_v29 }
 0x5c4   : > { %v2908_v17 = vmul.f32 %v5475_v12, %v2865_v62  ;;  %v2992_v44 = vunpack.c.l.b16 %v2960_v15 }
 0x5c6   : > { %v2929_v14 = vadd.f32 %v5480_v60, %v2908_v17  ;;  %v3008_v2 = vpack.c.b16 %v2992_v44, %v2992_v44 }
 0x5c7   : > { %3261 = vmatpush.bf16.msrb.mxu2 %v4231_v57 }
 0x5c8   : > { %v2945_v18 = vmax.f32 %v2929_v14, 0.0  ;;  %v5488_v0 = vsel %vm2569_vm6, 0, %v3008_v2 }
 0x5c9   : > { %v3088_v32 = vrot.slane %v5488_v0, 4  ;;  %v3048_v1 = vrot.slane %v5488_v0, 2 }
 0x5ca   : > { %v2961_v13 = vpack.c.bf16 %v2945_v18, %v2945_v18 }
 0x5cc   : > { %v2993_v58 = vunpack.c.l.b16 %v2961_v13 }
 0x5ce   : > { %v3009_v52 = vpack.c.b16 %v2993_v58, %v2993_v58 }
 0x5d0   : > { %v3089_v41 = vrot.slane %v3009_v52, 4  ;;  %v3049_v54 = vrot.slane %v3009_v52, 2 }
 0x5d2   : > { %v3090_v42 = vsel %vm2569_vm6, %v3088_v32, %v3089_v41  ;;  %v3050_v39 = vsel %vm1694_vm5, %v3048_v1, %v3049_v54 }
 0x5d3   : > { %4134 = vmatmul.msk.bf16.vlgmr.msrb.gmra.mxu1 %vm619_vm3, %v3090_v42  ;;  %3072 = vrot.lane.b32.xlu1 %v3050_v39, %s4287_s19 }
 0x5e1   : > { %v2818_v45 = vpop.f32.mrf.mxu3 }
 0x5e2   : > { %v2868_v3 = vadd.f32 %v2867_v46, %v2818_v45  ;;  %v2879_v46 = vpop.f32.mrf.mxu0 }
 0x5e4   : > { %v2909_v27 = vmul.f32 %v5475_v12, %v2868_v3 }
 0x5e6   : > { %v2930_v53 = vadd.f32 %v5480_v60, %v2909_v27 }
 0x5e8   : > { %v2946_v6 = vmax.f32 %v2930_v53, 0.0 }
 0x5e9   : > { %v2820_v37 = vpop.f32.mrf.mxu3 }
 0x5ea   : > { %v2962_v25 = vpack.c.bf16 %v2946_v6, %v2946_v6  ;;  %v2870_v56 = vadd.f32 %v2869_v36, %v2820_v37 }
 0x5ec   : > { %v2994_v4 = vunpack.c.l.b16 %v2962_v25  ;;  %v2910_v63 = vmul.f32 %v5475_v12, %v2870_v56 }
 0x5ee   : > { %v2931_v9 = vadd.f32 %v5480_v60, %v2910_v63  ;;  %v3010_v24 = vpack.c.b16 %v2994_v4, %v2994_v4 }
 0x5f0   : > { %v2947_v38 = vmax.f32 %v2931_v9, 0.0  ;;  %v5507_v16 = vsel %vm2569_vm6, 0, %v3010_v24 }
 0x5f1   : > { %v2823_v10 = vpop.f32.mrf.mxu3  ;;  %v3091_v15 = vrot.slane %v5507_v16, 4  ;;  %v3051_v44 = vrot.slane %v5507_v16, 2 }
 0x5f2   : > { %v2963_v30 = vpack.c.bf16 %v2947_v38, %v2947_v38  ;;  %v2873_v5 = vadd.f32 %v2872_v28, %v2823_v10  ;;  %v2882_v28 = vpop.f32.mrf.mxu0 }
 0x5f4   : > { %v2995_v33 = vunpack.c.l.b16 %v2963_v30  ;;  %v2911_v21 = vmul.f32 %v5475_v12, %v2873_v5 }
 0x5f6   : > { %v3011_v22 = vpack.c.b16 %v2995_v33, %v2995_v33  ;;  %v2932_v11 = vadd.f32 %v5480_v60, %v2911_v21 }
 0x5f8   : > { %v2948_v62 = vmax.f32 %v2932_v11, 0.0  ;;  %v3092_v17 = vrot.slane %v3011_v22, 4  ;;  %v3052_v14 = vrot.slane %v3011_v22, 2 }
 0x5f9   : > { %v2825_v18 = vpop.f32.mrf.mxu3 }
 0x5fa   : > { %v2964_v2 = vpack.c.bf16 %v2948_v62, %v2948_v62  ;;  %v2875_v13 = vadd.f32 %v2874_v55, %v2825_v18  ;;  %v3093_v58 = vsel %vm2569_vm6, %v3091_v15, %v3092_v17  ;;  %v3053_v52 = vsel %vm1694_vm5, %v3051_v44, %v3052_v14  ;;  %v2884_v5 = vpop.f32.mrf.mxu0  ;;  %v4230_v18 = vld [vmem:[%s5719_s4 + $0xd0] sm:$0xff] }
 0x5fb   : > { %4135 = vmatmul.msk.bf16.gmra.mxu1 %vm619_vm3, %v3093_v58  ;;  %3074 = vrot.lane.b32.xlu2 %v3053_v52, %s4287_s19 }
 0x5fc   : > { %v2996_v32 = vunpack.c.l.b16 %v2964_v2  ;;  %v2912_v41 = vmul.f32 %v5475_v12, %v2875_v13  ;;  %3262 = vmatpush.bf16.msrb.mxu2 %v4230_v18 }
 0x5fe   : > { %v2933_v1 = vadd.f32 %v5480_v60, %v2912_v41  ;;  %v3012_v54 = vpack.c.b16 %v2996_v32, %v2996_v32 }
 0x600   : > { %v2949_v36 = vmax.f32 %v2933_v1, 0.0  ;;  %v5523_v45 = vsel %vm2569_vm6, 0, %v3012_v54 }
 0x601   : > { %v2828_v42 = vpop.f32.mrf.mxu3  ;;  %v3094_v6 = vrot.slane %v5523_v45, 4  ;;  %v3054_v56 = vrot.slane %v5523_v45, 2 }
 0x602   : > { %v2965_v39 = vpack.c.bf16 %v2949_v36, %v2949_v36  ;;  %v2878_v50 = vadd.f32 %v2877_v23, %v2828_v42  ;;  %v2887_v2 = vpop.f32.mrf.mxu0 }
 0x604   : > { %v2997_v3 = vunpack.c.l.b16 %v2965_v39  ;;  %v2913_v27 = vmul.f32 %v5475_v12, %v2878_v50 }
 0x606   : > { %v3013_v55 = vpack.c.b16 %v2997_v3, %v2997_v3  ;;  %v2934_v53 = vadd.f32 %v5480_v60, %v2913_v27  ;;  %v4229_v27 = vld [vmem:[%s5719_s4 + $0xc8] sm:$0xff] }
 0x607   : > { %3263 = vmatpush.bf16.msrb.mxu2 %v4229_v27 }
 0x608   : > { %v2950_v37 = vmax.f32 %v2934_v53, 0.0  ;;  %v3095_v25 = vrot.slane %v3013_v55, 4  ;;  %v3055_v4 = vrot.slane %v3013_v55, 2 }
 0x609   : > { %v2830_v63 = vpop.f32.mrf.mxu3 }
 0x60a   : > { %v2966_v9 = vpack.c.bf16 %v2950_v37, %v2950_v37  ;;  %v2880_v23 = vadd.f32 %v2879_v46, %v2830_v63  ;;  %v3096_v24 = vsel %vm2569_vm6, %v3094_v6, %v3095_v25  ;;  %v3056_v38 = vsel %vm1694_vm5, %v3054_v56, %v3055_v4  ;;  %v2889_v57 = vpop.f32.mrf.mxu0  ;;  %v4228_v56 = vld [vmem:[%s5719_s4 + $0xc0] sm:$0xff] }
 0x60b   : > { %4136 = vmatmul.msk.bf16.gmra.mxu1 %vm619_vm3, %v3096_v24  ;;  %3076 = vrot.lane.b32.xlu0 %v3056_v38, %s4287_s19 }
 0x60c   : > { %v2998_v10 = vunpack.c.l.b16 %v2966_v9  ;;  %v2914_v30 = vmul.f32 %v5475_v12, %v2880_v23  ;;  %3264 = vmatpush.bf16.msrb.mxu2 %v4228_v56 }
 0x60e   : > { %v2935_v33 = vadd.f32 %v5480_v60, %v2914_v30  ;;  %v3014_v21 = vpack.c.b16 %v2998_v10, %v2998_v10 }
 0x610   : > { %v2951_v22 = vmax.f32 %v2935_v33, 0.0  ;;  %v5539_v62 = vsel %vm2569_vm6, 0, %v3014_v21 }
 0x611   : > { %v2833_v11 = vpop.f32.mrf.mxu3  ;;  %v3097_v13 = vrot.slane %v5539_v62, 4  ;;  %v3057_v32 = vrot.slane %v5539_v62, 2 }
 0x612   : > { %v2967_v29 = vpack.c.bf16 %v2951_v22, %v2951_v22  ;;  %v2883_v15 = vadd.f32 %v2882_v28, %v2833_v11 }
 0x614   : > { %v2999_v17 = vunpack.c.l.b16 %v2967_v29  ;;  %v2915_v44 = vmul.f32 %v5475_v12, %v2883_v15 }
 0x616   : > { %v3015_v14 = vpack.c.b16 %v2999_v17, %v2999_v17  ;;  %v2936_v46 = vadd.f32 %v5480_v60, %v2915_v44  ;;  %v2892_v17 = vpop.f32.mrf.mxu0 }
 0x618   : > { %v2952_v58 = vmax.f32 %v2936_v46, 0.0  ;;  %v3098_v52 = vrot.slane %v3015_v14, 4  ;;  %v3058_v41 = vrot.slane %v3015_v14, 2 }
 0x619   : > { %v2835_v1 = vpop.f32.mrf.mxu3 }
 0x61a   : > { %v2968_v54 = vpack.c.bf16 %v2952_v58, %v2952_v58  ;;  %v2885_v36 = vadd.f32 %v2884_v5, %v2835_v1  ;;  %v3099_v42 = vsel %vm2569_vm6, %v3097_v13, %v3098_v52  ;;  %v3059_v39 = vsel %vm1694_vm5, %v3057_v32, %v3058_v41 }
 0x61b   : > { %4137 = vmatmul.msk.bf16.gmra.mxu1 %vm619_vm3, %v3099_v42  ;;  %3078 = vrot.lane.b32.xlu1 %v3059_v39, %s4287_s19 }
 0x61c   : > { %v3000_v50 = vunpack.c.l.b16 %v2968_v54  ;;  %v2916_v28 = vmul.f32 %v5475_v12, %v2885_v36 }
 0x61e   : > { %v2937_v3 = vadd.f32 %v5480_v60, %v2916_v28  ;;  %v3016_v55 = vpack.c.b16 %v3000_v50, %v3000_v50  ;;  %v2894_v54 = vpop.f32.mrf.mxu0 }
 0x620   : > { %v2953_v53 = vmax.f32 %v2937_v3, 0.0  ;;  %v5561_v4 = vsel %vm2569_vm6, 0, %v3016_v55 }
 0x621   : > { %v2838_v6 = vpop.f32.mrf.mxu3  ;;  %v3100_v38 = vrot.slane %v5561_v4, 4  ;;  %v3060_v5 = vrot.slane %v5561_v4, 2 }
 0x622   : > { %v2969_v37 = vpack.c.bf16 %v2953_v53, %v2953_v53  ;;  %v2888_v25 = vadd.f32 %v2887_v2, %v2838_v6 }
 0x624   : > { %v3001_v63 = vunpack.c.l.b16 %v2969_v37  ;;  %v2917_v9 = vmul.f32 %v5475_v12, %v2888_v25 }
 0x626   : > { %v3017_v23 = vpack.c.b16 %v3001_v63, %v3001_v63  ;;  %v2938_v24 = vadd.f32 %v5480_v60, %v2917_v9  ;;  %v2897_v9 = vpop.f32.mrf.mxu0 }
 0x628   : > { %v2954_v10 = vmax.f32 %v2938_v24, 0.0  ;;  %v3101_v30 = vrot.slane %v3017_v23, 4  ;;  %v3061_v33 = vrot.slane %v3017_v23, 2 }
 0x629   : > { %v2840_v21 = vpop.f32.mrf.mxu3 }
 0x62a   : > { %v2970_v22 = vpack.c.bf16 %v2954_v10, %v2954_v10  ;;  %v2890_v11 = vadd.f32 %v2889_v57, %v2840_v21  ;;  %v3102_v29 = vsel %vm2569_vm6, %v3100_v38, %v3101_v30  ;;  %v3062_v15 = vsel %vm1694_vm5, %v3060_v5, %v3061_v33 }
 0x62b   : > { %4138 = vmatmul.msk.bf16.gmra.mxu1 %vm619_vm3, %v3102_v29  ;;  %3080 = vrot.lane.b32.xlu2 %v3062_v15, %s4287_s19 }
 0x62c   : > { %v3002_v44 = vunpack.c.l.b16 %v2970_v22  ;;  %v2918_v14 = vmul.f32 %v5475_v12, %v2890_v11 }
 0x62e   : > { %v2939_v46 = vadd.f32 %v5480_v60, %v2918_v14  ;;  %v3018_v18 = vpack.c.b16 %v3002_v44, %v3002_v44 }
 0x630   : > { %v2955_v2 = vmax.f32 %v2939_v46, 0.0  ;;  %v5574_v32 = vsel %vm2569_vm6, 0, %v3018_v18 }
 0x631   : > { %v2843_v13 = vpop.f32.mrf.mxu3  ;;  %v3103_v39 = vrot.slane %v5574_v32, 4  ;;  %v3063_v3 = vrot.slane %v5574_v32, 2 }
 0x632   : > { %v2971_v58 = vpack.c.bf16 %v2955_v2, %v2955_v2  ;;  %v2893_v52 = vadd.f32 %v2892_v17, %v2843_v13  ;;  %v2899_v2 = vpop.f32.mrf.mxu0 }
 0x634   : > { %v3003_v41 = vunpack.c.l.b16 %v2971_v58  ;;  %v2919_v1 = vmul.f32 %v5475_v12, %v2893_v52 }
 0x636   : > { %v3019_v36 = vpack.c.b16 %v3003_v41, %v3003_v41  ;;  %v2940_v42 = vadd.f32 %v5480_v60, %v2919_v1 }
 0x638   : > { %v2956_v50 = vmax.f32 %v2940_v42, 0.0  ;;  %v3104_v28 = vrot.slane %v3019_v36, 4  ;;  %v3064_v27 = vrot.slane %v3019_v36, 2 }
 0x639   : > { %v2845_v55 = vpop.f32.mrf.mxu3 }
 0x63a   : > { %v2972_v53 = vpack.c.bf16 %v2956_v50, %v2956_v50  ;;  %v2895_v57 = vadd.f32 %v2894_v54, %v2845_v55  ;;  %v3105_v6 = vsel %vm2569_vm6, %v3103_v39, %v3104_v28  ;;  %v3065_v37 = vsel %vm1694_vm5, %v3063_v3, %v3064_v27 }
 0x63b   : > { %4139 = vmatmul.msk.bf16.gmra.mxu1 %vm619_vm3, %v3105_v6  ;;  %3082 = vrot.lane.b32.xlu0 %v3065_v37, %s4287_s19 }
 0x63c   : > { %v3004_v25 = vunpack.c.l.b16 %v2972_v53  ;;  %v2920_v56 = vmul.f32 %v5475_v12, %v2895_v57 }
 0x63e   : > { %v2941_v63 = vadd.f32 %v5480_v60, %v2920_v56  ;;  %v3020_v23 = vpack.c.b16 %v3004_v25, %v3004_v25 }
 0x640   : > { %v2957_v24 = vmax.f32 %v2941_v63, 0.0  ;;  %v3037_v5 = vsel %vm2569_vm6, 0, %v3020_v23 }
 0x641   : > { %v2848_v38 = vpop.f32.mrf.mxu3  ;;  %v3106_v17 = vrot.slane %v3037_v5, 4  ;;  %v3066_v46 = vrot.slane %v3037_v5, 2 }
 0x642   : > { %v2973_v10 = vpack.c.bf16 %v2957_v24, %v2957_v24  ;;  %v2898_v30 = vadd.f32 %v2897_v9, %v2848_v38 }
 0x644   : > { %v3005_v33 = vunpack.c.l.b16 %v2973_v10  ;;  %v2921_v21 = vmul.f32 %v5475_v12, %v2898_v30 }
 0x645   : > { %v3073_v22 = vpop.permute.xlu1 %3072 }
 0x646   : > { %v3021_v11 = vpack.c.b16 %v3005_v33, %v3005_v33  ;;  %v2942_v29 = vadd.f32 %v5480_v60, %v2921_v21  ;;  %v3113_v15 = vsel %vm619_vm3, %v5488_v0, %v3073_v22 }
 0x647   : > { %3265 = vmatmul.bf16.vlgmr.msrb.gmra.mxu2 %v3113_v15 }
 0x648   : > { %v2958_v44 = vmax.f32 %v2942_v29, 0.0  ;;  %v3107_v14 = vrot.slane %v3021_v11, 4  ;;  %v3067_v18 = vrot.slane %v3021_v11, 2 }
 0x649   : > { %v2850_v13 = vpop.f32.mrf.mxu3 }
 0x64a   : > { %v2974_v58 = vpack.c.bf16 %v2958_v44, %v2958_v44  ;;  %v2900_v52 = vadd.f32 %v2899_v2, %v2850_v13  ;;  %v3108_v41 = vsel %vm2569_vm6, %v3106_v17, %v3107_v14  ;;  %v3068_v1 = vsel %vm1694_vm5, %v3066_v46, %v3067_v18 }
 0x64b   : > { %4140 = vmatmul.msk.bf16.gmra.mxu1 %vm619_vm3, %v3108_v41  ;;  %3084 = vrot.lane.b32.xlu1 %v3068_v1, %s4287_s19 }
 0x64c   : > { %v2922_v0 = vmul.f32 %v5475_v12, %v2900_v52  ;;  %v3006_v54 = vunpack.c.l.b16 %v2974_v58 }
 0x64e   : > { %v2943_v36 = vadd.f32 %v5480_v60, %v2922_v0  ;;  %v3022_v39 = vpack.c.b16 %v3006_v54, %v3006_v54 }
 0x650   : > { %v2959_v42 = vmax.f32 %v2943_v36, 0.0  ;;  %v3039_v3 = vsel %vm2569_vm6, 0, %v3022_v39 }
 0x651   : > { %v3109_v57 = vrot.slane %v3039_v3, 4  ;;  %v3069_v37 = vrot.slane %v3039_v3, 2 }
 0x652   : > { %v2975_v50 = vpack.c.bf16 %v2959_v42, %v2959_v42 }
 0x654   : > { %v3007_v28 = vunpack.c.l.b16 %v2975_v50 }
 0x655   : > { %v3075_v27 = vpop.permute.xlu2 %3074 }
 0x656   : > { %v3023_v55 = vpack.c.b16 %v3007_v28, %v3007_v28  ;;  %v3116_v53 = vsel %vm619_vm3, %v5507_v16, %v3075_v27 }
 0x657   : > { %3270 = vmatmul.bf16.gmra.mxu2 %v3116_v53 }
 0x658   : > { %v3110_v6 = vrot.slane %v3023_v55, 4  ;;  %v3070_v25 = vrot.slane %v3023_v55, 2 }
 0x65a   : > { %v3111_v12 = vsel %vm2569_vm6, %v3109_v57, %v3110_v6  ;;  %v3071_v60 = vsel %vm1694_vm5, %v3069_v37, %v3070_v25 }
 0x65b   : > { %4141 = vmatmul.msk.bf16.gmra.mxu1 %vm619_vm3, %v3111_v12  ;;  %3086 = vrot.lane.b32.xlu2 %v3071_v60, %s4287_s19  ;;  %s389_s19 = scalar_lea.vmem %s5726_s11, %s3679_s14 }
 0x67d   : > { %v3077_v56 = vpop.permute.xlu0 %3076 }
 0x67e   : > { %v3119_v63 = vsel %vm619_vm3, %v5523_v45, %v3077_v56  ;;  %v3315_v45 = vpop.f32.mrf.mxu1 }
 0x67f   : > { %3275 = vmatmul.bf16.gmra.mxu2 %v3119_v63 }
 0x685   : > { %v3081_v23 = vpop.permute.xlu2 %3080 }
 0x686   : > { %v3125_v24 = vsel %vm619_vm3, %v5561_v4, %v3081_v23  ;;  %v5621_v4 = vld [vmem:[%s5721_s6 + $0x2] ss:$0 sm:$0xff]  ;;  %v3317_v15 = vpop.f32.mrf.mxu1 }
 0x68d   : > { %v3079_v9 = vpop.permute.xlu1 %3078 }
 0x68e   : > { %v3122_v16 = vsel %vm619_vm3, %v5539_v62, %v3079_v9  ;;  %v5616_v62 = vld [vmem:[%s5720_s5 + $0x2] ss:$0 sm:$0xff]  ;;  %v3320_v13 = vpop.f32.mrf.mxu1 }
 0x68f   : > { %3280 = vmatmul.bf16.gmra.mxu2 %v3122_v16 }
 0x69f   : > { %3285 = vmatmul.bf16.gmra.mxu2 %v3125_v24 }
 0x6ad   : > { %v3083_v38 = vpop.permute.xlu0 %3082 }
 0x6ae   : > { %v3128_v10 = vsel %vm619_vm3, %v5574_v32, %v3083_v38 }
 0x6af   : > { %3290 = vmatmul.bf16.gmra.mxu2 %v3128_v10 }
 0x6b5   : > { %v3087_v22 = vpop.permute.xlu2 %3086 }
 0x6b6   : > { %v3134_v29 = vsel %vm619_vm3, %v3039_v3, %v3087_v22 }
 0x6bd   : > { %v3085_v30 = vpop.permute.xlu1 %3084 }
 0x6be   : > { %v3131_v33 = vsel %vm619_vm3, %v3037_v5, %v3085_v30 }
 0x6bf   : > { %3295 = vmatmul.bf16.gmra.mxu2 %v3131_v33 }
 0x6ca   : > { %v3266_v21 = vpop.f32.mrf.mxu2 }
 0x6cb   : > { %v3316_v11 = vadd.f32 %v3315_v45, %v3266_v21 }
 0x6cd   : > { %v3360_v32 = vmul.f32 %v5616_v62, %v3316_v11 }
 0x6cf   : > { %v3381_v5 = vadd.f32 %v5621_v4, %v3360_v32  ;;  %3300 = vmatmul.bf16.gmra.mxu2 %v3134_v29 }
 0x6d1   : > { %v3397_v44 = vmax.f32 %v3381_v5, 0.0 }
 0x6d2   : > { %v3268_v17 = vpop.f32.mrf.mxu2 }
 0x6d3   : > { %v3318_v14 = vadd.f32 %v3317_v15, %v3268_v17  ;;  %v3413_v18 = vadd.f32 %v3397_v44, %v5250_v49  ;;  %v3322_v49 = vpop.f32.mrf.mxu1 }
 0x6d5   : > { %v3361_v46 = vmul.f32 %v5616_v62, %v3318_v14  ;;  %v3429_v41 = vmax.f32 %v3413_v18, 0.0 }
 0x6d7   : > { %v3382_v2 = vadd.f32 %v5621_v4, %v3361_v46  ;;  %v3445_v42 = vsel %vm619_vm3, %v3429_v41, 0.0 }
 0x6d9   : > { %v3398_v58 = vmax.f32 %v3382_v2, 0.0 }
 0x6da   : > { %v3271_v52 = vpop.f32.mrf.mxu2 }
 0x6db   : > { %v3414_v1 = vadd.f32 %v3398_v58, %v5260_v51  ;;  %v3321_v0 = vadd.f32 %v3320_v13, %v3271_v52  ;;  %v4243_v51 = vld [vmem:[%s5724_s9 + $0x18] sm:$0xff]  ;;  %v3325_v9 = vpop.f32.mrf.mxu1 }
 0x6dc   : > { %3607 = vmatpush.bf16.msra.mxu3 %v4243_v51 }
 0x6dd   : > { %v3430_v54 = vmax.f32 %v3414_v1, 0.0  ;;  %v3362_v36 = vmul.f32 %v5616_v62, %v3321_v0 }
 0x6df   : > { %v3446_v39 = vsel %vm619_vm3, %v3430_v54, 0.0  ;;  %v3383_v50 = vadd.f32 %v5621_v4, %v3362_v36 }
 0x6e0   : > { %v3447_v28 = vadd.f32 %v3446_v39, %v3445_v42 }
 0x6e1   : > { %v3399_v55 = vmax.f32 %v3383_v50, 0.0 }
 0x6e2   : > { %v3448_v3 = vrot.slane %v3447_v28, 4  ;;  %v3273_v27 = vpop.f32.mrf.mxu2 }
 0x6e3   : > { %v3323_v53 = vadd.f32 %v3322_v49, %v3273_v27  ;;  %v3415_v37 = vadd.f32 %v3399_v55, %v5272_v48  ;;  %v3327_v21 = vpop.f32.mrf.mxu1 }
 0x6e4   : > { %v3449_v6 = vadd.f32 %v3448_v3, %v3447_v28 }
 0x6e5   : > { %v3363_v57 = vmul.f32 %v5616_v62, %v3323_v53  ;;  %v3431_v56 = vmax.f32 %v3415_v37, 0.0 }
 0x6e6   : > { %v3450_v60 = vrot.slane %v3449_v6, 2 }
 0x6e7   : > { %v3384_v25 = vadd.f32 %v5621_v4, %v3363_v57  ;;  %v3454_v24 = vsel %vm619_vm3, %v3431_v56, 0.0 }
 0x6e8   : > { %v3451_v23 = vadd.f32 %v3450_v60, %v3449_v6 }
 0x6e9   : > { %v3400_v12 = vmax.f32 %v3384_v25, 0.0 }
 0x6ea   : > { %v3452_v30 = vrot.slane %v3451_v23, 1 }
 0x6eb   : > { %v3416_v63 = vadd.f32 %v3400_v12, %v5286_v31  ;;  %v3330_v17 = vpop.f32.mrf.mxu1 }
 0x6ec   : > { %v3453_v48 = vadd.f32 %v3452_v30, %v3451_v23 }
 0x6ed   : > { %v3432_v16 = vmax.f32 %v3416_v63, 0.0 }
 0x6ee   : > { %v3517_v32 = vmul.f32 0.0625, %v3453_v48 }
 0x6ef   : > { %v3455_v38 = vsel %vm619_vm3, %v3432_v16, 0.0 }
 0x6f0   : > { %v3456_v10 = vadd.f32 %v3455_v38, %v3454_v24  ;;  %v3525_v15 = vpack.c.bf16 %v3517_v32, %v3517_v32 }
 0x6f2   : > { %v3457_v33 = vrot.slane %v3456_v10, 4  ;;  %v3553_v14 = vunpack.c.l.b16 %v3525_v15 }
 0x6f3   : > { %v3332_v41 = vpop.f32.mrf.mxu1 }
 0x6f4   : > { %v3458_v45 = vadd.f32 %v3457_v33, %v3456_v10 }
 0x6f6   : > { %v3459_v22 = vrot.slane %v3458_v45, 2 }
 0x6f8   : > { %v3460_v11 = vadd.f32 %v3459_v22, %v3458_v45 }
 0x6fa   : > { %v3461_v29 = vrot.slane %v3460_v11, 1 }
 0x6fb   : > { %v3335_v55 = vpop.f32.mrf.mxu1 }
 0x6fc   : > { %v3462_v5 = vadd.f32 %v3461_v29, %v3460_v11 }
 0x6fe   : > { %v3518_v31 = vmul.f32 0.0625, %v3462_v5 }
 0x700   : > { %v3526_v44 = vpack.c.bf16 %v3518_v31, %v3518_v31 }
 0x702   : > { %v3554_v46 = vunpack.c.l.b16 %v3526_v44  ;;  %v3276_v18 = vpop.f32.mrf.mxu2 }
 0x703   : > { %v3326_v2 = vadd.f32 %v3325_v9, %v3276_v18  ;;  %v3337_v16 = vpop.f32.mrf.mxu1 }
 0x704   : > { %v3562_v13 = vsel %vm3561_vm7, %v3554_v46, %v3553_v14 }
 0x705   : > { %v3364_v58 = vmul.f32 %v5616_v62, %v3326_v2 }
 0x707   : > { %v3385_v52 = vadd.f32 %v5621_v4, %v3364_v58 }
 0x709   : > { %v3401_v0 = vmax.f32 %v3385_v52, 0.0 }
 0x70a   : > { %v3278_v1 = vpop.f32.mrf.mxu2 }
 0x70b   : > { %v3328_v54 = vadd.f32 %v3327_v21, %v3278_v1  ;;  %v3417_v42 = vadd.f32 %v3401_v0, %v5298_v34  ;;  %v3340_v15 = vpop.f32.mrf.mxu1 }
 0x70d   : > { %v3365_v36 = vmul.f32 %v5616_v62, %v3328_v54  ;;  %v3433_v49 = vmax.f32 %v3417_v42, 0.0 }
 0x70f   : > { %v3386_v39 = vadd.f32 %v5621_v4, %v3365_v36  ;;  %v3463_v57 = vsel %vm619_vm3, %v3433_v49, 0.0 }
 0x711   : > { %v3402_v50 = vmax.f32 %v3386_v39, 0.0 }
 0x712   : > { %v3281_v28 = vpop.f32.mrf.mxu2 }
 0x713   : > { %v3418_v3 = vadd.f32 %v3402_v50, %v5312_v61  ;;  %v3331_v27 = vadd.f32 %v3330_v17, %v3281_v28  ;;  %v4242_v61 = vld [vmem:[%s5724_s9 + $0x10] sm:$0xff]  ;;  %v3342_v52 = vpop.f32.mrf.mxu1 }
 0x714   : > { %3608 = vmatpush.bf16.msra.mxu3 %v4242_v61 }
 0x715   : > { %v3434_v53 = vmax.f32 %v3418_v3, 0.0  ;;  %v3366_v51 = vmul.f32 %v5616_v62, %v3331_v27 }
 0x717   : > { %v3464_v6 = vsel %vm619_vm3, %v3434_v53, 0.0  ;;  %v3387_v37 = vadd.f32 %v5621_v4, %v3366_v51 }
 0x718   : > { %v3465_v25 = vadd.f32 %v3464_v6, %v3463_v57 }
 0x719   : > { %v3403_v60 = vmax.f32 %v3387_v37, 0.0 }
 0x71a   : > { %v3466_v34 = vrot.slane %v3465_v25, 4  ;;  %v3283_v12 = vpop.f32.mrf.mxu2 }
 0x71b   : > { %v3333_v56 = vadd.f32 %v3332_v41, %v3283_v12  ;;  %v3419_v24 = vadd.f32 %v3403_v60, %v5324_v35  ;;  %v3345_v27 = vpop.f32.mrf.mxu1 }
 0x71c   : > { %v3467_v63 = vadd.f32 %v3466_v34, %v3465_v25 }
 0x71d   : > { %v3367_v9 = vmul.f32 %v5616_v62, %v3333_v56  ;;  %v3435_v21 = vmax.f32 %v3419_v24, 0.0 }
 0x71e   : > { %v3468_v23 = vrot.slane %v3467_v63, 2 }
 0x71f   : > { %v3388_v38 = vadd.f32 %v5621_v4, %v3367_v9  ;;  %v3472_v29 = vsel %vm619_vm3, %v3435_v21, 0.0 }
 0x720   : > { %v3469_v10 = vadd.f32 %v3468_v23, %v3467_v63 }
 0x721   : > { %v3404_v30 = vmax.f32 %v3388_v38, 0.0 }
 0x722   : > { %v3470_v33 = vrot.slane %v3469_v10, 1  ;;  %v3286_v45 = vpop.f32.mrf.mxu2 }
 0x723   : > { %v3420_v48 = vadd.f32 %v3404_v30, %v5338_v59  ;;  %v3336_v42 = vadd.f32 %v3335_v55, %v3286_v45  ;;  %v3347_v23 = vpop.f32.mrf.mxu1 }
 0x724   : > { %v3471_v22 = vadd.f32 %v3470_v33, %v3469_v10 }
 0x725   : > { %v3436_v11 = vmax.f32 %v3420_v48, 0.0  ;;  %v3368_v51 = vmul.f32 %v5616_v62, %v3336_v42 }
 0x726   : > { %v3519_v32 = vmul.f32 0.0625, %v3471_v22 }
 0x727   : > { %v3473_v5 = vsel %vm619_vm3, %v3436_v11, 0.0  ;;  %v3389_v25 = vadd.f32 %v5621_v4, %v3368_v51 }
 0x728   : > { %v3527_v31 = vpack.c.bf16 %v3519_v32, %v3519_v32  ;;  %v3474_v17 = vadd.f32 %v3473_v5, %v3472_v29 }
 0x729   : > { %v3405_v61 = vmax.f32 %v3389_v25, 0.0 }
 0x72a   : > { %v3555_v35 = vunpack.c.l.b16 %v3527_v31  ;;  %v3475_v44 = vrot.slane %v3474_v17, 4  ;;  %v3288_v14 = vpop.f32.mrf.mxu2 }
 0x72b   : > { %v3338_v54 = vadd.f32 %v3337_v16, %v3288_v14  ;;  %v3421_v30 = vadd.f32 %v3405_v61, %v5350_v20  ;;  %v3350_v20 = vpop.f32.mrf.mxu1 }
 0x72c   : > { %v3564_v46 = vsel %vm3563_vm8, %v3555_v35, %v3562_v13  ;;  %v3476_v18 = vadd.f32 %v3475_v44, %v3474_v17  ;;  %v4241_v13 = vld [vmem:[%s5724_s9 + $0x8] sm:$0xff] }
 0x72d   : > { %v3369_v28 = vmul.f32 %v5616_v62, %v3338_v54  ;;  %3609 = vmatpush.bf16.msra.mxu3 %v4241_v13  ;;  %v3437_v32 = vmax.f32 %v3421_v30, 0.0 }
 0x72e   : > { %v3477_v2 = vrot.slane %v3476_v18, 2 }
 0x72f   : > { %v3390_v6 = vadd.f32 %v5621_v4, %v3369_v28 }
 0x730   : > { %v3478_v58 = vadd.f32 %v3477_v2, %v3476_v18 }
 0x731   : > { %v3406_v12 = vmax.f32 %v3390_v6, 0.0 }
 0x732   : > { %v3479_v59 = vrot.slane %v3478_v58, 1  ;;  %v3291_v41 = vpop.f32.mrf.mxu2 }
 0x733   : > { %v3341_v39 = vadd.f32 %v3340_v15, %v3291_v41  ;;  %v3422_v24 = vadd.f32 %v3406_v12, %v5367_v8 }
 0x734   : > { %v3480_v1 = vadd.f32 %v3479_v59, %v3478_v58 }
 0x735   : > { %v3370_v57 = vmul.f32 %v5616_v62, %v3341_v39  ;;  %v3438_v45 = vmax.f32 %v3422_v24, 0.0  ;;  %v3352_v39 = vpop.f32.mrf.mxu1 }
 0x736   : > { %v3520_v0 = vmul.f32 0.0625, %v3480_v1 }
 0x737   : > { %v3391_v34 = vadd.f32 %v5621_v4, %v3370_v57  ;;  %v3482_v15 = vsel %vm619_vm3, %v3438_v45, 0.0 }
 0x738   : > { %v3528_v36 = vpack.c.bf16 %v3520_v0, %v3520_v0 }
 0x739   : > { %v3407_v9 = vmax.f32 %v3391_v34, 0.0 }
 0x73a   : > { %v3556_v50 = vunpack.c.l.b16 %v3528_v36  ;;  %v3293_v49 = vpop.f32.mrf.mxu2 }
 0x73b   : > { %v3343_v3 = vadd.f32 %v3342_v52, %v3293_v49  ;;  %v3423_v33 = vadd.f32 %v3407_v9, %v5382_v40  ;;  %v3481_v40 = vsel %vm619_vm3, %v3437_v32, 0.0 }
 0x73c   : > { %v5666_v53 = vsel %vm3565_vm9, %v3556_v50, %v3564_v46  ;;  %v3483_v17 = vadd.f32 %v3482_v15, %v3481_v40 }
 0x73d   : > { %v3371_v55 = vmul.f32 %v5616_v62, %v3343_v3  ;;  %v3439_v29 = vmax.f32 %v3423_v33, 0.0 }
 0x73e   : > { %v3484_v52 = vrot.slane %v3483_v17, 4 }
 0x73f   : > { %v3392_v37 = vadd.f32 %v5621_v4, %v3371_v55  ;;  %v3490_v35 = vsel %vm619_vm3, %v3439_v29, 0.0 }
 0x740   : > { %v3485_v42 = vadd.f32 %v3484_v52, %v3483_v17 }
 0x741   : > { %v3408_v56 = vmax.f32 %v3392_v37, 0.0 }
 0x742   : > { %v3296_v60 = vpop.f32.mrf.mxu2  ;;  %v3486_v51 = vrot.slane %v3485_v42, 2 }
 0x743   : > { %v3346_v63 = vadd.f32 %v3345_v27, %v3296_v60  ;;  %v3424_v38 = vadd.f32 %v3408_v56, %v5393_v7 }
 0x744   : > { %v3487_v34 = vadd.f32 %v3486_v51, %v3485_v42 }
 0x745   : > { %v3372_v16 = vmul.f32 %v5616_v62, %v3346_v63  ;;  %v3440_v48 = vmax.f32 %v3424_v38, 0.0 }
 0x746   : > { %v3488_v9 = vrot.slane %v3487_v34, 1 }
 0x747   : > { %v3393_v10 = vadd.f32 %v5621_v4, %v3372_v16  ;;  %v3491_v8 = vsel %vm619_vm3, %v3440_v48, 0.0 }
 0x748   : > { %v3492_v14 = vadd.f32 %v3491_v8, %v3490_v35  ;;  %v3489_v30 = vadd.f32 %v3488_v9, %v3487_v34 }
 0x749   : > { %v3409_v22 = vmax.f32 %v3393_v10, 0.0 }
 0x74a   : > { %v3298_v21 = vpop.f32.mrf.mxu2 }
 0x74b   : > { %v3348_v11 = vadd.f32 %v3347_v23, %v3298_v21  ;;  %v3425_v7 = vadd.f32 %v3409_v22, %v5405_v26  ;;  %v3493_v26 = vrot.slane %v3492_v14, 4  ;;  %v3521_v21 = vmul.f32 0.0625, %v3489_v30 }
 0x74d   : > { %v3373_v5 = vmul.f32 %v5616_v62, %v3348_v11  ;;  %v3441_v18 = vmax.f32 %v3425_v7, 0.0  ;;  %v3494_v50 = vadd.f32 %v3493_v26, %v3492_v14 }
 0x74f   : > { %v3394_v31 = vadd.f32 %v5621_v4, %v3373_v5  ;;  %v3499_v1 = vsel %vm619_vm3, %v3441_v18, 0.0  ;;  %v3495_v55 = vrot.slane %v3494_v50, 2 }
 0x751   : > { %v3410_v44 = vmax.f32 %v3394_v31, 0.0  ;;  %v3496_v60 = vadd.f32 %v3495_v55, %v3494_v50 }
 0x752   : > { %v3301_v46 = vpop.f32.mrf.mxu2 }
 0x753   : > { %v3426_v2 = vadd.f32 %v3410_v44, %v5416_v47  ;;  %v3351_v58 = vadd.f32 %v3350_v20, %v3301_v46  ;;  %v4240_v47 = vld [vmem:[%s5724_s9] sm:$0xff]  ;;  %v3497_v23 = vrot.slane %v3496_v60, 1 }
 0x754   : > { %3610 = vmatpush.bf16.msra.mxu3 %v4240_v47 }
 0x755   : > { %v3442_v59 = vmax.f32 %v3426_v2, 0.0  ;;  %v3374_v41 = vmul.f32 %v5616_v62, %v3351_v58  ;;  %v4278_v58 = vld [vmem:[%s5725_s10] ss:$0 sm:$0xff] }
 0x757   : > { %v3500_v0 = vsel %vm619_vm3, %v3442_v59, 0.0  ;;  %v3395_v54 = vadd.f32 %v5621_v4, %v3374_v41 }
 0x758   : > { %v3501_v36 = vadd.f32 %v3500_v0, %v3499_v1 }
 0x759   : > { %v3411_v13 = vmax.f32 %v3395_v54, 0.0 }
 0x75a   : > { %v3502_v28 = vrot.slane %v3501_v36, 4  ;;  %v3303_v49 = vpop.f32.mrf.mxu2 }
 0x75b   : > { %v3353_v3 = vadd.f32 %v3352_v39, %v3303_v49  ;;  %v3427_v37 = vadd.f32 %v3411_v13, %v5426_v43  ;;  %v3498_v43 = vadd.f32 %v3497_v23, %v3496_v60 }
 0x75c   : > { %v3503_v27 = vadd.f32 %v3502_v28, %v3501_v36 }
 0x75d   : > { %v3375_v57 = vmul.f32 %v5616_v62, %v3353_v3  ;;  %v3443_v63 = vmax.f32 %v3427_v37, 0.0  ;;  %v3522_v48 = vmul.f32 0.0625, %v3498_v43 }
 0x75e   : > { %v3504_v6 = vrot.slane %v3503_v27, 2 }
 0x75f   : > { %v3396_v25 = vadd.f32 %v5621_v4, %v3375_v57  ;;  %v3508_v38 = vsel %vm619_vm3, %v3443_v63, 0.0  ;;  %v3530_v29 = vpack.c.bf16 %v3522_v48, %v3522_v48 }
 0x760   : > { %v3505_v56 = vadd.f32 %v3504_v6, %v3503_v27 }
 0x761   : > { %v3412_v12 = vmax.f32 %v3396_v25, 0.0  ;;  %v3558_v31 = vunpack.c.l.b16 %v3530_v29 }
 0x762   : > { %v3506_v24 = vrot.slane %v3505_v56, 1 }
 0x763   : > { %v3428_v61 = vadd.f32 %v3412_v12, %v5437_v19  ;;  %v3529_v19 = vpack.c.bf16 %v3521_v21, %v3521_v21 }
 0x764   : > { %v3507_v4 = vadd.f32 %v3506_v24, %v3505_v56 }
 0x765   : > { %v3444_v16 = vmax.f32 %v3428_v61, 0.0  ;;  %v3557_v7 = vunpack.c.l.b16 %v3529_v19 }
 0x766   : > { %v3523_v11 = vmul.f32 0.0625, %v3507_v4 }
 0x767   : > { %v3509_v62 = vsel %vm619_vm3, %v3444_v16, 0.0  ;;  %v3568_v35 = vsel %vm3567_vm10, %v3557_v7, %v5666_v53 }
 0x768   : > { %v3510_v10 = vadd.f32 %v3509_v62, %v3508_v38  ;;  %v3531_v15 = vpack.c.bf16 %v3523_v11, %v3523_v11  ;;  %v3570_v14 = vsel %vm3569_vm11, %v3558_v31, %v3568_v35 }
 0x76a   : > { %v3511_v33 = vrot.slane %v3510_v10, 4  ;;  %v3559_v40 = vunpack.c.l.b16 %v3531_v15 }
 0x76c   : > { %v3512_v45 = vadd.f32 %v3511_v33, %v3510_v10  ;;  %v3572_v46 = vsel %vm3571_vm12, %v3559_v40, %v3570_v14 }
 0x76e   : > { %v3513_v22 = vrot.slane %v3512_v45, 2 }
 0x770   : > { %v3514_v32 = vadd.f32 %v3513_v22, %v3512_v45 }
 0x772   : > { %v3515_v5 = vrot.slane %v3514_v32, 1 }
 0x774   : > { %v3516_v8 = vadd.f32 %v3515_v5, %v3514_v32 }
 0x776   : > { %v3524_v20 = vmul.f32 0.0625, %v3516_v8 }
 0x778   : > { %v3532_v17 = vpack.c.bf16 %v3524_v20, %v3524_v20 }
 0x77a   : > { %v3560_v44 = vunpack.c.l.b16 %v3532_v17 }
 0x77c   : > { %v3574_v18 = vsel %vm3573_vm13, %v3560_v44, %v3572_v46 }
 0x77d   : > { %v3575_v2 = vpack.c.b16 %v3574_v18, %v3574_v18 }
 0x77f   : > { %4160 = vmatmul.msk.bf16.vlgmr.msra.gmra.mxu3 %vm619_vm3, %v3575_v2 }
 0x802   : > { %v3612_v53 = vpop.f32.mrf.mxu3 }
 0x803   : > { %v3613_v52 = vadd.f32 %v4278_v58, %v3612_v53 }
 0x805   : > { %3617 = vst.msk [vmem:[%s389_s19] sm:$0xff] %vm3616_vm14, %v3613_v52 }
 0x80a   : > { %v3614_v59 = vpop.f32.mrf.mxu3 }
 0x80b PF: > { %s21_s17 = sadd.s32 1, %s4285_s17  }
 0x80c   : > { %p18_p5 = scmp.ge.s32.totalorder %s21_s17, 4  }
 0x80e   :  { %20 = sbr.rel (!%p18_p5) target bundleno = 1 (0x1), region = 106 }

</bundles_post_ra>
